<compile_context>
chip_gen: v6e
topology: v6e:2x2x1
jax: 0.10.0
libtpu: 0.0.40
codegen_flags: <defaults>
</compile_context>

<pallas_src>
import functools

import jax
import jax.numpy as jnp
from jax.experimental import pallas as pl
from jax.experimental.pallas import tpu as pltpu

EPS = 1e-5            # nn.LayerNorm default
_INV_SQRT2 = 0.7071067811865476


# ----------------------------------------------------------------------------
# in-kernel math helpers
# ----------------------------------------------------------------------------
def _gelu_exact(x):
    # matches torch.nn.functional.gelu default (erf form)
    return 0.5 * x * (1.0 + jax.lax.erf(x * _INV_SQRT2))


def _mha(q_in, kv, mask, wq_ref, bq_ref, wk_ref, bk_ref, wv_ref, bv_ref,
         wo_ref, bo_ref, num_heads):
    """Multi-head attention on one (query-tile, full-key-sequence) pair.

    q_in: (L, D) f32 (already LayerNorm'ed query), kv: (S, D) f32,
    mask: (1, S) additive key mask.
    wq/wk/wv refs: (H, D, dh) bf16; wo ref: (H, dh, D) bf16;
    bq/bk/bv refs: (H, 1, dh) f32; bo ref: (1, D) f32.
    """
    L, D = q_in.shape
    dh = wq_ref.shape[-1]
    scale = 1.0 / (dh ** 0.5)

    q_b = q_in.astype(jnp.bfloat16)
    kv_b = kv.astype(jnp.bfloat16)

    acc = jnp.zeros((L, D), jnp.float32)
    for h in range(num_heads):                      # static unroll; no lane slicing
        qh = jnp.dot(q_b, wq_ref[h], preferred_element_type=jnp.float32) + bq_ref[h]
        kh = jnp.dot(kv_b, wk_ref[h], preferred_element_type=jnp.float32) + bk_ref[h]
        vh = jnp.dot(kv_b, wv_ref[h], preferred_element_type=jnp.float32) + bv_ref[h]

        # scores: contract last dims (no explicit kh.T materialization)
        s = jax.lax.dot_general(
            qh.astype(jnp.bfloat16), kh.astype(jnp.bfloat16),
            (((1,), (1,)), ((), ())),
            preferred_element_type=jnp.float32) * scale + mask

        s = s - jnp.max(s, axis=-1, keepdims=True)
        p = jnp.exp(s)
        p = p * pl.reciprocal(jnp.sum(p, axis=-1, keepdims=True), approx=True)

        oh = jnp.dot(p.astype(jnp.bfloat16), vh.astype(jnp.bfloat16),
                     preferred_element_type=jnp.float32)            # (L, dh)
        # fold the output projection per head and accumulate (no concatenate)
        acc = acc + jnp.dot(oh.astype(jnp.bfloat16), wo_ref[h],
                            preferred_element_type=jnp.float32)     # (L, D)
    return acc + bo_ref[...]


# ----------------------------------------------------------------------------
# Fused EncoderLayer kernel:
#   bert_a = MHA(LN_b(x), bert_out, bert_out, mask)
#   self_a = MHA(LN_s(x), x, x, mask)
#   xc     = x + 0.5*bert_a + 0.5*self_a
#   out    = xc + Linear2(gelu(Linear1(LN_p(xc))))
# One grid step per (batch element, query tile).
# ----------------------------------------------------------------------------
def encoder_layer_kernel(
        xq_ref, xkv_ref, bert_ref, mask_ref,
        b_ln_g, b_ln_b, b_wq, b_bq, b_wk, b_bk, b_wv, b_bv, b_wo, b_bo,
        s_ln_g, s_ln_b, s_wq, s_bq, s_wk, s_bk, s_wv, s_bv, s_wo, s_bo,
        p_ln_g, p_ln_b, p_w1, p_b1, p_w2, p_b2,
        o_ref, *, num_heads):
    x = xq_ref[0]          # (TL, D) query tile
    x_kv = xkv_ref[0]      # (S, D)  full sequence (self-attn keys/values)
    bert_kv = bert_ref[0]  # (S, D)  bert output (bert-attn keys/values)
    mask = mask_ref[0]     # (1, S)  additive key mask (-1e9 on padded keys)

    # Shared LayerNorm statistics: both attention blocks normalize the same x.
    mu = jnp.mean(x, axis=-1, keepdims=True)
    var = jnp.mean(jnp.square(x - mu), axis=-1, keepdims=True)
    xn = (x - mu) * jax.lax.rsqrt(var + EPS)

    bert_a = _mha(xn * b_ln_g[...] + b_ln_b[...], bert_kv, mask,
                  b_wq, b_bq, b_wk, b_bk, b_wv, b_bv, b_wo, b_bo, num_heads)
    self_a = _mha(xn * s_ln_g[...] + s_ln_b[...], x_kv, mask,
                  s_wq, s_bq, s_wk, s_bk, s_wv, s_bv, s_wo, s_bo, num_heads)

    xc = x + 0.5 * bert_a + 0.5 * self_a

    # Position-wise feed-forward (LayerNorm -> Linear -> GELU -> Linear)
    mu2 = jnp.mean(xc, axis=-1, keepdims=True)
    var2 = jnp.mean(jnp.square(xc - mu2), axis=-1, keepdims=True)
    h = (xc - mu2) * jax.lax.rsqrt(var2 + EPS) * p_ln_g[...] + p_ln_b[...]
    h = jnp.dot(h.astype(jnp.bfloat16), p_w1[...],
                preferred_element_type=jnp.float32) + p_b1[...]
    h = _gelu_exact(h)
    h = jnp.dot(h.astype(jnp.bfloat16), p_w2[...],
                preferred_element_type=jnp.float32) + p_b2[...]

    o_ref[0] = (xc + h).astype(o_ref.dtype)


def encoder_layer(x, bert_out, add_mask, lp, num_heads):
    B, L, D = x.shape
    S = bert_out.shape[1]
    assert S == L, "key_padding_mask length must match both key sequences"
    H = num_heads
    dh = D // H
    P = lp["pff"]["w1"].shape[1]

    tl = L if L <= 128 else 128          # query tile along the sequence
    grid = (B, pl.cdiv(L, tl))

    def wspec(shape):                    # constant (weight) block spec
        n = len(shape)
        return pl.BlockSpec(shape, lambda b, l: (0,) * n)

    def attn_specs():
        return [
            wspec((1, D)), wspec((1, D)),                    # LayerNorm gamma/beta
            wspec((H, D, dh)), wspec((H, 1, dh)),            # Wq, bq (per-head split)
            wspec((H, D, dh)), wspec((H, 1, dh)),            # Wk, bk
            wspec((H, D, dh)), wspec((H, 1, dh)),            # Wv, bv
            wspec((H, dh, D)), wspec((1, D)),                # Wo (per-head), bo
        ]

    in_specs = ([
        pl.BlockSpec((1, tl, D), lambda b, l: (b, l, 0)),    # x : query tile
        pl.BlockSpec((1, S, D), lambda b, l: (b, 0, 0)),     # x : full-seq kv (self)
        pl.BlockSpec((1, S, D), lambda b, l: (b, 0, 0)),     # bert_out kv
        pl.BlockSpec((1, 1, S), lambda b, l: (b, 0, 0)),     # additive key mask
    ] + attn_specs() + attn_specs() + [
        wspec((1, D)), wspec((1, D)),                        # PFF LayerNorm
        wspec((D, P)), wspec((1, P)),                        # w1, b1
        wspec((P, D)), wspec((1, D)),                        # w2, b2
    ])

    def attn_args(p):
        return [p["ln_g"], p["ln_b"], p["wq_h"], p["bq_h"], p["wk_h"], p["bk_h"],
                p["wv_h"], p["bv_h"], p["wo_h"], p["bo"]]

    ba, sa, pf = lp["bert_attn"], lp["self_attn"], lp["pff"]
    args = ([x, x, bert_out, add_mask] + attn_args(ba) + attn_args(sa)
            + [pf["ln_g"], pf["ln_b"], pf["w1"], pf["b1"], pf["w2"], pf["b2"]])

    # advisory cost estimate (helps XLA overlap the per-layer calls)
    flops = B * (16 * L * D * D + 8 * L * S * D + 4 * L * D * P)
    transcendentals = B * (2 * H * L * S + L * P)
    weight_bytes = 2 * (8 * D * D + 2 * D * P) + 4 * (14 * D + 2 * P)
    bytes_accessed = 4 * (3 * B * L * D + B * S) + weight_bytes
    cost = pl.CostEstimate(flops=flops, transcendentals=transcendentals,
                           bytes_accessed=bytes_accessed)

    kernel = functools.partial(encoder_layer_kernel, num_heads=num_heads)
    return pl.pallas_call(
        kernel,
        out_shape=jax.ShapeDtypeStruct((B, L, D), x.dtype),
        grid=grid,
        in_specs=in_specs,
        out_specs=pl.BlockSpec((1, tl, D), lambda b, l: (b, l, 0)),
        compiler_params=pltpu.CompilerParams(
            dimension_semantics=("parallel", "parallel")),
        cost_estimate=cost,
    )(*args)


# ----------------------------------------------------------------------------
# parameter prep: pre-split attention weights per head + bf16 matmul operands
# (one-time JAX glue outside the kernel)
# ----------------------------------------------------------------------------
def _prep_attn(p, num_heads):
    D = p["wq"].shape[0]
    dh = D // num_heads

    def split_w(w):   # (D, D) -> (H, D, dh) bf16
        return jnp.transpose(w.reshape(D, num_heads, dh), (1, 0, 2)).astype(jnp.bfloat16)

    def split_b(b):   # (1, D) -> (H, 1, dh) f32
        return jnp.transpose(b.reshape(1, num_heads, dh), (1, 0, 2))

    return {
        "ln_g": p["ln_g"], "ln_b": p["ln_b"],
        "wq_h": split_w(p["wq"]), "bq_h": split_b(p["bq"]),
        "wk_h": split_w(p["wk"]), "bk_h": split_b(p["bk"]),
        "wv_h": split_w(p["wv"]), "bv_h": split_b(p["bv"]),
        "wo_h": p["wo"].reshape(num_heads, dh, D).astype(jnp.bfloat16),
        "bo": p["bo"],
    }


def prepare_layer(layer, num_heads):
    pf = layer["pff"]
    return {
        "bert_attn": _prep_attn(layer["bert_attn"], num_heads),
        "self_attn": _prep_attn(layer["self_attn"], num_heads),
        "pff": {
            "ln_g": pf["ln_g"], "ln_b": pf["ln_b"],
            "w1": pf["w1"].astype(jnp.bfloat16), "b1": pf["b1"],
            "w2": pf["w2"].astype(jnp.bfloat16), "b2": pf["b2"],
        },
    }


# ----------------------------------------------------------------------------
# Encoder forward (glue + one fused Pallas kernel per layer)
# ----------------------------------------------------------------------------
def _layernorm_host(x, g, b):
    mu = jnp.mean(x, axis=-1, keepdims=True)
    var = jnp.mean(jnp.square(x - mu), axis=-1, keepdims=True)
    return (x - mu) * jax.lax.rsqrt(var + EPS) * g + b


def encoder_forward(params, tokens, bert_out, x_pad_mask, num_heads):
    B, L = tokens.shape
    emb = params["emb"]
    # glue: embedding gather + LayerNorm (bert_embeddings stand-in)
    x = jnp.take(emb["word"], tokens, axis=0) + emb["pos"][None, :L, :]
    x = _layernorm_host(x, emb["ln_g"], emb["ln_b"])

    # key_padding_mask -> additive float mask, shape (B, 1, S)
    # Note: -1e9 instead of -inf, so fully-padded rows give a uniform softmax
    # instead of PyTorch's NaN.
    add_mask = jnp.where(x_pad_mask, -1e9, 0.0).astype(jnp.float32)[:, None, :]

    prepped = [prepare_layer(layer, num_heads) for layer in params["layers"]]
    for lp in prepped:
        x = encoder_layer(x, bert_out, add_mask, lp, num_heads)
    return x


# ----------------------------------------------------------------------------
# pure-JAX reference (same bf16-operand / f32-accumulate precision policy as
# the kernel, so the comparison is precision-symmetric; algorithm follows the
# PyTorch module exactly)
# ----------------------------------------------------------------------------
def _bf(t):
    return t.astype(jnp.bfloat16)


def _mm_ref(a, b):
    return jnp.dot(_bf(a), _bf(b), preferred_element_type=jnp.float32)


def _attn_ref(x, kv, add_mask, p, num_heads):
    B, L, D = x.shape
    S = kv.shape[1]
    dh = D // num_heads
    xn = _layernorm_host(x, p["ln_g"], p["ln_b"])
    q = _mm_ref(xn, p["wq"]) + p["bq"]
    k = _mm_ref(kv, p["wk"]) + p["bk"]
    v = _mm_ref(kv, p["wv"]) + p["bv"]
    q = q.reshape(B, L, num_heads, dh).transpose(0, 2, 1, 3)
    k = k.reshape(B, S, num_heads, dh).transpose(0, 2, 1, 3)
    v = v.reshape(B, S, num_heads, dh).transpose(0, 2, 1, 3)
    s = jnp.einsum("bhld,bhsd->bhls", _bf(q), _bf(k),
                   preferred_element_type=jnp.float32) / jnp.sqrt(jnp.float32(dh))
    s = s + add_mask[:, None, :, :]
    a = jax.nn.softmax(s, axis=-1)
    o = jnp.einsum("bhls,bhsd->bhld", _bf(a), _bf(v),
                   preferred_element_type=jnp.float32)
    o = o.transpose(0, 2, 1, 3).reshape(B, L, D)
    return _mm_ref(o, p["wo"]) + p["bo"]


def _encoder_ref(params, tokens, bert_out, x_pad_mask, num_heads):
    B, L = tokens.shape
    emb = params["emb"]
    x = jnp.take(emb["word"], tokens, axis=0) + emb["pos"][None, :L, :]
    x = _layernorm_host(x, emb["ln_g"], emb["ln_b"])
    add_mask = jnp.where(x_pad_mask, -1e9, 0.0).astype(jnp.float32)[:, None, :]
    for layer in params["layers"]:
        ba = _attn_ref(x, bert_out, add_mask, layer["bert_attn"], num_heads)
        sa = _attn_ref(x, x, add_mask, layer["self_attn"], num_heads)
        x = x + 0.5 * ba + 0.5 * sa
        p = layer["pff"]
        h = _mm_ref(_layernorm_host(x, p["ln_g"], p["ln_b"]), p["w1"]) + p["b1"]
        h = _gelu_exact(h)
        x = x + (_mm_ref(h, p["w2"]) + p["b2"])
    return x


# ----------------------------------------------------------------------------
# deterministic parameter init (synthetic; no checkpoint load)
# ----------------------------------------------------------------------------
def init_params(key, vocab, max_len, D, P, n_layers):
    def dense(k, shape, scale=0.05):
        return jax.random.normal(k, shape, jnp.float32) * scale

    k_emb, k_layers = jax.random.split(key)
    ke = jax.random.split(k_emb, 4)
    emb = {
        "word": dense(ke[0], (vocab, D), 0.1),
        "pos":  dense(ke[1], (max_len, D), 0.1),
        "ln_g": 1.0 + dense(ke[2], (1, D), 0.05),
        "ln_b": dense(ke[3], (1, D), 0.05),
    }

    def attn_params(k):
        ks = jax.random.split(k, 10)
        return {
            "ln_g": 1.0 + dense(ks[0], (1, D), 0.05),
            "ln_b": dense(ks[1], (1, D), 0.05),
            "wq": dense(ks[2], (D, D)), "bq": dense(ks[3], (1, D), 0.02),
            "wk": dense(ks[4], (D, D)), "bk": dense(ks[5], (1, D), 0.02),
            "wv": dense(ks[6], (D, D)), "bv": dense(ks[7], (1, D), 0.02),
            "wo": dense(ks[8], (D, D)), "bo": dense(ks[9], (1, D), 0.02),
        }

    layers = []
    for lk in jax.random.split(k_layers, n_layers):
        ka, ks_, kp = jax.random.split(lk, 3)
        kpf = jax.random.split(kp, 6)
        pff = {
            "ln_g": 1.0 + dense(kpf[0], (1, D), 0.05),
            "ln_b": dense(kpf[1], (1, D), 0.05),
            "w1": dense(kpf[2], (D, P)), "b1": dense(kpf[3], (1, P), 0.02),
            "w2": dense(kpf[4], (P, D)), "b2": dense(kpf[5], (1, D), 0.02),
        }
        layers.append({"bert_attn": attn_params(ka),
                       "self_attn": attn_params(ks_),
                       "pff": pff})
    return {"emb": emb, "layers": layers}


# ----------------------------------------------------------------------------
if __name__ == "__main__":
    B, L, D, H, P, N_LAYERS, VOCAB, MAX_LEN = 2, 8, 32, 4, 64, 2, 100, 64

    root = jax.random.PRNGKey(0)
    k_par, k_tok, k_bert = jax.random.split(root, 3)

    params = init_params(k_par, VOCAB, MAX_LEN, D, P, N_LAYERS)
    tokens = jax.random.randint(k_tok, (B, L), 0, VOCAB, dtype=jnp.int32)
    bert_out = jax.random.normal(k_bert, (B, L, D), jnp.float32)
    x_pad_mask = jnp.zeros((B, L), dtype=bool).at[1, L - 2:].set(True)  # pad tail of batch 1

    out = encoder_forward(params, tokens, bert_out, x_pad_mask, num_heads=H)
    out = jax.block_until_ready(out)

    ref = _encoder_ref(params, tokens, bert_out, x_pad_mask, num_heads=H)
    ref = jax.block_until_ready(ref)

    assert out.shape == (B, L, D)
    max_err = float(jnp.max(jnp.abs(out - ref)))
    assert bool(jnp.allclose(out, ref, atol=1e-2, rtol=1e-2)), (
        f"mismatch vs reference (max abs err {max_err})")

    print("KERNEL_OK")
</pallas_src>

<mosaic_0001>
module attributes {stable_mosaic.version = 11 : i64} {
  func.func @encoder_layer_kernel(%arg0: i32, %arg1: i32, %arg2: memref<1x8x32xf32, #tpu.memory_space<vmem>>, %arg3: memref<1x8x32xf32, #tpu.memory_space<vmem>>, %arg4: memref<1x8x32xf32, #tpu.memory_space<vmem>>, %arg5: memref<1x1x8xf32, #tpu.memory_space<vmem>>, %arg6: memref<1x32xf32, #tpu.memory_space<vmem>>, %arg7: memref<1x32xf32, #tpu.memory_space<vmem>>, %arg8: memref<4x32x8xbf16, #tpu.memory_space<vmem>>, %arg9: memref<4x1x8xf32, #tpu.memory_space<vmem>>, %arg10: memref<4x32x8xbf16, #tpu.memory_space<vmem>>, %arg11: memref<4x1x8xf32, #tpu.memory_space<vmem>>, %arg12: memref<4x32x8xbf16, #tpu.memory_space<vmem>>, %arg13: memref<4x1x8xf32, #tpu.memory_space<vmem>>, %arg14: memref<4x8x32xbf16, #tpu.memory_space<vmem>>, %arg15: memref<1x32xf32, #tpu.memory_space<vmem>>, %arg16: memref<1x32xf32, #tpu.memory_space<vmem>>, %arg17: memref<1x32xf32, #tpu.memory_space<vmem>>, %arg18: memref<4x32x8xbf16, #tpu.memory_space<vmem>>, %arg19: memref<4x1x8xf32, #tpu.memory_space<vmem>>, %arg20: memref<4x32x8xbf16, #tpu.memory_space<vmem>>, %arg21: memref<4x1x8xf32, #tpu.memory_space<vmem>>, %arg22: memref<4x32x8xbf16, #tpu.memory_space<vmem>>, %arg23: memref<4x1x8xf32, #tpu.memory_space<vmem>>, %arg24: memref<4x8x32xbf16, #tpu.memory_space<vmem>>, %arg25: memref<1x32xf32, #tpu.memory_space<vmem>>, %arg26: memref<1x32xf32, #tpu.memory_space<vmem>>, %arg27: memref<1x32xf32, #tpu.memory_space<vmem>>, %arg28: memref<32x64xbf16, #tpu.memory_space<vmem>>, %arg29: memref<1x64xf32, #tpu.memory_space<vmem>>, %arg30: memref<64x32xbf16, #tpu.memory_space<vmem>>, %arg31: memref<1x32xf32, #tpu.memory_space<vmem>>, %arg32: memref<1x8x32xf32, #tpu.memory_space<vmem>>) attributes {dimension_semantics = [#tpu.dimension_semantics<parallel>, #tpu.dimension_semantics<parallel>], iteration_bounds = array<i64: 2, 1>, scalar_prefetch = 0 : i64, scratch_operands = 0 : i64, tpu.core_type = #tpu.core_type<tc>, window_params = [{transform_indices = @transform_0, window_bounds = array<i64: 1, 8, 32>}, {transform_indices = @transform_1, window_bounds = array<i64: 1, 8, 32>}, {transform_indices = @transform_2, window_bounds = array<i64: 1, 8, 32>}, {transform_indices = @transform_3, window_bounds = array<i64: 1, 1, 8>}, {pipeline_mode = #tpu.pipeline_mode<synchronous>, transform_indices = @transform_4, window_bounds = array<i64: 1, 32>}, {pipeline_mode = #tpu.pipeline_mode<synchronous>, transform_indices = @transform_5, window_bounds = array<i64: 1, 32>}, {pipeline_mode = #tpu.pipeline_mode<synchronous>, transform_indices = @transform_6, window_bounds = array<i64: 4, 32, 8>}, {pipeline_mode = #tpu.pipeline_mode<synchronous>, transform_indices = @transform_7, window_bounds = array<i64: 4, 1, 8>}, {pipeline_mode = #tpu.pipeline_mode<synchronous>, transform_indices = @transform_8, window_bounds = array<i64: 4, 32, 8>}, {pipeline_mode = #tpu.pipeline_mode<synchronous>, transform_indices = @transform_9, window_bounds = array<i64: 4, 1, 8>}, {pipeline_mode = #tpu.pipeline_mode<synchronous>, transform_indices = @transform_10, window_bounds = array<i64: 4, 32, 8>}, {pipeline_mode = #tpu.pipeline_mode<synchronous>, transform_indices = @transform_11, window_bounds = array<i64: 4, 1, 8>}, {pipeline_mode = #tpu.pipeline_mode<synchronous>, transform_indices = @transform_12, window_bounds = array<i64: 4, 8, 32>}, {pipeline_mode = #tpu.pipeline_mode<synchronous>, transform_indices = @transform_13, window_bounds = array<i64: 1, 32>}, {pipeline_mode = #tpu.pipeline_mode<synchronous>, transform_indices = @transform_14, window_bounds = array<i64: 1, 32>}, {pipeline_mode = #tpu.pipeline_mode<synchronous>, transform_indices = @transform_15, window_bounds = array<i64: 1, 32>}, {pipeline_mode = #tpu.pipeline_mode<synchronous>, transform_indices = @transform_16, window_bounds = array<i64: 4, 32, 8>}, {pipeline_mode = #tpu.pipeline_mode<synchronous>, transform_indices = @transform_17, window_bounds = array<i64: 4, 1, 8>}, {pipeline_mode = #tpu.pipeline_mode<synchronous>, transform_indices = @transform_18, window_bounds = array<i64: 4, 32, 8>}, {pipeline_mode = #tpu.pipeline_mode<synchronous>, transform_indices = @transform_19, window_bounds = array<i64: 4, 1, 8>}, {pipeline_mode = #tpu.pipeline_mode<synchronous>, transform_indices = @transform_20, window_bounds = array<i64: 4, 32, 8>}, {pipeline_mode = #tpu.pipeline_mode<synchronous>, transform_indices = @transform_21, window_bounds = array<i64: 4, 1, 8>}, {pipeline_mode = #tpu.pipeline_mode<synchronous>, transform_indices = @transform_22, window_bounds = array<i64: 4, 8, 32>}, {pipeline_mode = #tpu.pipeline_mode<synchronous>, transform_indices = @transform_23, window_bounds = array<i64: 1, 32>}, {pipeline_mode = #tpu.pipeline_mode<synchronous>, transform_indices = @transform_24, window_bounds = array<i64: 1, 32>}, {pipeline_mode = #tpu.pipeline_mode<synchronous>, transform_indices = @transform_25, window_bounds = array<i64: 1, 32>}, {pipeline_mode = #tpu.pipeline_mode<synchronous>, transform_indices = @transform_26, window_bounds = array<i64: 32, 64>}, {pipeline_mode = #tpu.pipeline_mode<synchronous>, transform_indices = @transform_27, window_bounds = array<i64: 1, 64>}, {pipeline_mode = #tpu.pipeline_mode<synchronous>, transform_indices = @transform_28, window_bounds = array<i64: 64, 32>}, {pipeline_mode = #tpu.pipeline_mode<synchronous>, transform_indices = @transform_29, window_bounds = array<i64: 1, 32>}, {transform_indices = @transform_30, window_bounds = array<i64: 1, 8, 32>}]} {
    %c0 = arith.constant 0 : index
    %c0_0 = arith.constant 0 : index
    %c0_1 = arith.constant 0 : index
    %0 = vector.load %arg2[%c0, %c0_0, %c0_1] : memref<1x8x32xf32, #tpu.memory_space<vmem>>, vector<1x8x32xf32>
    %1 = vector.shape_cast %0 : vector<1x8x32xf32> to vector<8x32xf32>
    %c0_2 = arith.constant 0 : index
    %c0_3 = arith.constant 0 : index
    %c0_4 = arith.constant 0 : index
    %2 = vector.load %arg3[%c0_2, %c0_3, %c0_4] : memref<1x8x32xf32, #tpu.memory_space<vmem>>, vector<1x8x32xf32>
    %3 = vector.shape_cast %2 : vector<1x8x32xf32> to vector<8x32xf32>
    %c0_5 = arith.constant 0 : index
    %c0_6 = arith.constant 0 : index
    %c0_7 = arith.constant 0 : index
    %4 = vector.load %arg4[%c0_5, %c0_6, %c0_7] : memref<1x8x32xf32, #tpu.memory_space<vmem>>, vector<1x8x32xf32>
    %5 = vector.shape_cast %4 : vector<1x8x32xf32> to vector<8x32xf32>
    %c0_8 = arith.constant 0 : index
    %c0_9 = arith.constant 0 : index
    %c0_10 = arith.constant 0 : index
    %6 = vector.load %arg5[%c0_8, %c0_9, %c0_10] : memref<1x1x8xf32, #tpu.memory_space<vmem>>, vector<1x1x8xf32>
    %7 = vector.shape_cast %6 : vector<1x1x8xf32> to vector<1x8xf32>
    %cst = arith.constant dense<0.000000e+00> : vector<8xf32>
    %8 = vector.multi_reduction <add>, %1, %cst [1] : vector<8x32xf32> to vector<8xf32>
    %9 = vector.shape_cast %8 : vector<8xf32> to vector<8x1xf32>
    %cst_11 = arith.constant 3.200000e+01 : f32
    %10 = vector.broadcast %cst_11 : f32 to vector<8x1xf32>
    %11 = arith.divf %9, %10 : vector<8x1xf32>
    %12 = vector.broadcast %11 : vector<8x1xf32> to vector<8x32xf32>
    %13 = arith.subf %1, %12 : vector<8x32xf32>
    %14 = arith.mulf %13, %13 : vector<8x32xf32>
    %cst_12 = arith.constant dense<0.000000e+00> : vector<8xf32>
    %15 = vector.multi_reduction <add>, %14, %cst_12 [1] : vector<8x32xf32> to vector<8xf32>
    %16 = vector.shape_cast %15 : vector<8xf32> to vector<8x1xf32>
    %cst_13 = arith.constant 3.200000e+01 : f32
    %17 = vector.broadcast %cst_13 : f32 to vector<8x1xf32>
    %18 = arith.divf %16, %17 : vector<8x1xf32>
    %19 = vector.broadcast %11 : vector<8x1xf32> to vector<8x32xf32>
    %20 = arith.subf %1, %19 : vector<8x32xf32>
    %cst_14 = arith.constant 9.99999974E-6 : f32
    %21 = vector.broadcast %cst_14 : f32 to vector<8x1xf32>
    %22 = arith.addf %18, %21 : vector<8x1xf32>
    %23 = math.rsqrt %22 : vector<8x1xf32>
    %24 = vector.broadcast %23 : vector<8x1xf32> to vector<8x32xf32>
    %25 = arith.mulf %20, %24 : vector<8x32xf32>
    %c0_15 = arith.constant 0 : index
    %c0_16 = arith.constant 0 : index
    %26 = vector.load %arg6[%c0_15, %c0_16] : memref<1x32xf32, #tpu.memory_space<vmem>>, vector<1x32xf32>
    %27 = vector.broadcast %26 : vector<1x32xf32> to vector<8x32xf32>
    %28 = arith.mulf %25, %27 : vector<8x32xf32>
    %c0_17 = arith.constant 0 : index
    %c0_18 = arith.constant 0 : index
    %29 = vector.load %arg7[%c0_17, %c0_18] : memref<1x32xf32, #tpu.memory_space<vmem>>, vector<1x32xf32>
    %30 = vector.broadcast %29 : vector<1x32xf32> to vector<8x32xf32>
    %31 = arith.addf %28, %30 : vector<8x32xf32>
    %32 = arith.truncf %31 : vector<8x32xf32> to vector<8x32xbf16>
    %33 = arith.truncf %5 : vector<8x32xf32> to vector<8x32xbf16>
    %cst_19 = arith.constant 0.000000e+00 : f32
    %34 = vector.broadcast %cst_19 : f32 to vector<8x32xf32>
    %c0_20 = arith.constant 0 : index
    %c0_21 = arith.constant 0 : index
    %c0_22 = arith.constant 0 : index
    %35 = vector.load %arg8[%c0_20, %c0_21, %c0_22] : memref<4x32x8xbf16, #tpu.memory_space<vmem>>, vector<1x32x8xbf16>
    %36 = vector.shape_cast %35 : vector<1x32x8xbf16> to vector<32x8xbf16>
    %cst_23 = arith.constant dense<0.000000e+00> : vector<8x8xf32>
    %37 = tpu.matmul %32, %36, %cst_23 {dimension_numbers = #tpu.dot_dimension_numbers<[1], [0], [0], [1], [0, 0, 1, 1], [], []>} : vector<8x32xbf16>, vector<32x8xbf16>, vector<8x8xf32> -> vector<8x8xf32>
    %c0_24 = arith.constant 0 : index
    %c0_25 = arith.constant 0 : index
    %c0_26 = arith.constant 0 : index
    %38 = vector.load %arg9[%c0_24, %c0_25, %c0_26] : memref<4x1x8xf32, #tpu.memory_space<vmem>>, vector<1x1x8xf32>
    %39 = vector.shape_cast %38 : vector<1x1x8xf32> to vector<1x8xf32>
    %40 = vector.broadcast %39 : vector<1x8xf32> to vector<8x8xf32>
    %41 = arith.addf %37, %40 : vector<8x8xf32>
    %c0_27 = arith.constant 0 : index
    %c0_28 = arith.constant 0 : index
    %c0_29 = arith.constant 0 : index
    %42 = vector.load %arg10[%c0_27, %c0_28, %c0_29] : memref<4x32x8xbf16, #tpu.memory_space<vmem>>, vector<1x32x8xbf16>
    %43 = vector.shape_cast %42 : vector<1x32x8xbf16> to vector<32x8xbf16>
    %cst_30 = arith.constant dense<0.000000e+00> : vector<8x8xf32>
    %44 = tpu.matmul %33, %43, %cst_30 {dimension_numbers = #tpu.dot_dimension_numbers<[1], [0], [0], [1], [0, 0, 1, 1], [], []>} : vector<8x32xbf16>, vector<32x8xbf16>, vector<8x8xf32> -> vector<8x8xf32>
    %c0_31 = arith.constant 0 : index
    %c0_32 = arith.constant 0 : index
    %c0_33 = arith.constant 0 : index
    %45 = vector.load %arg11[%c0_31, %c0_32, %c0_33] : memref<4x1x8xf32, #tpu.memory_space<vmem>>, vector<1x1x8xf32>
    %46 = vector.shape_cast %45 : vector<1x1x8xf32> to vector<1x8xf32>
    %47 = vector.broadcast %46 : vector<1x8xf32> to vector<8x8xf32>
    %48 = arith.addf %44, %47 : vector<8x8xf32>
    %c0_34 = arith.constant 0 : index
    %c0_35 = arith.constant 0 : index
    %c0_36 = arith.constant 0 : index
    %49 = vector.load %arg12[%c0_34, %c0_35, %c0_36] : memref<4x32x8xbf16, #tpu.memory_space<vmem>>, vector<1x32x8xbf16>
    %50 = vector.shape_cast %49 : vector<1x32x8xbf16> to vector<32x8xbf16>
    %cst_37 = arith.constant dense<0.000000e+00> : vector<8x8xf32>
    %51 = tpu.matmul %33, %50, %cst_37 {dimension_numbers = #tpu.dot_dimension_numbers<[1], [0], [0], [1], [0, 0, 1, 1], [], []>} : vector<8x32xbf16>, vector<32x8xbf16>, vector<8x8xf32> -> vector<8x8xf32>
    %c0_38 = arith.constant 0 : index
    %c0_39 = arith.constant 0 : index
    %c0_40 = arith.constant 0 : index
    %52 = vector.load %arg13[%c0_38, %c0_39, %c0_40] : memref<4x1x8xf32, #tpu.memory_space<vmem>>, vector<1x1x8xf32>
    %53 = vector.shape_cast %52 : vector<1x1x8xf32> to vector<1x8xf32>
    %54 = vector.broadcast %53 : vector<1x8xf32> to vector<8x8xf32>
    %55 = arith.addf %51, %54 : vector<8x8xf32>
    %56 = arith.truncf %41 : vector<8x8xf32> to vector<8x8xbf16>
    %57 = arith.truncf %48 : vector<8x8xf32> to vector<8x8xbf16>
    %cst_41 = arith.constant dense<0.000000e+00> : vector<8x8xf32>
    %58 = tpu.matmul %56, %57, %cst_41 {dimension_numbers = #tpu.dot_dimension_numbers<[1], [1], [0], [0], [0, 0, 1, 0], [], []>} : vector<8x8xbf16>, vector<8x8xbf16>, vector<8x8xf32> -> vector<8x8xf32>
    %cst_42 = arith.constant 0.353553385 : f32
    %59 = vector.broadcast %cst_42 : f32 to vector<8x8xf32>
    %60 = arith.mulf %58, %59 : vector<8x8xf32>
    %61 = vector.broadcast %7 : vector<1x8xf32> to vector<8x8xf32>
    %62 = arith.addf %60, %61 : vector<8x8xf32>
    %cst_43 = arith.constant dense<0xFF800000> : vector<8xf32>
    %63 = vector.multi_reduction <maximumf>, %62, %cst_43 [1] : vector<8x8xf32> to vector<8xf32>
    %64 = vector.shape_cast %63 : vector<8xf32> to vector<8x1xf32>
    %65 = vector.broadcast %64 : vector<8x1xf32> to vector<8x8xf32>
    %66 = arith.subf %62, %65 : vector<8x8xf32>
    %67 = math.exp %66 : vector<8x8xf32>
    %cst_44 = arith.constant dense<0.000000e+00> : vector<8xf32>
    %68 = vector.multi_reduction <add>, %67, %cst_44 [1] : vector<8x8xf32> to vector<8xf32>
    %69 = vector.shape_cast %68 : vector<8xf32> to vector<8x1xf32>
    %70 = tpu.reciprocal %69 {approx = true} : vector<8x1xf32> -> vector<8x1xf32>
    %71 = vector.broadcast %70 : vector<8x1xf32> to vector<8x8xf32>
    %72 = arith.mulf %67, %71 : vector<8x8xf32>
    %73 = arith.truncf %72 : vector<8x8xf32> to vector<8x8xbf16>
    %74 = arith.truncf %55 : vector<8x8xf32> to vector<8x8xbf16>
    %cst_45 = arith.constant dense<0.000000e+00> : vector<8x8xf32>
    %75 = tpu.matmul %73, %74, %cst_45 {dimension_numbers = #tpu.dot_dimension_numbers<[1], [0], [0], [1], [0, 0, 1, 1], [], []>} : vector<8x8xbf16>, vector<8x8xbf16>, vector<8x8xf32> -> vector<8x8xf32>
    %76 = arith.truncf %75 : vector<8x8xf32> to vector<8x8xbf16>
    %c0_46 = arith.constant 0 : index
    %c0_47 = arith.constant 0 : index
    %c0_48 = arith.constant 0 : index
    %77 = vector.load %arg14[%c0_46, %c0_47, %c0_48] : memref<4x8x32xbf16, #tpu.memory_space<vmem>>, vector<1x8x32xbf16>
    %78 = vector.shape_cast %77 : vector<1x8x32xbf16> to vector<8x32xbf16>
    %cst_49 = arith.constant dense<0.000000e+00> : vector<8x32xf32>
    %79 = tpu.matmul %76, %78, %cst_49 {dimension_numbers = #tpu.dot_dimension_numbers<[1], [0], [0], [1], [0, 0, 1, 1], [], []>} : vector<8x8xbf16>, vector<8x32xbf16>, vector<8x32xf32> -> vector<8x32xf32>
    %80 = arith.addf %34, %79 : vector<8x32xf32>
    %c1 = arith.constant 1 : index
    %c0_50 = arith.constant 0 : index
    %c0_51 = arith.constant 0 : index
    %81 = vector.load %arg8[%c1, %c0_50, %c0_51] : memref<4x32x8xbf16, #tpu.memory_space<vmem>>, vector<1x32x8xbf16>
    %82 = vector.shape_cast %81 : vector<1x32x8xbf16> to vector<32x8xbf16>
    %cst_52 = arith.constant dense<0.000000e+00> : vector<8x8xf32>
    %83 = tpu.matmul %32, %82, %cst_52 {dimension_numbers = #tpu.dot_dimension_numbers<[1], [0], [0], [1], [0, 0, 1, 1], [], []>} : vector<8x32xbf16>, vector<32x8xbf16>, vector<8x8xf32> -> vector<8x8xf32>
    %c1_53 = arith.constant 1 : index
    %c0_54 = arith.constant 0 : index
    %c0_55 = arith.constant 0 : index
    %84 = vector.load %arg9[%c1_53, %c0_54, %c0_55] : memref<4x1x8xf32, #tpu.memory_space<vmem>>, vector<1x1x8xf32>
    %85 = vector.shape_cast %84 : vector<1x1x8xf32> to vector<1x8xf32>
    %86 = vector.broadcast %85 : vector<1x8xf32> to vector<8x8xf32>
    %87 = arith.addf %83, %86 : vector<8x8xf32>
    %c1_56 = arith.constant 1 : index
    %c0_57 = arith.constant 0 : index
    %c0_58 = arith.constant 0 : index
    %88 = vector.load %arg10[%c1_56, %c0_57, %c0_58] : memref<4x32x8xbf16, #tpu.memory_space<vmem>>, vector<1x32x8xbf16>
    %89 = vector.shape_cast %88 : vector<1x32x8xbf16> to vector<32x8xbf16>
    %cst_59 = arith.constant dense<0.000000e+00> : vector<8x8xf32>
    %90 = tpu.matmul %33, %89, %cst_59 {dimension_numbers = #tpu.dot_dimension_numbers<[1], [0], [0], [1], [0, 0, 1, 1], [], []>} : vector<8x32xbf16>, vector<32x8xbf16>, vector<8x8xf32> -> vector<8x8xf32>
    %c1_60 = arith.constant 1 : index
    %c0_61 = arith.constant 0 : index
    %c0_62 = arith.constant 0 : index
    %91 = vector.load %arg11[%c1_60, %c0_61, %c0_62] : memref<4x1x8xf32, #tpu.memory_space<vmem>>, vector<1x1x8xf32>
    %92 = vector.shape_cast %91 : vector<1x1x8xf32> to vector<1x8xf32>
    %93 = vector.broadcast %92 : vector<1x8xf32> to vector<8x8xf32>
    %94 = arith.addf %90, %93 : vector<8x8xf32>
    %c1_63 = arith.constant 1 : index
    %c0_64 = arith.constant 0 : index
    %c0_65 = arith.constant 0 : index
    %95 = vector.load %arg12[%c1_63, %c0_64, %c0_65] : memref<4x32x8xbf16, #tpu.memory_space<vmem>>, vector<1x32x8xbf16>
    %96 = vector.shape_cast %95 : vector<1x32x8xbf16> to vector<32x8xbf16>
    %cst_66 = arith.constant dense<0.000000e+00> : vector<8x8xf32>
    %97 = tpu.matmul %33, %96, %cst_66 {dimension_numbers = #tpu.dot_dimension_numbers<[1], [0], [0], [1], [0, 0, 1, 1], [], []>} : vector<8x32xbf16>, vector<32x8xbf16>, vector<8x8xf32> -> vector<8x8xf32>
    %c1_67 = arith.constant 1 : index
    %c0_68 = arith.constant 0 : index
    %c0_69 = arith.constant 0 : index
    %98 = vector.load %arg13[%c1_67, %c0_68, %c0_69] : memref<4x1x8xf32, #tpu.memory_space<vmem>>, vector<1x1x8xf32>
    %99 = vector.shape_cast %98 : vector<1x1x8xf32> to vector<1x8xf32>
    %100 = vector.broadcast %99 : vector<1x8xf32> to vector<8x8xf32>
    %101 = arith.addf %97, %100 : vector<8x8xf32>
    %102 = arith.truncf %87 : vector<8x8xf32> to vector<8x8xbf16>
    %103 = arith.truncf %94 : vector<8x8xf32> to vector<8x8xbf16>
    %cst_70 = arith.constant dense<0.000000e+00> : vector<8x8xf32>
    %104 = tpu.matmul %102, %103, %cst_70 {dimension_numbers = #tpu.dot_dimension_numbers<[1], [1], [0], [0], [0, 0, 1, 0], [], []>} : vector<8x8xbf16>, vector<8x8xbf16>, vector<8x8xf32> -> vector<8x8xf32>
    %cst_71 = arith.constant 0.353553385 : f32
    %105 = vector.broadcast %cst_71 : f32 to vector<8x8xf32>
    %106 = arith.mulf %104, %105 : vector<8x8xf32>
    %107 = vector.broadcast %7 : vector<1x8xf32> to vector<8x8xf32>
    %108 = arith.addf %106, %107 : vector<8x8xf32>
    %cst_72 = arith.constant dense<0xFF800000> : vector<8xf32>
    %109 = vector.multi_reduction <maximumf>, %108, %cst_72 [1] : vector<8x8xf32> to vector<8xf32>
    %110 = vector.shape_cast %109 : vector<8xf32> to vector<8x1xf32>
    %111 = vector.broadcast %110 : vector<8x1xf32> to vector<8x8xf32>
    %112 = arith.subf %108, %111 : vector<8x8xf32>
    %113 = math.exp %112 : vector<8x8xf32>
    %cst_73 = arith.constant dense<0.000000e+00> : vector<8xf32>
    %114 = vector.multi_reduction <add>, %113, %cst_73 [1] : vector<8x8xf32> to vector<8xf32>
    %115 = vector.shape_cast %114 : vector<8xf32> to vector<8x1xf32>
    %116 = tpu.reciprocal %115 {approx = true} : vector<8x1xf32> -> vector<8x1xf32>
    %117 = vector.broadcast %116 : vector<8x1xf32> to vector<8x8xf32>
    %118 = arith.mulf %113, %117 : vector<8x8xf32>
    %119 = arith.truncf %118 : vector<8x8xf32> to vector<8x8xbf16>
    %120 = arith.truncf %101 : vector<8x8xf32> to vector<8x8xbf16>
    %cst_74 = arith.constant dense<0.000000e+00> : vector<8x8xf32>
    %121 = tpu.matmul %119, %120, %cst_74 {dimension_numbers = #tpu.dot_dimension_numbers<[1], [0], [0], [1], [0, 0, 1, 1], [], []>} : vector<8x8xbf16>, vector<8x8xbf16>, vector<8x8xf32> -> vector<8x8xf32>
    %122 = arith.truncf %121 : vector<8x8xf32> to vector<8x8xbf16>
    %c1_75 = arith.constant 1 : index
    %c0_76 = arith.constant 0 : index
    %c0_77 = arith.constant 0 : index
    %123 = vector.load %arg14[%c1_75, %c0_76, %c0_77] : memref<4x8x32xbf16, #tpu.memory_space<vmem>>, vector<1x8x32xbf16>
    %124 = vector.shape_cast %123 : vector<1x8x32xbf16> to vector<8x32xbf16>
    %cst_78 = arith.constant dense<0.000000e+00> : vector<8x32xf32>
    %125 = tpu.matmul %122, %124, %cst_78 {dimension_numbers = #tpu.dot_dimension_numbers<[1], [0], [0], [1], [0, 0, 1, 1], [], []>} : vector<8x8xbf16>, vector<8x32xbf16>, vector<8x32xf32> -> vector<8x32xf32>
    %126 = arith.addf %80, %125 : vector<8x32xf32>
    %c2 = arith.constant 2 : index
    %c0_79 = arith.constant 0 : index
    %c0_80 = arith.constant 0 : index
    %127 = vector.load %arg8[%c2, %c0_79, %c0_80] : memref<4x32x8xbf16, #tpu.memory_space<vmem>>, vector<1x32x8xbf16>
    %128 = vector.shape_cast %127 : vector<1x32x8xbf16> to vector<32x8xbf16>
    %cst_81 = arith.constant dense<0.000000e+00> : vector<8x8xf32>
    %129 = tpu.matmul %32, %128, %cst_81 {dimension_numbers = #tpu.dot_dimension_numbers<[1], [0], [0], [1], [0, 0, 1, 1], [], []>} : vector<8x32xbf16>, vector<32x8xbf16>, vector<8x8xf32> -> vector<8x8xf32>
    %c2_82 = arith.constant 2 : index
    %c0_83 = arith.constant 0 : index
    %c0_84 = arith.constant 0 : index
    %130 = vector.load %arg9[%c2_82, %c0_83, %c0_84] : memref<4x1x8xf32, #tpu.memory_space<vmem>>, vector<1x1x8xf32>
    %131 = vector.shape_cast %130 : vector<1x1x8xf32> to vector<1x8xf32>
    %132 = vector.broadcast %131 : vector<1x8xf32> to vector<8x8xf32>
    %133 = arith.addf %129, %132 : vector<8x8xf32>
    %c2_85 = arith.constant 2 : index
    %c0_86 = arith.constant 0 : index
    %c0_87 = arith.constant 0 : index
    %134 = vector.load %arg10[%c2_85, %c0_86, %c0_87] : memref<4x32x8xbf16, #tpu.memory_space<vmem>>, vector<1x32x8xbf16>
    %135 = vector.shape_cast %134 : vector<1x32x8xbf16> to vector<32x8xbf16>
    %cst_88 = arith.constant dense<0.000000e+00> : vector<8x8xf32>
    %136 = tpu.matmul %33, %135, %cst_88 {dimension_numbers = #tpu.dot_dimension_numbers<[1], [0], [0], [1], [0, 0, 1, 1], [], []>} : vector<8x32xbf16>, vector<32x8xbf16>, vector<8x8xf32> -> vector<8x8xf32>
    %c2_89 = arith.constant 2 : index
    %c0_90 = arith.constant 0 : index
    %c0_91 = arith.constant 0 : index
    %137 = vector.load %arg11[%c2_89, %c0_90, %c0_91] : memref<4x1x8xf32, #tpu.memory_space<vmem>>, vector<1x1x8xf32>
    %138 = vector.shape_cast %137 : vector<1x1x8xf32> to vector<1x8xf32>
    %139 = vector.broadcast %138 : vector<1x8xf32> to vector<8x8xf32>
    %140 = arith.addf %136, %139 : vector<8x8xf32>
    %c2_92 = arith.constant 2 : index
    %c0_93 = arith.constant 0 : index
    %c0_94 = arith.constant 0 : index
    %141 = vector.load %arg12[%c2_92, %c0_93, %c0_94] : memref<4x32x8xbf16, #tpu.memory_space<vmem>>, vector<1x32x8xbf16>
    %142 = vector.shape_cast %141 : vector<1x32x8xbf16> to vector<32x8xbf16>
    %cst_95 = arith.constant dense<0.000000e+00> : vector<8x8xf32>
    %143 = tpu.matmul %33, %142, %cst_95 {dimension_numbers = #tpu.dot_dimension_numbers<[1], [0], [0], [1], [0, 0, 1, 1], [], []>} : vector<8x32xbf16>, vector<32x8xbf16>, vector<8x8xf32> -> vector<8x8xf32>
    %c2_96 = arith.constant 2 : index
    %c0_97 = arith.constant 0 : index
    %c0_98 = arith.constant 0 : index
    %144 = vector.load %arg13[%c2_96, %c0_97, %c0_98] : memref<4x1x8xf32, #tpu.memory_space<vmem>>, vector<1x1x8xf32>
    %145 = vector.shape_cast %144 : vector<1x1x8xf32> to vector<1x8xf32>
    %146 = vector.broadcast %145 : vector<1x8xf32> to vector<8x8xf32>
    %147 = arith.addf %143, %146 : vector<8x8xf32>
    %148 = arith.truncf %133 : vector<8x8xf32> to vector<8x8xbf16>
    %149 = arith.truncf %140 : vector<8x8xf32> to vector<8x8xbf16>
    %cst_99 = arith.constant dense<0.000000e+00> : vector<8x8xf32>
    %150 = tpu.matmul %148, %149, %cst_99 {dimension_numbers = #tpu.dot_dimension_numbers<[1], [1], [0], [0], [0, 0, 1, 0], [], []>} : vector<8x8xbf16>, vector<8x8xbf16>, vector<8x8xf32> -> vector<8x8xf32>
    %cst_100 = arith.constant 0.353553385 : f32
    %151 = vector.broadcast %cst_100 : f32 to vector<8x8xf32>
    %152 = arith.mulf %150, %151 : vector<8x8xf32>
    %153 = vector.broadcast %7 : vector<1x8xf32> to vector<8x8xf32>
    %154 = arith.addf %152, %153 : vector<8x8xf32>
    %cst_101 = arith.constant dense<0xFF800000> : vector<8xf32>
    %155 = vector.multi_reduction <maximumf>, %154, %cst_101 [1] : vector<8x8xf32> to vector<8xf32>
    %156 = vector.shape_cast %155 : vector<8xf32> to vector<8x1xf32>
    %157 = vector.broadcast %156 : vector<8x1xf32> to vector<8x8xf32>
    %158 = arith.subf %154, %157 : vector<8x8xf32>
    %159 = math.exp %158 : vector<8x8xf32>
    %cst_102 = arith.constant dense<0.000000e+00> : vector<8xf32>
    %160 = vector.multi_reduction <add>, %159, %cst_102 [1] : vector<8x8xf32> to vector<8xf32>
    %161 = vector.shape_cast %160 : vector<8xf32> to vector<8x1xf32>
    %162 = tpu.reciprocal %161 {approx = true} : vector<8x1xf32> -> vector<8x1xf32>
    %163 = vector.broadcast %162 : vector<8x1xf32> to vector<8x8xf32>
    %164 = arith.mulf %159, %163 : vector<8x8xf32>
    %165 = arith.truncf %164 : vector<8x8xf32> to vector<8x8xbf16>
    %166 = arith.truncf %147 : vector<8x8xf32> to vector<8x8xbf16>
    %cst_103 = arith.constant dense<0.000000e+00> : vector<8x8xf32>
    %167 = tpu.matmul %165, %166, %cst_103 {dimension_numbers = #tpu.dot_dimension_numbers<[1], [0], [0], [1], [0, 0, 1, 1], [], []>} : vector<8x8xbf16>, vector<8x8xbf16>, vector<8x8xf32> -> vector<8x8xf32>
    %168 = arith.truncf %167 : vector<8x8xf32> to vector<8x8xbf16>
    %c2_104 = arith.constant 2 : index
    %c0_105 = arith.constant 0 : index
    %c0_106 = arith.constant 0 : index
    %169 = vector.load %arg14[%c2_104, %c0_105, %c0_106] : memref<4x8x32xbf16, #tpu.memory_space<vmem>>, vector<1x8x32xbf16>
    %170 = vector.shape_cast %169 : vector<1x8x32xbf16> to vector<8x32xbf16>
    %cst_107 = arith.constant dense<0.000000e+00> : vector<8x32xf32>
    %171 = tpu.matmul %168, %170, %cst_107 {dimension_numbers = #tpu.dot_dimension_numbers<[1], [0], [0], [1], [0, 0, 1, 1], [], []>} : vector<8x8xbf16>, vector<8x32xbf16>, vector<8x32xf32> -> vector<8x32xf32>
    %172 = arith.addf %126, %171 : vector<8x32xf32>
    %c3 = arith.constant 3 : index
    %c0_108 = arith.constant 0 : index
    %c0_109 = arith.constant 0 : index
    %173 = vector.load %arg8[%c3, %c0_108, %c0_109] : memref<4x32x8xbf16, #tpu.memory_space<vmem>>, vector<1x32x8xbf16>
    %174 = vector.shape_cast %173 : vector<1x32x8xbf16> to vector<32x8xbf16>
    %cst_110 = arith.constant dense<0.000000e+00> : vector<8x8xf32>
    %175 = tpu.matmul %32, %174, %cst_110 {dimension_numbers = #tpu.dot_dimension_numbers<[1], [0], [0], [1], [0, 0, 1, 1], [], []>} : vector<8x32xbf16>, vector<32x8xbf16>, vector<8x8xf32> -> vector<8x8xf32>
    %c3_111 = arith.constant 3 : index
    %c0_112 = arith.constant 0 : index
    %c0_113 = arith.constant 0 : index
    %176 = vector.load %arg9[%c3_111, %c0_112, %c0_113] : memref<4x1x8xf32, #tpu.memory_space<vmem>>, vector<1x1x8xf32>
    %177 = vector.shape_cast %176 : vector<1x1x8xf32> to vector<1x8xf32>
    %178 = vector.broadcast %177 : vector<1x8xf32> to vector<8x8xf32>
    %179 = arith.addf %175, %178 : vector<8x8xf32>
    %c3_114 = arith.constant 3 : index
    %c0_115 = arith.constant 0 : index
    %c0_116 = arith.constant 0 : index
    %180 = vector.load %arg10[%c3_114, %c0_115, %c0_116] : memref<4x32x8xbf16, #tpu.memory_space<vmem>>, vector<1x32x8xbf16>
    %181 = vector.shape_cast %180 : vector<1x32x8xbf16> to vector<32x8xbf16>
    %cst_117 = arith.constant dense<0.000000e+00> : vector<8x8xf32>
    %182 = tpu.matmul %33, %181, %cst_117 {dimension_numbers = #tpu.dot_dimension_numbers<[1], [0], [0], [1], [0, 0, 1, 1], [], []>} : vector<8x32xbf16>, vector<32x8xbf16>, vector<8x8xf32> -> vector<8x8xf32>
    %c3_118 = arith.constant 3 : index
    %c0_119 = arith.constant 0 : index
    %c0_120 = arith.constant 0 : index
    %183 = vector.load %arg11[%c3_118, %c0_119, %c0_120] : memref<4x1x8xf32, #tpu.memory_space<vmem>>, vector<1x1x8xf32>
    %184 = vector.shape_cast %183 : vector<1x1x8xf32> to vector<1x8xf32>
    %185 = vector.broadcast %184 : vector<1x8xf32> to vector<8x8xf32>
    %186 = arith.addf %182, %185 : vector<8x8xf32>
    %c3_121 = arith.constant 3 : index
    %c0_122 = arith.constant 0 : index
    %c0_123 = arith.constant 0 : index
    %187 = vector.load %arg12[%c3_121, %c0_122, %c0_123] : memref<4x32x8xbf16, #tpu.memory_space<vmem>>, vector<1x32x8xbf16>
    %188 = vector.shape_cast %187 : vector<1x32x8xbf16> to vector<32x8xbf16>
    %cst_124 = arith.constant dense<0.000000e+00> : vector<8x8xf32>
    %189 = tpu.matmul %33, %188, %cst_124 {dimension_numbers = #tpu.dot_dimension_numbers<[1], [0], [0], [1], [0, 0, 1, 1], [], []>} : vector<8x32xbf16>, vector<32x8xbf16>, vector<8x8xf32> -> vector<8x8xf32>
    %c3_125 = arith.constant 3 : index
    %c0_126 = arith.constant 0 : index
    %c0_127 = arith.constant 0 : index
    %190 = vector.load %arg13[%c3_125, %c0_126, %c0_127] : memref<4x1x8xf32, #tpu.memory_space<vmem>>, vector<1x1x8xf32>
    %191 = vector.shape_cast %190 : vector<1x1x8xf32> to vector<1x8xf32>
    %192 = vector.broadcast %191 : vector<1x8xf32> to vector<8x8xf32>
    %193 = arith.addf %189, %192 : vector<8x8xf32>
    %194 = arith.truncf %179 : vector<8x8xf32> to vector<8x8xbf16>
    %195 = arith.truncf %186 : vector<8x8xf32> to vector<8x8xbf16>
    %cst_128 = arith.constant dense<0.000000e+00> : vector<8x8xf32>
    %196 = tpu.matmul %194, %195, %cst_128 {dimension_numbers = #tpu.dot_dimension_numbers<[1], [1], [0], [0], [0, 0, 1, 0], [], []>} : vector<8x8xbf16>, vector<8x8xbf16>, vector<8x8xf32> -> vector<8x8xf32>
    %cst_129 = arith.constant 0.353553385 : f32
    %197 = vector.broadcast %cst_129 : f32 to vector<8x8xf32>
    %198 = arith.mulf %196, %197 : vector<8x8xf32>
    %199 = vector.broadcast %7 : vector<1x8xf32> to vector<8x8xf32>
    %200 = arith.addf %198, %199 : vector<8x8xf32>
    %cst_130 = arith.constant dense<0xFF800000> : vector<8xf32>
    %201 = vector.multi_reduction <maximumf>, %200, %cst_130 [1] : vector<8x8xf32> to vector<8xf32>
    %202 = vector.shape_cast %201 : vector<8xf32> to vector<8x1xf32>
    %203 = vector.broadcast %202 : vector<8x1xf32> to vector<8x8xf32>
    %204 = arith.subf %200, %203 : vector<8x8xf32>
    %205 = math.exp %204 : vector<8x8xf32>
    %cst_131 = arith.constant dense<0.000000e+00> : vector<8xf32>
    %206 = vector.multi_reduction <add>, %205, %cst_131 [1] : vector<8x8xf32> to vector<8xf32>
    %207 = vector.shape_cast %206 : vector<8xf32> to vector<8x1xf32>
    %208 = tpu.reciprocal %207 {approx = true} : vector<8x1xf32> -> vector<8x1xf32>
    %209 = vector.broadcast %208 : vector<8x1xf32> to vector<8x8xf32>
    %210 = arith.mulf %205, %209 : vector<8x8xf32>
    %211 = arith.truncf %210 : vector<8x8xf32> to vector<8x8xbf16>
    %212 = arith.truncf %193 : vector<8x8xf32> to vector<8x8xbf16>
    %cst_132 = arith.constant dense<0.000000e+00> : vector<8x8xf32>
    %213 = tpu.matmul %211, %212, %cst_132 {dimension_numbers = #tpu.dot_dimension_numbers<[1], [0], [0], [1], [0, 0, 1, 1], [], []>} : vector<8x8xbf16>, vector<8x8xbf16>, vector<8x8xf32> -> vector<8x8xf32>
    %214 = arith.truncf %213 : vector<8x8xf32> to vector<8x8xbf16>
    %c3_133 = arith.constant 3 : index
    %c0_134 = arith.constant 0 : index
    %c0_135 = arith.constant 0 : index
    %215 = vector.load %arg14[%c3_133, %c0_134, %c0_135] : memref<4x8x32xbf16, #tpu.memory_space<vmem>>, vector<1x8x32xbf16>
    %216 = vector.shape_cast %215 : vector<1x8x32xbf16> to vector<8x32xbf16>
    %cst_136 = arith.constant dense<0.000000e+00> : vector<8x32xf32>
    %217 = tpu.matmul %214, %216, %cst_136 {dimension_numbers = #tpu.dot_dimension_numbers<[1], [0], [0], [1], [0, 0, 1, 1], [], []>} : vector<8x8xbf16>, vector<8x32xbf16>, vector<8x32xf32> -> vector<8x32xf32>
    %218 = arith.addf %172, %217 : vector<8x32xf32>
    %c0_137 = arith.constant 0 : index
    %c0_138 = arith.constant 0 : index
    %219 = vector.load %arg15[%c0_137, %c0_138] : memref<1x32xf32, #tpu.memory_space<vmem>>, vector<1x32xf32>
    %220 = vector.broadcast %219 : vector<1x32xf32> to vector<8x32xf32>
    %221 = arith.addf %218, %220 : vector<8x32xf32>
    %c0_139 = arith.constant 0 : index
    %c0_140 = arith.constant 0 : index
    %222 = vector.load %arg16[%c0_139, %c0_140] : memref<1x32xf32, #tpu.memory_space<vmem>>, vector<1x32xf32>
    %223 = vector.broadcast %222 : vector<1x32xf32> to vector<8x32xf32>
    %224 = arith.mulf %25, %223 : vector<8x32xf32>
    %c0_141 = arith.constant 0 : index
    %c0_142 = arith.constant 0 : index
    %225 = vector.load %arg17[%c0_141, %c0_142] : memref<1x32xf32, #tpu.memory_space<vmem>>, vector<1x32xf32>
    %226 = vector.broadcast %225 : vector<1x32xf32> to vector<8x32xf32>
    %227 = arith.addf %224, %226 : vector<8x32xf32>
    %228 = arith.truncf %227 : vector<8x32xf32> to vector<8x32xbf16>
    %229 = arith.truncf %3 : vector<8x32xf32> to vector<8x32xbf16>
    %cst_143 = arith.constant 0.000000e+00 : f32
    %230 = vector.broadcast %cst_143 : f32 to vector<8x32xf32>
    %c0_144 = arith.constant 0 : index
    %c0_145 = arith.constant 0 : index
    %c0_146 = arith.constant 0 : index
    %231 = vector.load %arg18[%c0_144, %c0_145, %c0_146] : memref<4x32x8xbf16, #tpu.memory_space<vmem>>, vector<1x32x8xbf16>
    %232 = vector.shape_cast %231 : vector<1x32x8xbf16> to vector<32x8xbf16>
    %cst_147 = arith.constant dense<0.000000e+00> : vector<8x8xf32>
    %233 = tpu.matmul %228, %232, %cst_147 {dimension_numbers = #tpu.dot_dimension_numbers<[1], [0], [0], [1], [0, 0, 1, 1], [], []>} : vector<8x32xbf16>, vector<32x8xbf16>, vector<8x8xf32> -> vector<8x8xf32>
    %c0_148 = arith.constant 0 : index
    %c0_149 = arith.constant 0 : index
    %c0_150 = arith.constant 0 : index
    %234 = vector.load %arg19[%c0_148, %c0_149, %c0_150] : memref<4x1x8xf32, #tpu.memory_space<vmem>>, vector<1x1x8xf32>
    %235 = vector.shape_cast %234 : vector<1x1x8xf32> to vector<1x8xf32>
    %236 = vector.broadcast %235 : vector<1x8xf32> to vector<8x8xf32>
    %237 = arith.addf %233, %236 : vector<8x8xf32>
    %c0_151 = arith.constant 0 : index
    %c0_152 = arith.constant 0 : index
    %c0_153 = arith.constant 0 : index
    %238 = vector.load %arg20[%c0_151, %c0_152, %c0_153] : memref<4x32x8xbf16, #tpu.memory_space<vmem>>, vector<1x32x8xbf16>
    %239 = vector.shape_cast %238 : vector<1x32x8xbf16> to vector<32x8xbf16>
    %cst_154 = arith.constant dense<0.000000e+00> : vector<8x8xf32>
    %240 = tpu.matmul %229, %239, %cst_154 {dimension_numbers = #tpu.dot_dimension_numbers<[1], [0], [0], [1], [0, 0, 1, 1], [], []>} : vector<8x32xbf16>, vector<32x8xbf16>, vector<8x8xf32> -> vector<8x8xf32>
    %c0_155 = arith.constant 0 : index
    %c0_156 = arith.constant 0 : index
    %c0_157 = arith.constant 0 : index
    %241 = vector.load %arg21[%c0_155, %c0_156, %c0_157] : memref<4x1x8xf32, #tpu.memory_space<vmem>>, vector<1x1x8xf32>
    %242 = vector.shape_cast %241 : vector<1x1x8xf32> to vector<1x8xf32>
    %243 = vector.broadcast %242 : vector<1x8xf32> to vector<8x8xf32>
    %244 = arith.addf %240, %243 : vector<8x8xf32>
    %c0_158 = arith.constant 0 : index
    %c0_159 = arith.constant 0 : index
    %c0_160 = arith.constant 0 : index
    %245 = vector.load %arg22[%c0_158, %c0_159, %c0_160] : memref<4x32x8xbf16, #tpu.memory_space<vmem>>, vector<1x32x8xbf16>
    %246 = vector.shape_cast %245 : vector<1x32x8xbf16> to vector<32x8xbf16>
    %cst_161 = arith.constant dense<0.000000e+00> : vector<8x8xf32>
    %247 = tpu.matmul %229, %246, %cst_161 {dimension_numbers = #tpu.dot_dimension_numbers<[1], [0], [0], [1], [0, 0, 1, 1], [], []>} : vector<8x32xbf16>, vector<32x8xbf16>, vector<8x8xf32> -> vector<8x8xf32>
    %c0_162 = arith.constant 0 : index
    %c0_163 = arith.constant 0 : index
    %c0_164 = arith.constant 0 : index
    %248 = vector.load %arg23[%c0_162, %c0_163, %c0_164] : memref<4x1x8xf32, #tpu.memory_space<vmem>>, vector<1x1x8xf32>
    %249 = vector.shape_cast %248 : vector<1x1x8xf32> to vector<1x8xf32>
    %250 = vector.broadcast %249 : vector<1x8xf32> to vector<8x8xf32>
    %251 = arith.addf %247, %250 : vector<8x8xf32>
    %252 = arith.truncf %237 : vector<8x8xf32> to vector<8x8xbf16>
    %253 = arith.truncf %244 : vector<8x8xf32> to vector<8x8xbf16>
    %cst_165 = arith.constant dense<0.000000e+00> : vector<8x8xf32>
    %254 = tpu.matmul %252, %253, %cst_165 {dimension_numbers = #tpu.dot_dimension_numbers<[1], [1], [0], [0], [0, 0, 1, 0], [], []>} : vector<8x8xbf16>, vector<8x8xbf16>, vector<8x8xf32> -> vector<8x8xf32>
    %cst_166 = arith.constant 0.353553385 : f32
    %255 = vector.broadcast %cst_166 : f32 to vector<8x8xf32>
    %256 = arith.mulf %254, %255 : vector<8x8xf32>
    %257 = vector.broadcast %7 : vector<1x8xf32> to vector<8x8xf32>
    %258 = arith.addf %256, %257 : vector<8x8xf32>
    %cst_167 = arith.constant dense<0xFF800000> : vector<8xf32>
    %259 = vector.multi_reduction <maximumf>, %258, %cst_167 [1] : vector<8x8xf32> to vector<8xf32>
    %260 = vector.shape_cast %259 : vector<8xf32> to vector<8x1xf32>
    %261 = vector.broadcast %260 : vector<8x1xf32> to vector<8x8xf32>
    %262 = arith.subf %258, %261 : vector<8x8xf32>
    %263 = math.exp %262 : vector<8x8xf32>
    %cst_168 = arith.constant dense<0.000000e+00> : vector<8xf32>
    %264 = vector.multi_reduction <add>, %263, %cst_168 [1] : vector<8x8xf32> to vector<8xf32>
    %265 = vector.shape_cast %264 : vector<8xf32> to vector<8x1xf32>
    %266 = tpu.reciprocal %265 {approx = true} : vector<8x1xf32> -> vector<8x1xf32>
    %267 = vector.broadcast %266 : vector<8x1xf32> to vector<8x8xf32>
    %268 = arith.mulf %263, %267 : vector<8x8xf32>
    %269 = arith.truncf %268 : vector<8x8xf32> to vector<8x8xbf16>
    %270 = arith.truncf %251 : vector<8x8xf32> to vector<8x8xbf16>
    %cst_169 = arith.constant dense<0.000000e+00> : vector<8x8xf32>
    %271 = tpu.matmul %269, %270, %cst_169 {dimension_numbers = #tpu.dot_dimension_numbers<[1], [0], [0], [1], [0, 0, 1, 1], [], []>} : vector<8x8xbf16>, vector<8x8xbf16>, vector<8x8xf32> -> vector<8x8xf32>
    %272 = arith.truncf %271 : vector<8x8xf32> to vector<8x8xbf16>
    %c0_170 = arith.constant 0 : index
    %c0_171 = arith.constant 0 : index
    %c0_172 = arith.constant 0 : index
    %273 = vector.load %arg24[%c0_170, %c0_171, %c0_172] : memref<4x8x32xbf16, #tpu.memory_space<vmem>>, vector<1x8x32xbf16>
    %274 = vector.shape_cast %273 : vector<1x8x32xbf16> to vector<8x32xbf16>
    %cst_173 = arith.constant dense<0.000000e+00> : vector<8x32xf32>
    %275 = tpu.matmul %272, %274, %cst_173 {dimension_numbers = #tpu.dot_dimension_numbers<[1], [0], [0], [1], [0, 0, 1, 1], [], []>} : vector<8x8xbf16>, vector<8x32xbf16>, vector<8x32xf32> -> vector<8x32xf32>
    %276 = arith.addf %230, %275 : vector<8x32xf32>
    %c1_174 = arith.constant 1 : index
    %c0_175 = arith.constant 0 : index
    %c0_176 = arith.constant 0 : index
    %277 = vector.load %arg18[%c1_174, %c0_175, %c0_176] : memref<4x32x8xbf16, #tpu.memory_space<vmem>>, vector<1x32x8xbf16>
    %278 = vector.shape_cast %277 : vector<1x32x8xbf16> to vector<32x8xbf16>
    %cst_177 = arith.constant dense<0.000000e+00> : vector<8x8xf32>
    %279 = tpu.matmul %228, %278, %cst_177 {dimension_numbers = #tpu.dot_dimension_numbers<[1], [0], [0], [1], [0, 0, 1, 1], [], []>} : vector<8x32xbf16>, vector<32x8xbf16>, vector<8x8xf32> -> vector<8x8xf32>
    %c1_178 = arith.constant 1 : index
    %c0_179 = arith.constant 0 : index
    %c0_180 = arith.constant 0 : index
    %280 = vector.load %arg19[%c1_178, %c0_179, %c0_180] : memref<4x1x8xf32, #tpu.memory_space<vmem>>, vector<1x1x8xf32>
    %281 = vector.shape_cast %280 : vector<1x1x8xf32> to vector<1x8xf32>
    %282 = vector.broadcast %281 : vector<1x8xf32> to vector<8x8xf32>
    %283 = arith.addf %279, %282 : vector<8x8xf32>
    %c1_181 = arith.constant 1 : index
    %c0_182 = arith.constant 0 : index
    %c0_183 = arith.constant 0 : index
    %284 = vector.load %arg20[%c1_181, %c0_182, %c0_183] : memref<4x32x8xbf16, #tpu.memory_space<vmem>>, vector<1x32x8xbf16>
    %285 = vector.shape_cast %284 : vector<1x32x8xbf16> to vector<32x8xbf16>
    %cst_184 = arith.constant dense<0.000000e+00> : vector<8x8xf32>
    %286 = tpu.matmul %229, %285, %cst_184 {dimension_numbers = #tpu.dot_dimension_numbers<[1], [0], [0], [1], [0, 0, 1, 1], [], []>} : vector<8x32xbf16>, vector<32x8xbf16>, vector<8x8xf32> -> vector<8x8xf32>
    %c1_185 = arith.constant 1 : index
    %c0_186 = arith.constant 0 : index
    %c0_187 = arith.constant 0 : index
    %287 = vector.load %arg21[%c1_185, %c0_186, %c0_187] : memref<4x1x8xf32, #tpu.memory_space<vmem>>, vector<1x1x8xf32>
    %288 = vector.shape_cast %287 : vector<1x1x8xf32> to vector<1x8xf32>
    %289 = vector.broadcast %288 : vector<1x8xf32> to vector<8x8xf32>
    %290 = arith.addf %286, %289 : vector<8x8xf32>
    %c1_188 = arith.constant 1 : index
    %c0_189 = arith.constant 0 : index
    %c0_190 = arith.constant 0 : index
    %291 = vector.load %arg22[%c1_188, %c0_189, %c0_190] : memref<4x32x8xbf16, #tpu.memory_space<vmem>>, vector<1x32x8xbf16>
    %292 = vector.shape_cast %291 : vector<1x32x8xbf16> to vector<32x8xbf16>
    %cst_191 = arith.constant dense<0.000000e+00> : vector<8x8xf32>
    %293 = tpu.matmul %229, %292, %cst_191 {dimension_numbers = #tpu.dot_dimension_numbers<[1], [0], [0], [1], [0, 0, 1, 1], [], []>} : vector<8x32xbf16>, vector<32x8xbf16>, vector<8x8xf32> -> vector<8x8xf32>
    %c1_192 = arith.constant 1 : index
    %c0_193 = arith.constant 0 : index
    %c0_194 = arith.constant 0 : index
    %294 = vector.load %arg23[%c1_192, %c0_193, %c0_194] : memref<4x1x8xf32, #tpu.memory_space<vmem>>, vector<1x1x8xf32>
    %295 = vector.shape_cast %294 : vector<1x1x8xf32> to vector<1x8xf32>
    %296 = vector.broadcast %295 : vector<1x8xf32> to vector<8x8xf32>
    %297 = arith.addf %293, %296 : vector<8x8xf32>
    %298 = arith.truncf %283 : vector<8x8xf32> to vector<8x8xbf16>
    %299 = arith.truncf %290 : vector<8x8xf32> to vector<8x8xbf16>
    %cst_195 = arith.constant dense<0.000000e+00> : vector<8x8xf32>
    %300 = tpu.matmul %298, %299, %cst_195 {dimension_numbers = #tpu.dot_dimension_numbers<[1], [1], [0], [0], [0, 0, 1, 0], [], []>} : vector<8x8xbf16>, vector<8x8xbf16>, vector<8x8xf32> -> vector<8x8xf32>
    %cst_196 = arith.constant 0.353553385 : f32
    %301 = vector.broadcast %cst_196 : f32 to vector<8x8xf32>
    %302 = arith.mulf %300, %301 : vector<8x8xf32>
    %303 = vector.broadcast %7 : vector<1x8xf32> to vector<8x8xf32>
    %304 = arith.addf %302, %303 : vector<8x8xf32>
    %cst_197 = arith.constant dense<0xFF800000> : vector<8xf32>
    %305 = vector.multi_reduction <maximumf>, %304, %cst_197 [1] : vector<8x8xf32> to vector<8xf32>
    %306 = vector.shape_cast %305 : vector<8xf32> to vector<8x1xf32>
    %307 = vector.broadcast %306 : vector<8x1xf32> to vector<8x8xf32>
    %308 = arith.subf %304, %307 : vector<8x8xf32>
    %309 = math.exp %308 : vector<8x8xf32>
    %cst_198 = arith.constant dense<0.000000e+00> : vector<8xf32>
    %310 = vector.multi_reduction <add>, %309, %cst_198 [1] : vector<8x8xf32> to vector<8xf32>
    %311 = vector.shape_cast %310 : vector<8xf32> to vector<8x1xf32>
    %312 = tpu.reciprocal %311 {approx = true} : vector<8x1xf32> -> vector<8x1xf32>
    %313 = vector.broadcast %312 : vector<8x1xf32> to vector<8x8xf32>
    %314 = arith.mulf %309, %313 : vector<8x8xf32>
    %315 = arith.truncf %314 : vector<8x8xf32> to vector<8x8xbf16>
    %316 = arith.truncf %297 : vector<8x8xf32> to vector<8x8xbf16>
    %cst_199 = arith.constant dense<0.000000e+00> : vector<8x8xf32>
    %317 = tpu.matmul %315, %316, %cst_199 {dimension_numbers = #tpu.dot_dimension_numbers<[1], [0], [0], [1], [0, 0, 1, 1], [], []>} : vector<8x8xbf16>, vector<8x8xbf16>, vector<8x8xf32> -> vector<8x8xf32>
    %318 = arith.truncf %317 : vector<8x8xf32> to vector<8x8xbf16>
    %c1_200 = arith.constant 1 : index
    %c0_201 = arith.constant 0 : index
    %c0_202 = arith.constant 0 : index
    %319 = vector.load %arg24[%c1_200, %c0_201, %c0_202] : memref<4x8x32xbf16, #tpu.memory_space<vmem>>, vector<1x8x32xbf16>
    %320 = vector.shape_cast %319 : vector<1x8x32xbf16> to vector<8x32xbf16>
    %cst_203 = arith.constant dense<0.000000e+00> : vector<8x32xf32>
    %321 = tpu.matmul %318, %320, %cst_203 {dimension_numbers = #tpu.dot_dimension_numbers<[1], [0], [0], [1], [0, 0, 1, 1], [], []>} : vector<8x8xbf16>, vector<8x32xbf16>, vector<8x32xf32> -> vector<8x32xf32>
    %322 = arith.addf %276, %321 : vector<8x32xf32>
    %c2_204 = arith.constant 2 : index
    %c0_205 = arith.constant 0 : index
    %c0_206 = arith.constant 0 : index
    %323 = vector.load %arg18[%c2_204, %c0_205, %c0_206] : memref<4x32x8xbf16, #tpu.memory_space<vmem>>, vector<1x32x8xbf16>
    %324 = vector.shape_cast %323 : vector<1x32x8xbf16> to vector<32x8xbf16>
    %cst_207 = arith.constant dense<0.000000e+00> : vector<8x8xf32>
    %325 = tpu.matmul %228, %324, %cst_207 {dimension_numbers = #tpu.dot_dimension_numbers<[1], [0], [0], [1], [0, 0, 1, 1], [], []>} : vector<8x32xbf16>, vector<32x8xbf16>, vector<8x8xf32> -> vector<8x8xf32>
    %c2_208 = arith.constant 2 : index
    %c0_209 = arith.constant 0 : index
    %c0_210 = arith.constant 0 : index
    %326 = vector.load %arg19[%c2_208, %c0_209, %c0_210] : memref<4x1x8xf32, #tpu.memory_space<vmem>>, vector<1x1x8xf32>
    %327 = vector.shape_cast %326 : vector<1x1x8xf32> to vector<1x8xf32>
    %328 = vector.broadcast %327 : vector<1x8xf32> to vector<8x8xf32>
    %329 = arith.addf %325, %328 : vector<8x8xf32>
    %c2_211 = arith.constant 2 : index
    %c0_212 = arith.constant 0 : index
    %c0_213 = arith.constant 0 : index
    %330 = vector.load %arg20[%c2_211, %c0_212, %c0_213] : memref<4x32x8xbf16, #tpu.memory_space<vmem>>, vector<1x32x8xbf16>
    %331 = vector.shape_cast %330 : vector<1x32x8xbf16> to vector<32x8xbf16>
    %cst_214 = arith.constant dense<0.000000e+00> : vector<8x8xf32>
    %332 = tpu.matmul %229, %331, %cst_214 {dimension_numbers = #tpu.dot_dimension_numbers<[1], [0], [0], [1], [0, 0, 1, 1], [], []>} : vector<8x32xbf16>, vector<32x8xbf16>, vector<8x8xf32> -> vector<8x8xf32>
    %c2_215 = arith.constant 2 : index
    %c0_216 = arith.constant 0 : index
    %c0_217 = arith.constant 0 : index
    %333 = vector.load %arg21[%c2_215, %c0_216, %c0_217] : memref<4x1x8xf32, #tpu.memory_space<vmem>>, vector<1x1x8xf32>
    %334 = vector.shape_cast %333 : vector<1x1x8xf32> to vector<1x8xf32>
    %335 = vector.broadcast %334 : vector<1x8xf32> to vector<8x8xf32>
    %336 = arith.addf %332, %335 : vector<8x8xf32>
    %c2_218 = arith.constant 2 : index
    %c0_219 = arith.constant 0 : index
    %c0_220 = arith.constant 0 : index
    %337 = vector.load %arg22[%c2_218, %c0_219, %c0_220] : memref<4x32x8xbf16, #tpu.memory_space<vmem>>, vector<1x32x8xbf16>
    %338 = vector.shape_cast %337 : vector<1x32x8xbf16> to vector<32x8xbf16>
    %cst_221 = arith.constant dense<0.000000e+00> : vector<8x8xf32>
    %339 = tpu.matmul %229, %338, %cst_221 {dimension_numbers = #tpu.dot_dimension_numbers<[1], [0], [0], [1], [0, 0, 1, 1], [], []>} : vector<8x32xbf16>, vector<32x8xbf16>, vector<8x8xf32> -> vector<8x8xf32>
    %c2_222 = arith.constant 2 : index
    %c0_223 = arith.constant 0 : index
    %c0_224 = arith.constant 0 : index
    %340 = vector.load %arg23[%c2_222, %c0_223, %c0_224] : memref<4x1x8xf32, #tpu.memory_space<vmem>>, vector<1x1x8xf32>
    %341 = vector.shape_cast %340 : vector<1x1x8xf32> to vector<1x8xf32>
    %342 = vector.broadcast %341 : vector<1x8xf32> to vector<8x8xf32>
    %343 = arith.addf %339, %342 : vector<8x8xf32>
    %344 = arith.truncf %329 : vector<8x8xf32> to vector<8x8xbf16>
    %345 = arith.truncf %336 : vector<8x8xf32> to vector<8x8xbf16>
    %cst_225 = arith.constant dense<0.000000e+00> : vector<8x8xf32>
    %346 = tpu.matmul %344, %345, %cst_225 {dimension_numbers = #tpu.dot_dimension_numbers<[1], [1], [0], [0], [0, 0, 1, 0], [], []>} : vector<8x8xbf16>, vector<8x8xbf16>, vector<8x8xf32> -> vector<8x8xf32>
    %cst_226 = arith.constant 0.353553385 : f32
    %347 = vector.broadcast %cst_226 : f32 to vector<8x8xf32>
    %348 = arith.mulf %346, %347 : vector<8x8xf32>
    %349 = vector.broadcast %7 : vector<1x8xf32> to vector<8x8xf32>
    %350 = arith.addf %348, %349 : vector<8x8xf32>
    %cst_227 = arith.constant dense<0xFF800000> : vector<8xf32>
    %351 = vector.multi_reduction <maximumf>, %350, %cst_227 [1] : vector<8x8xf32> to vector<8xf32>
    %352 = vector.shape_cast %351 : vector<8xf32> to vector<8x1xf32>
    %353 = vector.broadcast %352 : vector<8x1xf32> to vector<8x8xf32>
    %354 = arith.subf %350, %353 : vector<8x8xf32>
    %355 = math.exp %354 : vector<8x8xf32>
    %cst_228 = arith.constant dense<0.000000e+00> : vector<8xf32>
    %356 = vector.multi_reduction <add>, %355, %cst_228 [1] : vector<8x8xf32> to vector<8xf32>
    %357 = vector.shape_cast %356 : vector<8xf32> to vector<8x1xf32>
    %358 = tpu.reciprocal %357 {approx = true} : vector<8x1xf32> -> vector<8x1xf32>
    %359 = vector.broadcast %358 : vector<8x1xf32> to vector<8x8xf32>
    %360 = arith.mulf %355, %359 : vector<8x8xf32>
    %361 = arith.truncf %360 : vector<8x8xf32> to vector<8x8xbf16>
    %362 = arith.truncf %343 : vector<8x8xf32> to vector<8x8xbf16>
    %cst_229 = arith.constant dense<0.000000e+00> : vector<8x8xf32>
    %363 = tpu.matmul %361, %362, %cst_229 {dimension_numbers = #tpu.dot_dimension_numbers<[1], [0], [0], [1], [0, 0, 1, 1], [], []>} : vector<8x8xbf16>, vector<8x8xbf16>, vector<8x8xf32> -> vector<8x8xf32>
    %364 = arith.truncf %363 : vector<8x8xf32> to vector<8x8xbf16>
    %c2_230 = arith.constant 2 : index
    %c0_231 = arith.constant 0 : index
    %c0_232 = arith.constant 0 : index
    %365 = vector.load %arg24[%c2_230, %c0_231, %c0_232] : memref<4x8x32xbf16, #tpu.memory_space<vmem>>, vector<1x8x32xbf16>
    %366 = vector.shape_cast %365 : vector<1x8x32xbf16> to vector<8x32xbf16>
    %cst_233 = arith.constant dense<0.000000e+00> : vector<8x32xf32>
    %367 = tpu.matmul %364, %366, %cst_233 {dimension_numbers = #tpu.dot_dimension_numbers<[1], [0], [0], [1], [0, 0, 1, 1], [], []>} : vector<8x8xbf16>, vector<8x32xbf16>, vector<8x32xf32> -> vector<8x32xf32>
    %368 = arith.addf %322, %367 : vector<8x32xf32>
    %c3_234 = arith.constant 3 : index
    %c0_235 = arith.constant 0 : index
    %c0_236 = arith.constant 0 : index
    %369 = vector.load %arg18[%c3_234, %c0_235, %c0_236] : memref<4x32x8xbf16, #tpu.memory_space<vmem>>, vector<1x32x8xbf16>
    %370 = vector.shape_cast %369 : vector<1x32x8xbf16> to vector<32x8xbf16>
    %cst_237 = arith.constant dense<0.000000e+00> : vector<8x8xf32>
    %371 = tpu.matmul %228, %370, %cst_237 {dimension_numbers = #tpu.dot_dimension_numbers<[1], [0], [0], [1], [0, 0, 1, 1], [], []>} : vector<8x32xbf16>, vector<32x8xbf16>, vector<8x8xf32> -> vector<8x8xf32>
    %c3_238 = arith.constant 3 : index
    %c0_239 = arith.constant 0 : index
    %c0_240 = arith.constant 0 : index
    %372 = vector.load %arg19[%c3_238, %c0_239, %c0_240] : memref<4x1x8xf32, #tpu.memory_space<vmem>>, vector<1x1x8xf32>
    %373 = vector.shape_cast %372 : vector<1x1x8xf32> to vector<1x8xf32>
    %374 = vector.broadcast %373 : vector<1x8xf32> to vector<8x8xf32>
    %375 = arith.addf %371, %374 : vector<8x8xf32>
    %c3_241 = arith.constant 3 : index
    %c0_242 = arith.constant 0 : index
    %c0_243 = arith.constant 0 : index
    %376 = vector.load %arg20[%c3_241, %c0_242, %c0_243] : memref<4x32x8xbf16, #tpu.memory_space<vmem>>, vector<1x32x8xbf16>
    %377 = vector.shape_cast %376 : vector<1x32x8xbf16> to vector<32x8xbf16>
    %cst_244 = arith.constant dense<0.000000e+00> : vector<8x8xf32>
    %378 = tpu.matmul %229, %377, %cst_244 {dimension_numbers = #tpu.dot_dimension_numbers<[1], [0], [0], [1], [0, 0, 1, 1], [], []>} : vector<8x32xbf16>, vector<32x8xbf16>, vector<8x8xf32> -> vector<8x8xf32>
    %c3_245 = arith.constant 3 : index
    %c0_246 = arith.constant 0 : index
    %c0_247 = arith.constant 0 : index
    %379 = vector.load %arg21[%c3_245, %c0_246, %c0_247] : memref<4x1x8xf32, #tpu.memory_space<vmem>>, vector<1x1x8xf32>
    %380 = vector.shape_cast %379 : vector<1x1x8xf32> to vector<1x8xf32>
    %381 = vector.broadcast %380 : vector<1x8xf32> to vector<8x8xf32>
    %382 = arith.addf %378, %381 : vector<8x8xf32>
    %c3_248 = arith.constant 3 : index
    %c0_249 = arith.constant 0 : index
    %c0_250 = arith.constant 0 : index
    %383 = vector.load %arg22[%c3_248, %c0_249, %c0_250] : memref<4x32x8xbf16, #tpu.memory_space<vmem>>, vector<1x32x8xbf16>
    %384 = vector.shape_cast %383 : vector<1x32x8xbf16> to vector<32x8xbf16>
    %cst_251 = arith.constant dense<0.000000e+00> : vector<8x8xf32>
    %385 = tpu.matmul %229, %384, %cst_251 {dimension_numbers = #tpu.dot_dimension_numbers<[1], [0], [0], [1], [0, 0, 1, 1], [], []>} : vector<8x32xbf16>, vector<32x8xbf16>, vector<8x8xf32> -> vector<8x8xf32>
    %c3_252 = arith.constant 3 : index
    %c0_253 = arith.constant 0 : index
    %c0_254 = arith.constant 0 : index
    %386 = vector.load %arg23[%c3_252, %c0_253, %c0_254] : memref<4x1x8xf32, #tpu.memory_space<vmem>>, vector<1x1x8xf32>
    %387 = vector.shape_cast %386 : vector<1x1x8xf32> to vector<1x8xf32>
    %388 = vector.broadcast %387 : vector<1x8xf32> to vector<8x8xf32>
    %389 = arith.addf %385, %388 : vector<8x8xf32>
    %390 = arith.truncf %375 : vector<8x8xf32> to vector<8x8xbf16>
    %391 = arith.truncf %382 : vector<8x8xf32> to vector<8x8xbf16>
    %cst_255 = arith.constant dense<0.000000e+00> : vector<8x8xf32>
    %392 = tpu.matmul %390, %391, %cst_255 {dimension_numbers = #tpu.dot_dimension_numbers<[1], [1], [0], [0], [0, 0, 1, 0], [], []>} : vector<8x8xbf16>, vector<8x8xbf16>, vector<8x8xf32> -> vector<8x8xf32>
    %cst_256 = arith.constant 0.353553385 : f32
    %393 = vector.broadcast %cst_256 : f32 to vector<8x8xf32>
    %394 = arith.mulf %392, %393 : vector<8x8xf32>
    %395 = vector.broadcast %7 : vector<1x8xf32> to vector<8x8xf32>
    %396 = arith.addf %394, %395 : vector<8x8xf32>
    %cst_257 = arith.constant dense<0xFF800000> : vector<8xf32>
    %397 = vector.multi_reduction <maximumf>, %396, %cst_257 [1] : vector<8x8xf32> to vector<8xf32>
    %398 = vector.shape_cast %397 : vector<8xf32> to vector<8x1xf32>
    %399 = vector.broadcast %398 : vector<8x1xf32> to vector<8x8xf32>
    %400 = arith.subf %396, %399 : vector<8x8xf32>
    %401 = math.exp %400 : vector<8x8xf32>
    %cst_258 = arith.constant dense<0.000000e+00> : vector<8xf32>
    %402 = vector.multi_reduction <add>, %401, %cst_258 [1] : vector<8x8xf32> to vector<8xf32>
    %403 = vector.shape_cast %402 : vector<8xf32> to vector<8x1xf32>
    %404 = tpu.reciprocal %403 {approx = true} : vector<8x1xf32> -> vector<8x1xf32>
    %405 = vector.broadcast %404 : vector<8x1xf32> to vector<8x8xf32>
    %406 = arith.mulf %401, %405 : vector<8x8xf32>
    %407 = arith.truncf %406 : vector<8x8xf32> to vector<8x8xbf16>
    %408 = arith.truncf %389 : vector<8x8xf32> to vector<8x8xbf16>
    %cst_259 = arith.constant dense<0.000000e+00> : vector<8x8xf32>
    %409 = tpu.matmul %407, %408, %cst_259 {dimension_numbers = #tpu.dot_dimension_numbers<[1], [0], [0], [1], [0, 0, 1, 1], [], []>} : vector<8x8xbf16>, vector<8x8xbf16>, vector<8x8xf32> -> vector<8x8xf32>
    %410 = arith.truncf %409 : vector<8x8xf32> to vector<8x8xbf16>
    %c3_260 = arith.constant 3 : index
    %c0_261 = arith.constant 0 : index
    %c0_262 = arith.constant 0 : index
    %411 = vector.load %arg24[%c3_260, %c0_261, %c0_262] : memref<4x8x32xbf16, #tpu.memory_space<vmem>>, vector<1x8x32xbf16>
    %412 = vector.shape_cast %411 : vector<1x8x32xbf16> to vector<8x32xbf16>
    %cst_263 = arith.constant dense<0.000000e+00> : vector<8x32xf32>
    %413 = tpu.matmul %410, %412, %cst_263 {dimension_numbers = #tpu.dot_dimension_numbers<[1], [0], [0], [1], [0, 0, 1, 1], [], []>} : vector<8x8xbf16>, vector<8x32xbf16>, vector<8x32xf32> -> vector<8x32xf32>
    %414 = arith.addf %368, %413 : vector<8x32xf32>
    %c0_264 = arith.constant 0 : index
    %c0_265 = arith.constant 0 : index
    %415 = vector.load %arg25[%c0_264, %c0_265] : memref<1x32xf32, #tpu.memory_space<vmem>>, vector<1x32xf32>
    %416 = vector.broadcast %415 : vector<1x32xf32> to vector<8x32xf32>
    %417 = arith.addf %414, %416 : vector<8x32xf32>
    %cst_266 = arith.constant 5.000000e-01 : f32
    %418 = vector.broadcast %cst_266 : f32 to vector<8x32xf32>
    %419 = arith.mulf %418, %221 : vector<8x32xf32>
    %420 = arith.addf %1, %419 : vector<8x32xf32>
    %cst_267 = arith.constant 5.000000e-01 : f32
    %421 = vector.broadcast %cst_267 : f32 to vector<8x32xf32>
    %422 = arith.mulf %421, %417 : vector<8x32xf32>
    %423 = arith.addf %420, %422 : vector<8x32xf32>
    %cst_268 = arith.constant dense<0.000000e+00> : vector<8xf32>
    %424 = vector.multi_reduction <add>, %423, %cst_268 [1] : vector<8x32xf32> to vector<8xf32>
    %425 = vector.shape_cast %424 : vector<8xf32> to vector<8x1xf32>
    %cst_269 = arith.constant 3.200000e+01 : f32
    %426 = vector.broadcast %cst_269 : f32 to vector<8x1xf32>
    %427 = arith.divf %425, %426 : vector<8x1xf32>
    %428 = vector.broadcast %427 : vector<8x1xf32> to vector<8x32xf32>
    %429 = arith.subf %423, %428 : vector<8x32xf32>
    %430 = arith.mulf %429, %429 : vector<8x32xf32>
    %cst_270 = arith.constant dense<0.000000e+00> : vector<8xf32>
    %431 = vector.multi_reduction <add>, %430, %cst_270 [1] : vector<8x32xf32> to vector<8xf32>
    %432 = vector.shape_cast %431 : vector<8xf32> to vector<8x1xf32>
    %cst_271 = arith.constant 3.200000e+01 : f32
    %433 = vector.broadcast %cst_271 : f32 to vector<8x1xf32>
    %434 = arith.divf %432, %433 : vector<8x1xf32>
    %435 = vector.broadcast %427 : vector<8x1xf32> to vector<8x32xf32>
    %436 = arith.subf %423, %435 : vector<8x32xf32>
    %cst_272 = arith.constant 9.99999974E-6 : f32
    %437 = vector.broadcast %cst_272 : f32 to vector<8x1xf32>
    %438 = arith.addf %434, %437 : vector<8x1xf32>
    %439 = math.rsqrt %438 : vector<8x1xf32>
    %440 = vector.broadcast %439 : vector<8x1xf32> to vector<8x32xf32>
    %441 = arith.mulf %436, %440 : vector<8x32xf32>
    %c0_273 = arith.constant 0 : index
    %c0_274 = arith.constant 0 : index
    %442 = vector.load %arg26[%c0_273, %c0_274] : memref<1x32xf32, #tpu.memory_space<vmem>>, vector<1x32xf32>
    %443 = vector.broadcast %442 : vector<1x32xf32> to vector<8x32xf32>
    %444 = arith.mulf %441, %443 : vector<8x32xf32>
    %c0_275 = arith.constant 0 : index
    %c0_276 = arith.constant 0 : index
    %445 = vector.load %arg27[%c0_275, %c0_276] : memref<1x32xf32, #tpu.memory_space<vmem>>, vector<1x32xf32>
    %446 = vector.broadcast %445 : vector<1x32xf32> to vector<8x32xf32>
    %447 = arith.addf %444, %446 : vector<8x32xf32>
    %448 = arith.truncf %447 : vector<8x32xf32> to vector<8x32xbf16>
    %c0_277 = arith.constant 0 : index
    %c0_278 = arith.constant 0 : index
    %449 = vector.load %arg28[%c0_277, %c0_278] : memref<32x64xbf16, #tpu.memory_space<vmem>>, vector<32x64xbf16>
    %cst_279 = arith.constant dense<0.000000e+00> : vector<8x64xf32>
    %450 = tpu.matmul %448, %449, %cst_279 {dimension_numbers = #tpu.dot_dimension_numbers<[1], [0], [0], [1], [0, 0, 1, 1], [], []>} : vector<8x32xbf16>, vector<32x64xbf16>, vector<8x64xf32> -> vector<8x64xf32>
    %c0_280 = arith.constant 0 : index
    %c0_281 = arith.constant 0 : index
    %451 = vector.load %arg29[%c0_280, %c0_281] : memref<1x64xf32, #tpu.memory_space<vmem>>, vector<1x64xf32>
    %452 = vector.broadcast %451 : vector<1x64xf32> to vector<8x64xf32>
    %453 = arith.addf %450, %452 : vector<8x64xf32>
    %cst_282 = arith.constant 5.000000e-01 : f32
    %454 = vector.broadcast %cst_282 : f32 to vector<8x64xf32>
    %455 = arith.mulf %454, %453 : vector<8x64xf32>
    %cst_283 = arith.constant 0.707106769 : f32
    %456 = vector.broadcast %cst_283 : f32 to vector<8x64xf32>
    %457 = arith.mulf %453, %456 : vector<8x64xf32>
    %458 = math.erf %457 : vector<8x64xf32>
    %cst_284 = arith.constant 1.000000e+00 : f32
    %459 = vector.broadcast %cst_284 : f32 to vector<8x64xf32>
    %460 = arith.addf %459, %458 : vector<8x64xf32>
    %461 = arith.mulf %455, %460 : vector<8x64xf32>
    %462 = arith.truncf %461 : vector<8x64xf32> to vector<8x64xbf16>
    %c0_285 = arith.constant 0 : index
    %c0_286 = arith.constant 0 : index
    %463 = vector.load %arg30[%c0_285, %c0_286] : memref<64x32xbf16, #tpu.memory_space<vmem>>, vector<64x32xbf16>
    %cst_287 = arith.constant dense<0.000000e+00> : vector<8x32xf32>
    %464 = tpu.matmul %462, %463, %cst_287 {dimension_numbers = #tpu.dot_dimension_numbers<[1], [0], [0], [1], [0, 0, 1, 1], [], []>} : vector<8x64xbf16>, vector<64x32xbf16>, vector<8x32xf32> -> vector<8x32xf32>
    %c0_288 = arith.constant 0 : index
    %c0_289 = arith.constant 0 : index
    %465 = vector.load %arg31[%c0_288, %c0_289] : memref<1x32xf32, #tpu.memory_space<vmem>>, vector<1x32xf32>
    %466 = vector.broadcast %465 : vector<1x32xf32> to vector<8x32xf32>
    %467 = arith.addf %464, %466 : vector<8x32xf32>
    %468 = arith.addf %423, %467 : vector<8x32xf32>
    %c0_290 = arith.constant 0 : index
    %c0_291 = arith.constant 0 : index
    %c0_292 = arith.constant 0 : index
    %469 = vector.load %arg32[%c0_290, %c0_291, %c0_292] : memref<1x8x32xf32, #tpu.memory_space<vmem>>, vector<1x8x32xf32>
    %470 = vector.shape_cast %469 : vector<1x8x32xf32> to vector<8x32xf32>
    %471 = vector.shape_cast %468 : vector<8x32xf32> to vector<1x8x32xf32>
    tpu.vector_store %arg32[%c0_290, %c0_291, %c0_292], %471 {strides = array<i32>} : memref<1x8x32xf32, #tpu.memory_space<vmem>>, vector<1x8x32xf32>,
    return
  }
  func.func @transform_0(%arg0: i32, %arg1: i32) -> (i32, i32, i32) {
    %c0_i32 = arith.constant 0 : i32
    %c0_i32_0 = arith.constant 0 : i32
    return %arg0, %arg1, %c0_i32 : i32, i32, i32
  }
  func.func @transform_1(%arg0: i32, %arg1: i32) -> (i32, i32, i32) {
    %c0_i32 = arith.constant 0 : i32
    %c0_i32_0 = arith.constant 0 : i32
    %c0_i32_1 = arith.constant 0 : i32
    return %arg0, %c0_i32, %c0_i32_0 : i32, i32, i32
  }
  func.func @transform_2(%arg0: i32, %arg1: i32) -> (i32, i32, i32) {
    %c0_i32 = arith.constant 0 : i32
    %c0_i32_0 = arith.constant 0 : i32
    %c0_i32_1 = arith.constant 0 : i32
    return %arg0, %c0_i32, %c0_i32_0 : i32, i32, i32
  }
  func.func @transform_3(%arg0: i32, %arg1: i32) -> (i32, i32, i32) {
    %c0_i32 = arith.constant 0 : i32
    %c0_i32_0 = arith.constant 0 : i32
    %c0_i32_1 = arith.constant 0 : i32
    return %arg0, %c0_i32, %c0_i32_0 : i32, i32, i32
  }
  func.func @transform_4(%arg0: i32, %arg1: i32) -> (i32, i32) {
    %c0_i32 = arith.constant 0 : i32
    %c0_i32_0 = arith.constant 0 : i32
    %c0_i32_1 = arith.constant 0 : i32
    return %c0_i32, %c0_i32_0 : i32, i32
  }
  func.func @transform_5(%arg0: i32, %arg1: i32) -> (i32, i32) {
    %c0_i32 = arith.constant 0 : i32
    %c0_i32_0 = arith.constant 0 : i32
    %c0_i32_1 = arith.constant 0 : i32
    return %c0_i32, %c0_i32_0 : i32, i32
  }
  func.func @transform_6(%arg0: i32, %arg1: i32) -> (i32, i32, i32) {
    %c0_i32 = arith.constant 0 : i32
    %c0_i32_0 = arith.constant 0 : i32
    %c0_i32_1 = arith.constant 0 : i32
    %c0_i32_2 = arith.constant 0 : i32
    return %c0_i32, %c0_i32_0, %c0_i32_1 : i32, i32, i32
  }
  func.func @transform_7(%arg0: i32, %arg1: i32) -> (i32, i32, i32) {
    %c0_i32 = arith.constant 0 : i32
    %c0_i32_0 = arith.constant 0 : i32
    %c0_i32_1 = arith.constant 0 : i32
    %c0_i32_2 = arith.constant 0 : i32
    return %c0_i32, %c0_i32_0, %c0_i32_1 : i32, i32, i32
  }
  func.func @transform_8(%arg0: i32, %arg1: i32) -> (i32, i32, i32) {
    %c0_i32 = arith.constant 0 : i32
    %c0_i32_0 = arith.constant 0 : i32
    %c0_i32_1 = arith.constant 0 : i32
    %c0_i32_2 = arith.constant 0 : i32
    return %c0_i32, %c0_i32_0, %c0_i32_1 : i32, i32, i32
  }
  func.func @transform_9(%arg0: i32, %arg1: i32) -> (i32, i32, i32) {
    %c0_i32 = arith.constant 0 : i32
    %c0_i32_0 = arith.constant 0 : i32
    %c0_i32_1 = arith.constant 0 : i32
    %c0_i32_2 = arith.constant 0 : i32
    return %c0_i32, %c0_i32_0, %c0_i32_1 : i32, i32, i32
  }
  func.func @transform_10(%arg0: i32, %arg1: i32) -> (i32, i32, i32) {
    %c0_i32 = arith.constant 0 : i32
    %c0_i32_0 = arith.constant 0 : i32
    %c0_i32_1 = arith.constant 0 : i32
    %c0_i32_2 = arith.constant 0 : i32
    return %c0_i32, %c0_i32_0, %c0_i32_1 : i32, i32, i32
  }
  func.func @transform_11(%arg0: i32, %arg1: i32) -> (i32, i32, i32) {
    %c0_i32 = arith.constant 0 : i32
    %c0_i32_0 = arith.constant 0 : i32
    %c0_i32_1 = arith.constant 0 : i32
    %c0_i32_2 = arith.constant 0 : i32
    return %c0_i32, %c0_i32_0, %c0_i32_1 : i32, i32, i32
  }
  func.func @transform_12(%arg0: i32, %arg1: i32) -> (i32, i32, i32) {
    %c0_i32 = arith.constant 0 : i32
    %c0_i32_0 = arith.constant 0 : i32
    %c0_i32_1 = arith.constant 0 : i32
    %c0_i32_2 = arith.constant 0 : i32
    return %c0_i32, %c0_i32_0, %c0_i32_1 : i32, i32, i32
  }
  func.func @transform_13(%arg0: i32, %arg1: i32) -> (i32, i32) {
    %c0_i32 = arith.constant 0 : i32
    %c0_i32_0 = arith.constant 0 : i32
    %c0_i32_1 = arith.constant 0 : i32
    return %c0_i32, %c0_i32_0 : i32, i32
  }
  func.func @transform_14(%arg0: i32, %arg1: i32) -> (i32, i32) {
    %c0_i32 = arith.constant 0 : i32
    %c0_i32_0 = arith.constant 0 : i32
    %c0_i32_1 = arith.constant 0 : i32
    return %c0_i32, %c0_i32_0 : i32, i32
  }
  func.func @transform_15(%arg0: i32, %arg1: i32) -> (i32, i32) {
    %c0_i32 = arith.constant 0 : i32
    %c0_i32_0 = arith.constant 0 : i32
    %c0_i32_1 = arith.constant 0 : i32
    return %c0_i32, %c0_i32_0 : i32, i32
  }
  func.func @transform_16(%arg0: i32, %arg1: i32) -> (i32, i32, i32) {
    %c0_i32 = arith.constant 0 : i32
    %c0_i32_0 = arith.constant 0 : i32
    %c0_i32_1 = arith.constant 0 : i32
    %c0_i32_2 = arith.constant 0 : i32
    return %c0_i32, %c0_i32_0, %c0_i32_1 : i32, i32, i32
  }
  func.func @transform_17(%arg0: i32, %arg1: i32) -> (i32, i32, i32) {
    %c0_i32 = arith.constant 0 : i32
    %c0_i32_0 = arith.constant 0 : i32
    %c0_i32_1 = arith.constant 0 : i32
    %c0_i32_2 = arith.constant 0 : i32
    return %c0_i32, %c0_i32_0, %c0_i32_1 : i32, i32, i32
  }
  func.func @transform_18(%arg0: i32, %arg1: i32) -> (i32, i32, i32) {
    %c0_i32 = arith.constant 0 : i32
    %c0_i32_0 = arith.constant 0 : i32
    %c0_i32_1 = arith.constant 0 : i32
    %c0_i32_2 = arith.constant 0 : i32
    return %c0_i32, %c0_i32_0, %c0_i32_1 : i32, i32, i32
  }
  func.func @transform_19(%arg0: i32, %arg1: i32) -> (i32, i32, i32) {
    %c0_i32 = arith.constant 0 : i32
    %c0_i32_0 = arith.constant 0 : i32
    %c0_i32_1 = arith.constant 0 : i32
    %c0_i32_2 = arith.constant 0 : i32
    return %c0_i32, %c0_i32_0, %c0_i32_1 : i32, i32, i32
  }
  func.func @transform_20(%arg0: i32, %arg1: i32) -> (i32, i32, i32) {
    %c0_i32 = arith.constant 0 : i32
    %c0_i32_0 = arith.constant 0 : i32
    %c0_i32_1 = arith.constant 0 : i32
    %c0_i32_2 = arith.constant 0 : i32
    return %c0_i32, %c0_i32_0, %c0_i32_1 : i32, i32, i32
  }
  func.func @transform_21(%arg0: i32, %arg1: i32) -> (i32, i32, i32) {
    %c0_i32 = arith.constant 0 : i32
    %c0_i32_0 = arith.constant 0 : i32
    %c0_i32_1 = arith.constant 0 : i32
    %c0_i32_2 = arith.constant 0 : i32
    return %c0_i32, %c0_i32_0, %c0_i32_1 : i32, i32, i32
  }
  func.func @transform_22(%arg0: i32, %arg1: i32) -> (i32, i32, i32) {
    %c0_i32 = arith.constant 0 : i32
    %c0_i32_0 = arith.constant 0 : i32
    %c0_i32_1 = arith.constant 0 : i32
    %c0_i32_2 = arith.constant 0 : i32
    return %c0_i32, %c0_i32_0, %c0_i32_1 : i32, i32, i32
  }
  func.func @transform_23(%arg0: i32, %arg1: i32) -> (i32, i32) {
    %c0_i32 = arith.constant 0 : i32
    %c0_i32_0 = arith.constant 0 : i32
    %c0_i32_1 = arith.constant 0 : i32
    return %c0_i32, %c0_i32_0 : i32, i32
  }
  func.func @transform_24(%arg0: i32, %arg1: i32) -> (i32, i32) {
    %c0_i32 = arith.constant 0 : i32
    %c0_i32_0 = arith.constant 0 : i32
    %c0_i32_1 = arith.constant 0 : i32
    return %c0_i32, %c0_i32_0 : i32, i32
  }
  func.func @transform_25(%arg0: i32, %arg1: i32) -> (i32, i32) {
    %c0_i32 = arith.constant 0 : i32
    %c0_i32_0 = arith.constant 0 : i32
    %c0_i32_1 = arith.constant 0 : i32
    return %c0_i32, %c0_i32_0 : i32, i32
  }
  func.func @transform_26(%arg0: i32, %arg1: i32) -> (i32, i32) {
    %c0_i32 = arith.constant 0 : i32
    %c0_i32_0 = arith.constant 0 : i32
    %c0_i32_1 = arith.constant 0 : i32
    return %c0_i32, %c0_i32_0 : i32, i32
  }
  func.func @transform_27(%arg0: i32, %arg1: i32) -> (i32, i32) {
    %c0_i32 = arith.constant 0 : i32
    %c0_i32_0 = arith.constant 0 : i32
    %c0_i32_1 = arith.constant 0 : i32
    return %c0_i32, %c0_i32_0 : i32, i32
  }
  func.func @transform_28(%arg0: i32, %arg1: i32) -> (i32, i32) {
    %c0_i32 = arith.constant 0 : i32
    %c0_i32_0 = arith.constant 0 : i32
    %c0_i32_1 = arith.constant 0 : i32
    return %c0_i32, %c0_i32_0 : i32, i32
  }
  func.func @transform_29(%arg0: i32, %arg1: i32) -> (i32, i32) {
    %c0_i32 = arith.constant 0 : i32
    %c0_i32_0 = arith.constant 0 : i32
    %c0_i32_1 = arith.constant 0 : i32
    return %c0_i32, %c0_i32_0 : i32, i32
  }
  func.func @transform_30(%arg0: i32, %arg1: i32) -> (i32, i32, i32) {
    %c0_i32 = arith.constant 0 : i32
    %c0_i32_0 = arith.constant 0 : i32
    return %arg0, %arg1, %c0_i32 : i32, i32, i32
  }
}

</mosaic_0001>

<bundles_post_ra>
// kernel: tpu_custom_call.1
= control target key start
LH: loop header
LB: loop body
LE: loop exit
PB: predicated region body
PF: predicated region fallthrough
CT: control target
= control target key end

     0   :  { %s5236_s6 = smov 1   ;;  %s5237_s10 = smov 2   ;;  %s5997_s0 = inlined_call_operand.smem [shape: u32[31], index: -1, kind: input, shape index: {}] }
   0x1   :  { %s5277_s5 = sld [smem:[%s5997_s0]]   ;;  %s5238_s14 = smov 3  }
   0x2   :  { %s5282_s9 = sld [smem:[%s5997_s0 + %s5236_s6]]   ;;  %s5239_s18 = smov 4  }
   0x3   :  { %s5287_s13 = sld [smem:[%s5997_s0 + %s5237_s10]]   ;;  %s5240_s22 = smov 5  }
   0x4   :  { %s5292_s17 = sld [smem:[%s5997_s0 + %s5238_s14]]   ;;  %s5241_s26 = smov 6  }
   0x5   :  { %s5297_s21 = sld [smem:[%s5997_s0 + %s5239_s18]]   ;;  %s5242_s30 = smov 7  }
   0x6   :  { %s5302_s25 = sld [smem:[%s5997_s0 + %s5240_s22]]   ;;  %s5243_s4 = smov 8  }
   0x7   :  { %6014 = sst [smem:[#allocation5_spill]] %s5277_s5  ;;  %s5244_s10 = smov 9  }
   0x8   :  { %6015 = sst [smem:[#allocation6_spill]] %s5282_s9  ;;  %s5245_s15 = smov 10  }
   0x9   :  { %s5307_s29 = sld [smem:[%s5997_s0 + %s5241_s26]]   ;;  %s5246_s20 = smov 11  }
   0xa   :  { %s5312_s3 = sld [smem:[%s5997_s0 + %s5242_s30]]   ;;  %s5247_s26 = smov 12  }
   0xb   :  { %s5317_s8 = sld [smem:[%s5997_s0 + %s5243_s4]]   ;;  %s5248_s1 = smov 13  }
   0xc   :  { %s5322_s14 = sld [smem:[%s5997_s0 + %s5244_s10]]   ;;  %s5249_s7 = smov 14  }
   0xd   :  { %s5327_s19 = sld [smem:[%s5997_s0 + %s5245_s15]]   ;;  %s5250_s15 = smov 15  }
   0xe   :  { %s5332_s24 = sld [smem:[%s5997_s0 + %s5246_s20]]   ;;  %s5251_s22 = smov 16  }
   0xf   :  { %s5337_s30 = sld [smem:[%s5997_s0 + %s5247_s26]]   ;;  %s5252_s28 = smov 17  }
  0x10   :  { %6016 = sst [smem:[#allocation7_spill]] %s5312_s3 }
  0x11   :  { %6017 = sst [smem:[#allocation8_spill]] %s5317_s8 }
  0x12   :  { %s5342_s6 = sld [smem:[%s5997_s0 + %s5248_s1]]  }
  0x13   :  { %s5347_s12 = sld [smem:[%s5997_s0 + %s5249_s7]]   ;;  %s5253_s7 = smov 18  }
  0x14   :  { %s5352_s20 = sld [smem:[%s5997_s0 + %s5250_s15]]   ;;  %s5254_s15 = smov 19  }
  0x15   :  { %s5357_s27 = sld [smem:[%s5997_s0 + %s5251_s22]]   ;;  %s5255_s22 = smov 20  }
  0x16   :  { %s5362_s4 = sld [smem:[%s5997_s0 + %s5252_s28]]   ;;  %s5256_s28 = smov 21  }
  0x17   :  { %s5372_s9 = sld [smem:[%s5997_s0 + %s5254_s15]]   ;;  %s5258_s15 = smov 23  }
  0x18   :  { %6018 = sst [smem:[#allocation9_spill]] %s5342_s6 }
  0x19   :  { %6019 = sst [smem:[#allocation10_spill]] %s5347_s12 }
  0x1a   :  { %6020 = sst [smem:[#allocation11_spill]] %s5352_s20 }
  0x1b   :  { %s5367_s6 = sld [smem:[%s5997_s0 + %s5253_s7]]   ;;  %s5257_s7 = smov 22  }
  0x1c   :  { %6021 = sst [smem:[#allocation12_spill]] %s5362_s4 }
  0x1d   :  { %6023 = sst [smem:[#allocation14_spill]] %s5372_s9 }
  0x1e   :  { %s5377_s20 = sld [smem:[%s5997_s0 + %s5255_s22]]   ;;  %s5259_s22 = smov 24  }
  0x1f   :  { %s5382_s4 = sld [smem:[%s5997_s0 + %s5256_s28]]   ;;  %s5260_s28 = smov 25  }
  0x20   :  { %s5392_s9 = sld [smem:[%s5997_s0 + %s5258_s15]]   ;;  %s5262_s15 = smov 27  }
  0x21   :  { %6022 = sst [smem:[#allocation13_spill]] %s5367_s6 }
  0x22   :  { %s5387_s6 = sld [smem:[%s5997_s0 + %s5257_s7]]   ;;  %s5261_s7 = smov 26  }
  0x24   :  { %6024 = sst [smem:[#allocation15_spill]] %s5377_s20 }
  0x25   :  { %6025 = sst [smem:[#allocation16_spill]] %s5382_s4 }
  0x26   :  { %6027 = sst [smem:[#allocation18_spill]] %s5392_s9 }
  0x27   :  { %s5397_s20 = sld [smem:[%s5997_s0 + %s5259_s22]]   ;;  %s5263_s22 = smov 28  }
  0x28   :  { %6026 = sst [smem:[#allocation17_spill]] %s5387_s6 }
  0x29   :  { %s5402_s4 = sld [smem:[%s5997_s0 + %s5260_s28]]   ;;  %s5264_s28 = smov 29  }
  0x2a   :  { %s5407_s6 = sld [smem:[%s5997_s0 + %s5261_s7]]   ;;  %s5265_s7 = smov 30  }
  0x2b   :  { %s5412_s9 = sld [smem:[%s5997_s0 + %s5262_s15]]  }
  0x2d   :  { %6028 = sst [smem:[#allocation19_spill]] %s5397_s20 }
  0x2e   :  { %s5417_s20 = sld [smem:[%s5997_s0 + %s5263_s22]]  }
  0x2f   :  { %6029 = sst [smem:[#allocation20_spill]] %s5402_s4 }
  0x30   :  { %6030 = sst [smem:[#allocation21_spill]] %s5407_s6 }
  0x31   :  { %6031 = sst [smem:[#allocation22_spill]] %s5412_s9 }
  0x32   :  { %s5422_s4 = sld [smem:[%s5997_s0 + %s5264_s28]]  }
  0x33   :  { %s5427_s6 = sld [smem:[%s5997_s0 + %s5265_s7]]  }
  0x38   :  { %6032 = sst [smem:[#allocation23_spill]] %s5422_s4 }
  0x39   :  { %6033 = sst [smem:[#allocation24_spill]] %s5427_s6 }
  0x3a   :  { %66 = vsyncpa [#allocation3], 0 }
  0x3b   :  { %68 = vsyncpa [#allocation3 + $0x1], 0  ;;  %s5429_s15 = smov 0   ;;  %s5431_s16 = smov 0  }
  0x3c   :  { %s5433_s18 = smov 0   ;;  %s5435_s22 = smov 0  }
  0x3d   :  { %s5437_s23 = smov 0   ;;  %s5439_s26 = smov 0  }
  0x3e LB: > { %s6034_s8 = sld [smem:[#allocation8_spill]]  ;;  %s4245_s0 = sadd.s32 4294967295, %s5234_s26   ;;  %s5218_s16 = sphi %s5431_s16, %s6057_s16   ;;  %s5214_s15 = sphi %s5429_s15, %s6056_s15   ;;  %s5234_s26 = sphi %s5439_s26, %s74_s26   ;;  %s5230_s23 = sphi %s5437_s23, %s6060_s23   ;;  %s5226_s22 = sphi %s5435_s22, %s6059_s22   ;;  %s5222_s18 = sphi %s5433_s18, %s6058_s18  }
  0x3f   : > { %s6035_s3 = sld [smem:[#allocation7_spill]]  ;;  %s4246_s28 = sadd.s32 4294967294, %s5234_s26  }
  0x40   : > { %s86_s1 = sadd.s32 1, %s5230_s23  ;;  %s747_s2 = sadd.s32 1, %s5222_s18 }
  0x41   : > { %p88_p0 = scmp.ge.s32.totalorder %s86_s1, 2  ;;  %p757_p1 = scmp.ne.s32.totalorder %s5222_s18, %s5218_s16 }
  0x42   : > { %p758_p2 = scmp.eq.s32.totalorder %s4245_s0, 1  ;;  %p763_p3 = scmp.ne.s32.totalorder %s5218_s16, %s5214_s15 }
  0x43   : > { %s6062_s1 = smov (%p88_p0, %s86_s1), 0  ;;  %p764_p5 = scmp.eq.s32.totalorder %s4246_s28, 1 }
  0x44   : > { %p5469_p4 = por %p758_p2, %p757_p1  ;;  %s742_s10 = ssub.s32 %s5230_s23, %s6062_s1 }
  0x45   : > { %p4249_p6 = scmp.ge.s32.totalorder %s5234_s26, 1  ;;  %p745_p7 = scmp.eq.s32.totalorder %s742_s10, 0 }
  0x46   : > { %p5476_p8 = por %p764_p5, %p763_p3  ;;  %p890_p9 = scmp.lt.s32.totalorder %s5234_s26, 3 }
  0x47   : > { %s5482_s6 = scalar_select %p745_p7, %s5222_s18, %s747_s2  }
  0x48   : > { %p891_p10 = pnand %p4249_p6, %p890_p9 }
  0x49   : > { %s6038_s5 = sld [smem:[#allocation5_spill]] (!%p891_p10)  ;;  %p981_p11 = scmp.lt.s32.totalorder (!%p891_p10), %s5226_s22, 1 }
  0x4a   : > { %894 = sbr.rel (%p891_p10) target bundleno = 8263 (0x2047), region = 140  ;;  %s6039_s12 = sld [smem:[#allocation10_spill]] (!%p891_p10) }
  0x4b   : > { %s6053_s9 = sld [smem:[#allocation22_spill]] (!%p891_p10) }
  0x4c   : > { %s6054_s4 = sld [smem:[#allocation23_spill]] (!%p891_p10) }
  0x4f   : > { %s5486_s0 = scalar_select %p981_p11, %s5226_s22, 1  ;;  %vm1004_vm0 = vcmask 261120   ;;  %v5064_v7 = vld [vmem:[%s6034_s8 + $0x8] sm:$0xff]   ;;  %v5266_v8 = vmov 0.0   ;;  %v5065_v11 = vld [vmem:[%s6034_s8] sm:$0xff]   ;;  %vm5267_vm1 = vmmov 0  }
  0x50   : > { %4629 = vmatprep.subr.bf16.mxu1 %v5266_v8  ;;  %4621 = vmatprep.subr.bf16.mxu0 %v5266_v8  ;;  %v5066_v9 = vld [vmem:[%s5307_s29 + $0x8] sm:$0xff]   ;;  %v5067_v12 = vld [vmem:[%s5307_s29] sm:$0xff]   ;;  %vm1234_vm2 = vcmask 64512   ;;  %v5068_v36 = vld [vmem:[%s5307_s29 + $0x18] sm:$0xff]   ;;  %vm1305_vm3 = vcmask 1043456   ;;  %vm4050_vm4 = vcmask 523264  }
  0x51   : > { %s5489_s28 = sshll.u32 %s5486_s0, 3  ;;  %4630 = vmatpush3.bf16.msra.mxu1 %v5064_v7  ;;  %4633 = vmatprep.mubr.msk.bf16.mxu1 %vm5267_vm1, %v5266_v8  ;;  %v4254_v18 = vld [vmem:[%s5297_s21] ss:$0 sm:$0xff]  ;;  %v5069_v40 = vld [vmem:[%s5307_s29 + $0x10] sm:$0xff]   ;;  %v5070_v41 = vld [vmem:[%s5327_s19 + $0x8] sm:$0xff]  }
  0x52   : > { %s5493_s10 = scalar_lea.vmem %s6038_s5, %s5489_s28  ;;  %s995_s2 = scalar_lea.vmem %s5287_s13, %s5489_s28  ;;  %4631 = vmatprep.subr.bf16.mxu1 %v5266_v8  ;;  %4622 = vmatpush3.bf16.msra.mxu0 %v5066_v9  ;;  %v4255_v20 = vld [vmem:[%s5302_s25] ss:$0 sm:$0xff]  ;;  %v5072_v7 = vld [vmem:[%s6034_s8 + $0x18] sm:$0xff]  }
  0x53   : > { %v1000_v0 = vld [vmem:[%s5493_s10] sm:$0xff]  ;;  %4623 = vmatprep.subr.bf16.mxu0 %v5266_v8  ;;  %4625 = vmatprep.mubr.msk.bf16.mxu0 %vm5267_vm1, %v5266_v8  ;;  %s6042_s5 = sld [smem:[#allocation6_spill]] }
  0x54   : > { %v1005_v1 = vsel %vm1004_vm0, %v1000_v0, 0.0  ;;  %v1002_v10 = vld [vmem:[%s995_s2] sm:$0xff]  ;;  %s5556_s2 = scalar_lea.vmem %s5292_s17, %s5486_s0  ;;  %s6040_s0 = sld [smem:[#allocation11_spill]] }
  0x55   : > { %1006 = vadd.xlane.f32.xlu0 %v1005_v1  ;;  %v5512_v13 = vpack.c.bf16 %v1002_v10, %v1002_v10  ;;  %4632 = vmatpush3.bf16.msra.mxu1 %v5065_v11  ;;  %v4260_v24 = vld [vmem:[%s5322_s14] ss:$0 sm:$0xff]  ;;  %v5073_v10 = vld [vmem:[%s6034_s8 + $0x10] sm:$0xff]  }
  0x56   : > { %4624 = vmatpush3.bf16.msra.mxu0 %v5067_v12  ;;  %4645 = vmatprep.subr.bf16.mxu1 %v5266_v8  ;;  %v4256_v32 = vld [vmem:[%s6035_s3] ss:$0 sm:$0xff] }
  0x57   : > { %4637 = vmatprep.subr.bf16.mxu0 %v5266_v8  ;;  %v5071_v42 = vld [vmem:[%s5327_s19] sm:$0xff]  }
  0x58   : > { %4634 = vmatmul.mubr.msk.bf16.vlgmr.msra.gmra.mxu1 %vm1004_vm0, %v5512_v13  ;;  %v5559_v43 = vld [vmem:[%s5556_s2] ss:$0 sm:$0xff] }
  0x59   : > { %4647 = vmatprep.mubr.msk.bf16.mxu1 %vm5267_vm1, %v5266_v8  ;;  %v4264_v60 = vld [vmem:[%s5332_s24] ss:$0 sm:$0xff] }
  0xde   : > { %v1007_v2 = vpop.xlane.xlu0 %1006 }
  0xdf   : > { %v1009_v3 = vmul.f32 0.03125, %v1007_v2 }
  0xe1   : > { %v1010_v4 = vsub.f32 %v1000_v0, %v1009_v3 }
  0xe3   : > { %v1011_v5 = vmul.f32 %v1010_v4, %v1010_v4 }
  0xe5   : > { %v1012_v6 = vsel %vm1004_vm0, %v1011_v5, 0.0 }
  0xe6   : > { %1013 = vadd.xlane.f32.xlu0 %v1012_v6 }
 0x118   : > { %v1163_v25 = vpop.f32.mrf.mxu1 }
 0x119   : > { %v1164_v26 = vadd.f32 %v4260_v24, %v1163_v25 }
 0x11a   : > { %v4635_v27 = vpop.f32.mrf.mxu1 }
 0x11b   : > { %v1233_v28 = vpack.c.bf16 %v1164_v26, %v1164_v26 }
 0x11c   : > { %v1166_v29 = vpop.f32.mrf.mxu1 }
 0x11d   : > { %v1239_v30 = vsel %vm1234_vm2, %v1233_v28, 0  ;;  %v5074_v29 = vld [vmem:[%s5327_s19 + $0x18] sm:$0xff]  }
 0x11e   : > { %v4636_v31 = vpop.f32.mrf.mxu1  ;;  %4646 = vmatpush3.bf16.xpose.msra.mxu1 %v1239_v30  ;;  %v5075_v30 = vld [vmem:[%s5327_s19 + $0x10] sm:$0xff]  }
 0x11f   : > { %4657 = vmatprep.subr.bf16.mxu1 %v5266_v8 }
 0x16f   : > { %v1014_v14 = vpop.xlane.xlu0 %1013 }
 0x170   : > { %v1015_v15 = vmul.f32 0.03125, %v1014_v14 }
 0x172   : > { %v1016_v16 = vadd.f32 1e-05, %v1015_v15 }
 0x174   : > { %5118 = vrsqrt.f32 %v1016_v16  ;;  %v4285_v16 = vld [vmem:[%s5322_s14 + $0x1] ss:$0 sm:$0xff] }
 0x181   : > { %v5119_v17 = vpop.eup %5118 }
 0x182   : > { %v5521_v19 = vmul.f32 %v5119_v17, %v1010_v4 }
 0x184   : > { %v1026_v21 = vmul.f32 %v4254_v18, %v5521_v19 }
 0x186   : > { %v1034_v22 = vadd.f32 %v4255_v20, %v1026_v21 }
 0x188   : > { %v5525_v23 = vpack.c.bf16 %v1034_v22, %v1034_v22  ;;  %v4276_v22 = vld [vmem:[%s6035_s3 + $0x1] ss:$0 sm:$0xff] }
 0x18a   : > { %4626 = vmatmul.mubr.msk.bf16.vlgmr.msra.gmra.mxu0 %vm1004_vm0, %v5525_v23 }
 0x18b   : > { %4641 = vmatprep.mubr.msk.bf16.mxu0 %vm5267_vm1, %v5266_v8  ;;  %4638 = vmatpush3.bf16.msra.mxu0 %v5070_v41 }
 0x18c   : > { %4639 = vmatprep.subr.bf16.mxu0 %v5266_v8 }
 0x18f   : > { %4640 = vmatpush3.bf16.msra.mxu0 %v5071_v42 }
 0x190   : > { %4651 = vmatprep.subr.bf16.mxu0 %v5266_v8 }
 0x192   : > { %4642 = vmatmul.mubr.msk.bf16.vlgmr.msra.gmra.mxu0 %vm1004_vm0, %v5512_v13 }
 0x193   : > { %4653 = vmatprep.mubr.msk.bf16.mxu0 %vm5267_vm1, %v5266_v8 }
 0x24a   : > { %v1097_v33 = vpop.f32.mrf.mxu0 }
 0x24b   : > { %v1098_v34 = vadd.f32 %v4256_v32, %v1097_v33 }
 0x24c   : > { %v4627_v35 = vpop.f32.mrf.mxu0 }
 0x24d   : > { %v1232_v37 = vpack.c.bf16 %v1098_v34, %v1098_v34 }
 0x24e   : > { %v1100_v38 = vpop.f32.mrf.mxu0 }
 0x24f   : > { %4648 = vmatmul.mubr.msk.bf16.vlgmr.msra.gmra.mxu1 %vm1234_vm2, %v1232_v37  ;;  %v4294_v38 = vld [vmem:[%s5332_s24 + $0x1] ss:$0 sm:$0xff] }
 0x250   : > { %v4628_v39 = vpop.f32.mrf.mxu0  ;;  %4658 = vmatpush3.bf16.msra.mxu1 %v5068_v36  ;;  %4661 = vmatprep.mubr.msk.bf16.mxu1 %vm5267_vm1, %v5266_v8 }
 0x251   : > { %4659 = vmatprep.subr.bf16.mxu1 %v5266_v8 }
 0x252   : > { %v1226_v61 = vpop.f32.mrf.mxu0 }
 0x253   : > { %v1227_v62 = vadd.f32 %v4264_v60, %v1226_v61  ;;  %v5076_v60 = vld [vmem:[%s6034_s8 + $0x28] sm:$0xff]  }
 0x254   : > { %4660 = vmatpush3.bf16.msra.mxu1 %v5069_v40  ;;  %v4643_v63 = vpop.f32.mrf.mxu0 }
 0x255   : > { %4673 = vmatprep.subr.bf16.mxu1 %v5266_v8  ;;  %v1301_v0 = vpack.c.bf16 %v1227_v62, %v1227_v62  ;;  %v5077_v62 = vld [vmem:[%s6034_s8 + $0x20] sm:$0xff]  }
 0x256   : > { %v1229_v1 = vpop.f32.mrf.mxu0 }
 0x257   : > { %4662 = vmatmul.mubr.msk.bf16.vlgmr.msra.gmra.mxu1 %vm1004_vm0, %v5525_v23  ;;  %v1307_v2 = vsel %vm1305_vm3, %v1301_v0, 0  ;;  %v5078_v0 = vld [vmem:[%s5307_s29 + $0x28] sm:$0xff]  }
 0x258   : > { %4677 = vmatprep.mubr.msk.bf16.mxu1 %vm5267_vm1, %v5266_v8  ;;  %v4644_v3 = vpop.f32.mrf.mxu0  ;;  %4652 = vmatpush3.bf16.msra.mxu0 %v1307_v2 }
 0x259   : > { %4665 = vmatprep.subr.bf16.mxu0 %v5266_v8  ;;  %4674 = vmatpush3.bf16.msra.mxu1 %v5074_v29 }
 0x25a   : > { %4675 = vmatprep.subr.bf16.mxu1 %v5266_v8 }
 0x25d   : > { %4676 = vmatpush3.bf16.msra.mxu1 %v5075_v30 }
 0x25e   : > { %4687 = vmatprep.subr.bf16.mxu1 %v5266_v8 }
 0x260   : > { %4678 = vmatmul.mubr.msk.bf16.vlgmr.msra.gmra.mxu1 %vm1004_vm0, %v5512_v13 }
 0x261   : > { %4689 = vmatprep.mubr.msk.bf16.mxu1 %vm5267_vm1, %v5266_v8 }
 0x30f   : > { %v1275_v44 = vpop.f32.mrf.mxu1 }
 0x310   : > { %v1281_v45 = vmul.f32 0.35355338, %v1275_v44 }
 0x311   : > { %v4649_v46 = vpop.f32.mrf.mxu1 }
 0x312   : > { %v1288_v47 = vadd.f32 %v5559_v43, %v1281_v45 }
 0x313   : > { %v1278_v48 = vpop.f32.mrf.mxu1 }
 0x314   : > { %v1289_v49 = vsel %vm1234_vm2, %v1288_v47, -inf }
 0x315   : > { %1290 = vmax.xlane.f32.xlu1 %v1289_v49  ;;  %v4650_v50 = vpop.f32.mrf.mxu1 }
 0x317   : > { %v1410_v51 = vpop.f32.mrf.mxu1 }
 0x318   : > { %v1411_v27 = vadd.f32 %v4276_v22, %v1410_v51 }
 0x319   : > { %v4663_v52 = vpop.f32.mrf.mxu1 }
 0x31a   : > { %v1546_v28 = vpack.c.bf16 %v1411_v27, %v1411_v27  ;;  %v4300_v52 = vld [vmem:[%s5337_s30 + $0x4] sm:$0xf] }
 0x31b   : > { %v1413_v53 = vpop.f32.mrf.mxu1 }
 0x31c   : > { %v1662_v53 = vsel %vm1305_vm3, %v4300_v52, 0 }
 0x31d   : > { %v4664_v54 = vpop.f32.mrf.mxu1 }
 0x320   : > { %v1540_v39 = vpop.f32.mrf.mxu1 }
 0x321   : > { %v1541_v40 = vadd.f32 %v4294_v38, %v1540_v39 }
 0x322   : > { %v4679_v41 = vpop.f32.mrf.mxu1 }
 0x323   : > { %v1608_v42 = vpack.c.bf16 %v1541_v40, %v1541_v40 }
 0x324   : > { %v1543_v44 = vpop.f32.mrf.mxu1 }
 0x325   : > { %v1613_v45 = vsel %vm1305_vm3, %v1608_v42, 0 }
 0x326   : > { %v4680_v46 = vpop.f32.mrf.mxu1  ;;  %4688 = vmatpush3.bf16.msra.mxu1 %v1613_v45 }
 0x327   : > { %4699 = vmatprep.subr.bf16.mxu1 %v5266_v8 }
 0x39e   : > { %v1291_v55 = vpop.xlane.xlu1 %1290 }
 0x39f   : > { %v1292_v56 = vsub.f32 %v1288_v47, %v1291_v55 }
 0x3a1   : > { %v1293_v57 = vmul.f32 1.442695, %v1292_v56  ;;  %v1350_v56 = vld [vmem:[%s5337_s30] sm:$0xf] }
 0x3a3   : > { %5120 = vpow2.f32 %v1293_v57 }
 0x3b0   : > { %v5121_v58 = vpop.eup %5120 }
 0x3b1   : > { %v1295_v59 = vsel %vm1234_vm2, %v5121_v58, 0.0 }
 0x3b2   : > { %1296 = vadd.xlane.f32.xlu1 %v1295_v59  ;;  %v1708_v59 = vsel %vm1305_vm3, %v1350_v56, 0  ;;  %v4332_v56 = vld [vmem:[%s5337_s30 + $0x8] sm:$0xf] }
 0x43b   : > { %v1297_v4 = vpop.xlane.xlu1 %1296 }
 0x43c   : > { %5122 = vrcp.f32 %v1297_v4  ;;  %v5079_v4 = vld [vmem:[%s5307_s29 + $0x20] sm:$0xff]  }
 0x449   : > { %v5123_v5 = vpop.eup %5122 }
 0x44a   : > { %v1299_v6 = vmul.f32 %v5123_v5, %v5121_v58 }
 0x44c   : > { %v1300_v9 = vpack.c.bf16 %v1299_v6, %v1299_v6 }
 0x44e   : > { %4654 = vmatmul.mubr.msk.bf16.vlgmr.msra.gmra.mxu0 %vm1234_vm2, %v1300_v9 }
 0x44f   : > { %4666 = vmatpush3.bf16.msra.mxu0 %v5072_v7  ;;  %4669 = vmatprep.mubr.msk.bf16.mxu0 %vm5267_vm1, %v5266_v8 }
 0x450   : > { %4667 = vmatprep.subr.bf16.mxu0 %v5266_v8 }
 0x453   : > { %4668 = vmatpush3.bf16.msra.mxu0 %v5073_v10 }
 0x454   : > { %4681 = vmatprep.subr.bf16.mxu0 %v5266_v8 }
 0x456   : > { %4670 = vmatmul.mubr.msk.bf16.vlgmr.msra.gmra.mxu0 %vm1004_vm0, %v5512_v13 }
 0x457   : > { %4683 = vmatprep.mubr.msk.bf16.mxu0 %vm5267_vm1, %v5266_v8 }
 0x50e   : > { %v5578_v11 = vpop.f32.mrf.mxu0 }
 0x50f   : > { %v1349_v61 = vpack.c.bf16 %v5578_v11, %v5578_v11  ;;  %v4317_v11 = vld [vmem:[%s5322_s14 + $0x2] ss:$0 sm:$0xff] }
 0x510   : > { %v4655_v12 = vpop.f32.mrf.mxu0 }
 0x512   : > { %v1346_v14 = vpop.f32.mrf.mxu0 }
 0x514   : > { %v4656_v15 = vpop.f32.mrf.mxu0 }
 0x516   : > { %v1475_v17 = vpop.f32.mrf.mxu0 }
 0x517   : > { %v1476_v18 = vadd.f32 %v4285_v16, %v1475_v17 }
 0x518   : > { %v4671_v20 = vpop.f32.mrf.mxu0 }
 0x519   : > { %v1547_v21 = vpack.c.bf16 %v1476_v18, %v1476_v18 }
 0x51a   : > { %v1478_v24 = vpop.f32.mrf.mxu0 }
 0x51b   : > { %v1552_v25 = vsel %vm1234_vm2, %v1547_v21, 0 }
 0x51c   : > { %v4672_v26 = vpop.f32.mrf.mxu0  ;;  %4682 = vmatpush3.bf16.xpose.msra.mxu0 %v1552_v25 }
 0x51d   : > { %4693 = vmatprep.subr.bf16.mxu0 %v5266_v8  ;;  %v4308_v26 = vld [vmem:[%s6035_s3 + $0x2] ss:$0 sm:$0xff] }
 0x523   : > { %4684 = vmatmul.mubr.msk.bf16.vlgmr.msra.gmra.mxu0 %vm1234_vm2, %v1546_v28 }
 0x524   : > { %4695 = vmatprep.mubr.msk.bf16.mxu0 %vm5267_vm1, %v5266_v8  ;;  %4694 = vmatpush3.bf16.msra.mxu0 %v1662_v53 }
 0x525   : > { %4705 = vmatprep.subr.bf16.mxu0 %v5266_v8 }
 0x5e3   : > { %v1588_v31 = vpop.f32.mrf.mxu0 }
 0x5e4   : > { %v1594_v32 = vmul.f32 0.35355338, %v1588_v31 }
 0x5e5   : > { %v4685_v33 = vpop.f32.mrf.mxu0 }
 0x5e6   : > { %v1595_v34 = vadd.f32 %v5559_v43, %v1594_v32  ;;  %v5080_v33 = vld [vmem:[%s5327_s19 + $0x28] sm:$0xff]  }
 0x5e7   : > { %v1591_v35 = vpop.f32.mrf.mxu0 }
 0x5e8   : > { %v1596_v36 = vsel %vm1234_vm2, %v1595_v34, -inf }
 0x5e9   : > { %1597 = vmax.xlane.f32.xlu0 %v1596_v36  ;;  %v4686_v37 = vpop.f32.mrf.mxu0 }
 0x672   : > { %v1598_v47 = vpop.xlane.xlu0 %1597 }
 0x673   : > { %v1599_v48 = vsub.f32 %v1595_v34, %v1598_v47  ;;  %v5081_v34 = vld [vmem:[%s5327_s19 + $0x20] sm:$0xff]  }
 0x675   : > { %v1600_v49 = vmul.f32 1.442695, %v1599_v48  ;;  %v4326_v48 = vld [vmem:[%s5332_s24 + $0x2] ss:$0 sm:$0xff] }
 0x677   : > { %5124 = vpow2.f32 %v1600_v49 }
 0x684   : > { %v5125_v50 = vpop.eup %5124 }
 0x685   : > { %v1602_v51 = vsel %vm1234_vm2, %v5125_v50, 0.0 }
 0x686   : > { %1603 = vadd.xlane.f32.xlu1 %v1602_v51 }
 0x70f   : > { %v1604_v54 = vpop.xlane.xlu1 %1603 }
 0x710   : > { %5126 = vrcp.f32 %v1604_v54 }
 0x71d   : > { %v5127_v55 = vpop.eup %5126 }
 0x71e   : > { %v1606_v57 = vmul.f32 %v5127_v55, %v5125_v50 }
 0x720   : > { %v1607_v58 = vpack.c.bf16 %v1606_v57, %v1606_v57  ;;  %v2061_v57 = vsel %vm1305_vm3, %v4332_v56, 0 }
 0x722   : > { %4690 = vmatmul.mubr.msk.bf16.vlgmr.msra.gmra.mxu1 %vm1234_vm2, %v1607_v58 }
 0x723   : > { %4700 = vmatpush3.bf16.msra.mxu1 %v1708_v59  ;;  %4701 = vmatprep.mubr.msk.bf16.mxu1 %vm5267_vm1, %v5266_v8 }
 0x724   : > { %4713 = vmatprep.subr.bf16.mxu1 %v5266_v8 }
 0x72a   : > { %4702 = vmatmul.mubr.msk.bf16.vlgmr.msra.gmra.mxu1 %vm1234_vm2, %v1349_v61  ;;  %v5082_v61 = vld [vmem:[%s5307_s29 + $0x38] sm:$0xff]  }
 0x72b   : > { %4714 = vmatpush3.bf16.msra.mxu1 %v5076_v60  ;;  %4717 = vmatprep.mubr.msk.bf16.mxu1 %vm5267_vm1, %v5266_v8 }
 0x72c   : > { %4715 = vmatprep.subr.bf16.mxu1 %v5266_v8 }
 0x72f   : > { %4716 = vmatpush3.bf16.msra.mxu1 %v5077_v62 }
 0x730   : > { %4729 = vmatprep.subr.bf16.mxu1 %v5266_v8 }
 0x732   : > { %4718 = vmatmul.mubr.msk.bf16.vlgmr.msra.gmra.mxu1 %vm1004_vm0, %v5512_v13 }
 0x733   : > { %4731 = vmatprep.mubr.msk.bf16.mxu1 %vm5267_vm1, %v5266_v8 }
 0x7e2   : > { %v1649_v63 = vpop.f32.mrf.mxu1 }
 0x7e3   : > { %v1655_v1 = vpack.c.bf16 %v1649_v63, %v1649_v63  ;;  %v5083_v63 = vld [vmem:[%s5307_s29 + $0x30] sm:$0xff]  }
 0x7e4   : > { %v4691_v2 = vpop.f32.mrf.mxu1 }
 0x7e5   : > { %4696 = vmatmul.mubr.msk.bf16.vlgmr.msra.gmra.mxu0 %vm1234_vm2, %v1655_v1  ;;  %v5084_v1 = vld [vmem:[%s6034_s8 + $0x38] sm:$0xff]  }
 0x7e6   : > { %v1652_v3 = vpop.f32.mrf.mxu1  ;;  %4706 = vmatpush3.bf16.msra.mxu0 %v5078_v0  ;;  %4709 = vmatprep.mubr.msk.bf16.mxu0 %vm5267_vm1, %v5266_v8 }
 0x7e7   : > { %4707 = vmatprep.subr.bf16.mxu0 %v5266_v8 }
 0x7e8   : > { %v4692_v5 = vpop.f32.mrf.mxu1 }
 0x7e9   : > { %v5085_v5 = vld [vmem:[%s6034_s8 + $0x30] sm:$0xff]   ;;  %s6043_s8 = sld [smem:[#allocation14_spill]] }
 0x7ea   : > { %v5629_v6 = vpop.f32.mrf.mxu1  ;;  %4708 = vmatpush3.bf16.msra.mxu0 %v5079_v4 }
 0x7eb   : > { %4721 = vmatprep.subr.bf16.mxu0 %v5266_v8 }
 0x7ec   : > { %v4703_v7 = vpop.f32.mrf.mxu1 }
 0x7ed   : > { %4710 = vmatmul.mubr.msk.bf16.vlgmr.msra.gmra.mxu0 %vm1004_vm0, %v5525_v23 }
 0x7ee   : > { %v1747_v9 = vpop.f32.mrf.mxu1  ;;  %4725 = vmatprep.mubr.msk.bf16.mxu0 %vm5267_vm1, %v5266_v8  ;;  %4722 = vmatpush3.bf16.msra.mxu0 %v5080_v33 }
 0x7ef   : > { %4723 = vmatprep.subr.bf16.mxu0 %v5266_v8 }
 0x7f0   : > { %v4704_v10 = vpop.f32.mrf.mxu1 }
 0x7f2   : > { %v1874_v12 = vpop.f32.mrf.mxu1  ;;  %4724 = vmatpush3.bf16.msra.mxu0 %v5081_v34 }
 0x7f3   : > { %v1875_v14 = vadd.f32 %v4317_v11, %v1874_v12  ;;  %4735 = vmatprep.subr.bf16.mxu0 %v5266_v8 }
 0x7f4   : > { %v4719_v15 = vpop.f32.mrf.mxu1 }
 0x7f5   : > { %v1946_v16 = vpack.c.bf16 %v1875_v14, %v1875_v14  ;;  %4726 = vmatmul.mubr.msk.bf16.vlgmr.msra.gmra.mxu0 %vm1004_vm0, %v5512_v13 }
 0x7f6   : > { %v1877_v17 = vpop.f32.mrf.mxu1  ;;  %4737 = vmatprep.mubr.msk.bf16.mxu0 %vm5267_vm1, %v5266_v8 }
 0x7f7   : > { %v1951_v18 = vsel %vm1234_vm2, %v1946_v16, 0 }
 0x7f8   : > { %v4720_v20 = vpop.f32.mrf.mxu1  ;;  %4730 = vmatpush3.bf16.xpose.msra.mxu1 %v1951_v18 }
 0x7f9   : > { %4741 = vmatprep.subr.bf16.mxu1 %v5266_v8  ;;  %v4348_v20 = vld [vmem:[%s5322_s14 + $0x3] ss:$0 sm:$0xff] }
 0x8a5   : > { %v5639_v21 = vpop.f32.mrf.mxu0 }
 0x8a6   : > { %v1745_v12 = vadd.f32 %v5629_v6, %v5639_v21 }
 0x8a7   : > { %v4697_v22 = vpop.f32.mrf.mxu0 }
 0x8a9   : > { %v1701_v24 = vpop.f32.mrf.mxu0 }
 0x8ab   : > { %v4698_v25 = vpop.f32.mrf.mxu0 }
 0x8ad   : > { %v1809_v27 = vpop.f32.mrf.mxu0 }
 0x8ae   : > { %v1810_v28 = vadd.f32 %v4308_v26, %v1809_v27  ;;  %v4339_v27 = vld [vmem:[%s6035_s3 + $0x3] ss:$0 sm:$0xff]  ;;  %s6041_s3 = sld [smem:[#allocation13_spill]] }
 0x8af   : > { %v4711_v29 = vpop.f32.mrf.mxu0 }
 0x8b0   : > { %v1945_v30 = vpack.c.bf16 %v1810_v28, %v1810_v28 }
 0x8b1   : > { %v1812_v31 = vpop.f32.mrf.mxu0 }
 0x8b2   : > { %4732 = vmatmul.mubr.msk.bf16.vlgmr.msra.gmra.mxu1 %vm1234_vm2, %v1945_v30  ;;  %v5086_v31 = vld [vmem:[%s5327_s19 + $0x38] sm:$0xff]  }
 0x8b3   : > { %v4712_v32 = vpop.f32.mrf.mxu0  ;;  %4743 = vmatprep.mubr.msk.bf16.mxu1 %vm5267_vm1, %v5266_v8  ;;  %4742 = vmatpush3.bf16.msra.mxu1 %v2061_v57  ;;  %v4366_v57 = vld [vmem:[%s6039_s12] ss:$0 sm:$0xff]  ;;  %s6047_s12 = sld [smem:[#allocation17_spill]] }
 0x8b4   : > { %4755 = vmatprep.subr.bf16.mxu1 %v5266_v8  ;;  %v5087_v32 = vld [vmem:[%s5327_s19 + $0x30] sm:$0xff]  }
 0x8b5   : > { %v1939_v49 = vpop.f32.mrf.mxu0 }
 0x8b6   : > { %v1940_v50 = vadd.f32 %v4326_v48, %v1939_v49 }
 0x8b7   : > { %v4727_v51 = vpop.f32.mrf.mxu0 }
 0x8b8   : > { %v2007_v52 = vpack.c.bf16 %v1940_v50, %v1940_v50 }
 0x8b9   : > { %v1942_v53 = vpop.f32.mrf.mxu0 }
 0x8ba   : > { %v2012_v54 = vsel %vm1305_vm3, %v2007_v52, 0  ;;  %v4363_v53 = vld [vmem:[%s5337_s30 + $0xc] sm:$0xf] }
 0x8bb   : > { %v4728_v55 = vpop.f32.mrf.mxu0  ;;  %4736 = vmatpush3.bf16.msra.mxu0 %v2012_v54  ;;  %v2415_v54 = vsel %vm1305_vm3, %v4363_v53, 0 }
 0x8bc   : > { %4747 = vmatprep.subr.bf16.mxu0 %v5266_v8 }
 0x972   : > { %v1987_v35 = vpop.f32.mrf.mxu1 }
 0x973   : > { %v1993_v36 = vmul.f32 0.35355338, %v1987_v35 }
 0x974   : > { %v4733_v37 = vpop.f32.mrf.mxu1 }
 0x975   : > { %v1994_v38 = vadd.f32 %v5559_v43, %v1993_v36 }
 0x976   : > { %v1990_v39 = vpop.f32.mrf.mxu1 }
 0x977   : > { %v1995_v40 = vsel %vm1234_vm2, %v1994_v38, -inf }
 0x978   : > { %1996 = vmax.xlane.f32.xlu0 %v1995_v40  ;;  %v4734_v41 = vpop.f32.mrf.mxu1 }
 0xa01   : > { %v1997_v42 = vpop.xlane.xlu0 %1996 }
 0xa02   : > { %v1998_v44 = vsub.f32 %v1994_v38, %v1997_v42 }
 0xa04   : > { %v1999_v45 = vmul.f32 1.442695, %v1998_v44 }
 0xa06   : > { %5128 = vpow2.f32 %v1999_v45  ;;  %v4357_v45 = vld [vmem:[%s5332_s24 + $0x3] ss:$0 sm:$0xff] }
 0xa13   : > { %v5129_v46 = vpop.eup %5128 }
 0xa14   : > { %v2001_v47 = vsel %vm1234_vm2, %v5129_v46, 0.0 }
 0xa15   : > { %2002 = vadd.xlane.f32.xlu1 %v2001_v47 }
 0xa9e   : > { %v2003_v58 = vpop.xlane.xlu1 %2002 }
 0xa9f   : > { %5130 = vrcp.f32 %v2003_v58 }
 0xaac   : > { %v5131_v59 = vpop.eup %5130 }
 0xaad   : > { %v2005_v60 = vmul.f32 %v5131_v59, %v5129_v46  ;;  %v5088_v59 = vld [vmem:[%s5357_s27 + $0x8] sm:$0xff]  }
 0xaaf   : > { %v2006_v62 = vpack.c.bf16 %v2005_v60, %v2005_v60  ;;  %v2473_v60 = vmul.f32 %v4366_v57, %v5521_v19 }
 0xab1   : > { %4738 = vmatmul.mubr.msk.bf16.vlgmr.msra.gmra.mxu0 %vm1234_vm2, %v2006_v62  ;;  %v4367_v62 = vld [vmem:[%s6040_s0] ss:$0 sm:$0xff]  ;;  %s991_s0 = scalar_lea.vmem %s6042_s5, %s5489_s28  ;;  %s6044_s5 = sld [smem:[#allocation12_spill]] }
 0xab2   : > { %4748 = vmatpush3.bf16.msra.mxu0 %v5082_v61  ;;  %4751 = vmatprep.mubr.msk.bf16.mxu0 %vm5267_vm1, %v5266_v8  ;;  %s6045_s28 = sld [smem:[#allocation15_spill]] }
 0xab3   : > { %4749 = vmatprep.subr.bf16.mxu0 %v5266_v8 }
 0xab6   : > { %4750 = vmatpush3.bf16.msra.mxu0 %v5083_v63  ;;  %v5089_v63 = vld [vmem:[%s5357_s27] sm:$0xff]  }
 0xab7   : > { %4763 = vmatprep.subr.bf16.mxu0 %v5266_v8 }
 0xab9   : > { %4752 = vmatmul.mubr.msk.bf16.vlgmr.msra.gmra.mxu0 %vm1004_vm0, %v5525_v23 }
 0xaba   : > { %4767 = vmatprep.mubr.msk.bf16.mxu0 %vm5267_vm1, %v5266_v8  ;;  %4764 = vmatpush3.bf16.msra.mxu0 %v5086_v31 }
 0xabb   : > { %4765 = vmatprep.subr.bf16.mxu0 %v5266_v8 }
 0xabe   : > { %4766 = vmatpush3.bf16.msra.mxu0 %v5087_v32  ;;  %v5092_v32 = vld [vmem:[%s5357_s27 + $0x18] sm:$0xff]  }
 0xabf   : > { %4777 = vmatprep.subr.bf16.mxu0 %v5266_v8 }
 0xac1   : > { %4768 = vmatmul.mubr.msk.bf16.vlgmr.msra.gmra.mxu0 %vm1004_vm0, %v5512_v13 }
 0xac2   : > { %4779 = vmatprep.mubr.msk.bf16.mxu0 %vm5267_vm1, %v5266_v8 }
 0xb71   : > { %v2048_v0 = vpop.f32.mrf.mxu0 }
 0xb72   : > { %v2054_v2 = vpack.c.bf16 %v2048_v0, %v2048_v0  ;;  %v2481_v0 = vadd.f32 %v4367_v62, %v2473_v60 }
 0xb73   : > { %v4739_v3 = vpop.f32.mrf.mxu0 }
 0xb74   : > { %4744 = vmatmul.mubr.msk.bf16.vlgmr.msra.gmra.mxu1 %vm1234_vm2, %v2054_v2  ;;  %v5090_v2 = vld [vmem:[%s6041_s3 + $0x8] sm:$0xff]  }
 0xb75   : > { %v2051_v4 = vpop.f32.mrf.mxu0  ;;  %4756 = vmatpush3.bf16.msra.mxu1 %v5084_v1  ;;  %4759 = vmatprep.mubr.msk.bf16.mxu1 %vm5267_vm1, %v5266_v8  ;;  %v5721_v1 = vpack.c.bf16 %v2481_v0, %v2481_v0  ;;  %v5096_v0 = vld [vmem:[%s6041_s3 + $0x18] sm:$0xff]  }
 0xb76   : > { %4757 = vmatprep.subr.bf16.mxu1 %v5266_v8 }
 0xb77   : > { %v4740_v7 = vpop.f32.mrf.mxu0 }
 0xb79   : > { %v2163_v23 = vpop.f32.mrf.mxu0  ;;  %4758 = vmatpush3.bf16.msra.mxu1 %v5085_v5  ;;  %v1001_v5 = vld [vmem:[%s991_s0] sm:$0xff]  ;;  %s6046_s0 = sld [smem:[#allocation16_spill]] }
 0xb7a   : > { %4771 = vmatprep.subr.bf16.mxu1 %v5266_v8  ;;  %v2164_v6 = vadd.f32 %v4339_v27, %v2163_v23  ;;  %v5091_v23 = vld [vmem:[%s6041_s3] sm:$0xff]  }
 0xb7b   : > { %v4753_v9 = vpop.f32.mrf.mxu0 }
 0xb7c   : > { %4760 = vmatmul.mubr.msk.bf16.vlgmr.msra.gmra.mxu1 %vm1004_vm0, %v5512_v13  ;;  %v2299_v21 = vpack.c.bf16 %v2164_v6, %v2164_v6 }
 0xb7d   : > { %v2166_v10 = vpop.f32.mrf.mxu0  ;;  %4773 = vmatprep.mubr.msk.bf16.mxu1 %vm5267_vm1, %v5266_v8 }
 0xb7e   : > { %v5736_v10 = vpack.c.bf16 %v1001_v5, %v1001_v5 }
 0xb7f   : > { %v4754_v11 = vpop.f32.mrf.mxu0  ;;  %v4376_v53 = vld [vmem:[%s6046_s0] ss:$0 sm:$0xff] }
 0xb81   : > { %v2293_v46 = vpop.f32.mrf.mxu0 }
 0xb82   : > { %v2294_v47 = vadd.f32 %v4357_v45, %v2293_v46 }
 0xb83   : > { %v4769_v48 = vpop.f32.mrf.mxu0 }
 0xb84   : > { %v2361_v49 = vpack.c.bf16 %v2294_v47, %v2294_v47 }
 0xb85   : > { %v2296_v50 = vpop.f32.mrf.mxu0 }
 0xb86   : > { %v2366_v51 = vsel %vm1305_vm3, %v2361_v49, 0 }
 0xb87   : > { %v4770_v52 = vpop.f32.mrf.mxu0  ;;  %4778 = vmatpush3.bf16.msra.mxu0 %v2366_v51 }
 0xb88   : > { %4789 = vmatprep.subr.bf16.mxu0 %v5266_v8 }
 0xc34   : > { %v2097_v14 = vpop.f32.mrf.mxu1 }
 0xc35   : > { %v5686_v15 = vadd.f32 %v2097_v14, %v1745_v12 }
 0xc36   : > { %v4745_v16 = vpop.f32.mrf.mxu1 }
 0xc38   : > { %v2100_v17 = vpop.f32.mrf.mxu1 }
 0xc3a   : > { %v4746_v18 = vpop.f32.mrf.mxu1 }
 0xc3c   : > { %v2228_v22 = vpop.f32.mrf.mxu1 }
 0xc3d   : > { %v2229_v24 = vadd.f32 %v4348_v20, %v2228_v22 }
 0xc3e   : > { %v4761_v25 = vpop.f32.mrf.mxu1 }
 0xc3f   : > { %v2300_v26 = vpack.c.bf16 %v2229_v24, %v2229_v24  ;;  %v4372_v25 = vld [vmem:[%s6043_s8] ss:$0 sm:$0xff] }
 0xc40   : > { %v2231_v28 = vpop.f32.mrf.mxu1 }
 0xc41   : > { %v2305_v29 = vsel %vm1234_vm2, %v2300_v26, 0 }
 0xc42   : > { %v4762_v30 = vpop.f32.mrf.mxu1  ;;  %4772 = vmatpush3.bf16.xpose.msra.mxu1 %v2305_v29 }
 0xc43   : > { %4783 = vmatprep.subr.bf16.mxu1 %v5266_v8  ;;  %v4368_v30 = vld [vmem:[%s6044_s5] ss:$0 sm:$0xff] }
 0xc49   : > { %4774 = vmatmul.mubr.msk.bf16.vlgmr.msra.gmra.mxu1 %vm1234_vm2, %v2299_v21 }
 0xc4a   : > { %4785 = vmatprep.mubr.msk.bf16.mxu1 %vm5267_vm1, %v5266_v8  ;;  %4784 = vmatpush3.bf16.msra.mxu1 %v2415_v54 }
 0xc4b   : > { %4797 = vmatprep.subr.bf16.mxu1 %v5266_v8 }
 0xd09   : > { %v2341_v33 = vpop.f32.mrf.mxu1 }
 0xd0a   : > { %v2347_v34 = vmul.f32 0.35355338, %v2341_v33 }
 0xd0b   : > { %v4775_v35 = vpop.f32.mrf.mxu1 }
 0xd0c   : > { %v2348_v36 = vadd.f32 %v5559_v43, %v2347_v34  ;;  %v5093_v34 = vld [vmem:[%s5357_s27 + $0x10] sm:$0xff]   ;;  %v5094_v35 = vld [vmem:[%s6045_s28 + $0x8] sm:$0xff]  }
 0xd0d   : > { %v2344_v37 = vpop.f32.mrf.mxu1 }
 0xd0e   : > { %v2349_v38 = vsel %vm1234_vm2, %v2348_v36, -inf }
 0xd0f   : > { %2350 = vmax.xlane.f32.xlu0 %v2349_v38  ;;  %v4776_v39 = vpop.f32.mrf.mxu1 }
 0xd98   : > { %v2351_v40 = vpop.xlane.xlu0 %2350 }
 0xd99   : > { %v2352_v41 = vsub.f32 %v2348_v36, %v2351_v40  ;;  %v5095_v36 = vld [vmem:[%s6045_s28] sm:$0xff]  }
 0xd9b   : > { %v2353_v42 = vmul.f32 1.442695, %v2352_v41 }
 0xd9d   : > { %5132 = vpow2.f32 %v2353_v42 }
 0xdaa   : > { %v5133_v13 = vpop.eup %5132 }
 0xdab   : > { %v2355_v44 = vsel %vm1234_vm2, %v5133_v13, 0.0 }
 0xdac   : > { %2356 = vadd.xlane.f32.xlu1 %v2355_v44 }
 0xe35   : > { %v2357_v55 = vpop.xlane.xlu1 %2356 }
 0xe36   : > { %5134 = vrcp.f32 %v2357_v55 }
 0xe43   : > { %v5135_v56 = vpop.eup %5134 }
 0xe44   : > { %v2359_v58 = vmul.f32 %v5135_v56, %v5133_v13 }
 0xe46   : > { %v2360_v61 = vpack.c.bf16 %v2359_v58, %v2359_v58 }
 0xe48   : > { %4780 = vmatmul.mubr.msk.bf16.vlgmr.msra.gmra.mxu0 %vm1234_vm2, %v2360_v61 }
 0xe49   : > { %4790 = vmatpush3.bf16.msra.mxu0 %v5088_v59  ;;  %4793 = vmatprep.mubr.msk.bf16.mxu0 %vm5267_vm1, %v5266_v8 }
 0xe4a   : > { %4791 = vmatprep.subr.bf16.mxu0 %v5266_v8 }
 0xe4d   : > { %4792 = vmatpush3.bf16.msra.mxu0 %v5089_v63 }
 0xe4e   : > { %4805 = vmatprep.subr.bf16.mxu0 %v5266_v8 }
 0xe50   : > { %4794 = vmatmul.mubr.msk.bf16.vlgmr.msra.gmra.mxu0 %vm1004_vm0, %v5721_v1 }
 0xe51   : > { %4809 = vmatprep.mubr.msk.bf16.mxu0 %vm5267_vm1, %v5266_v8  ;;  %4806 = vmatpush3.bf16.msra.mxu0 %v5094_v35 }
 0xe52   : > { %4807 = vmatprep.subr.bf16.mxu0 %v5266_v8 }
 0xe55   : > { %4808 = vmatpush3.bf16.msra.mxu0 %v5095_v36 }
 0xe56   : > { %4819 = vmatprep.subr.bf16.mxu0 %v5266_v8 }
 0xe58   : > { %4810 = vmatmul.mubr.msk.bf16.vlgmr.msra.gmra.mxu0 %vm1004_vm0, %v5736_v10 }
 0xe59   : > { %4821 = vmatprep.mubr.msk.bf16.mxu0 %vm5267_vm1, %v5266_v8 }
 0xf08   : > { %v2402_v19 = vpop.f32.mrf.mxu0 }
 0xf09   : > { %v2408_v3 = vpack.c.bf16 %v2402_v19, %v2402_v19 }
 0xf0a   : > { %v4781_v4 = vpop.f32.mrf.mxu0 }
 0xf0b   : > { %4786 = vmatmul.mubr.msk.bf16.vlgmr.msra.gmra.mxu1 %vm1234_vm2, %v2408_v3 }
 0xf0c   : > { %v2405_v7 = vpop.f32.mrf.mxu0  ;;  %4798 = vmatpush3.bf16.msra.mxu1 %v5090_v2  ;;  %4801 = vmatprep.mubr.msk.bf16.mxu1 %vm5267_vm1, %v5266_v8  ;;  %v5097_v2 = vld [vmem:[%s6041_s3 + $0x10] sm:$0xff]  }
 0xf0d   : > { %4799 = vmatprep.subr.bf16.mxu1 %v5266_v8 }
 0xf0e   : > { %v4782_v9 = vpop.f32.mrf.mxu0 }
 0xf10   : > { %v2544_v11 = vpop.f32.mrf.mxu0  ;;  %4800 = vmatpush3.bf16.msra.mxu1 %v5091_v23  ;;  %v4396_v23 = vld [vmem:[%s6043_s8 + $0x1] ss:$0 sm:$0xff] }
 0xf11   : > { %4813 = vmatprep.subr.bf16.mxu1 %v5266_v8 }
 0xf12   : > { %v4795_v12 = vpop.f32.mrf.mxu0 }
 0xf13   : > { %4802 = vmatmul.mubr.msk.bf16.vlgmr.msra.gmra.mxu1 %vm1004_vm0, %v5736_v10 }
 0xf14   : > { %v2547_v14 = vpop.f32.mrf.mxu0  ;;  %4815 = vmatprep.mubr.msk.bf16.mxu1 %vm5267_vm1, %v5266_v8 }
 0xf16   : > { %v4796_v16 = vpop.f32.mrf.mxu0 }
 0xf17   : > { %v4387_v16 = vld [vmem:[%s6044_s5 + $0x1] ss:$0 sm:$0xff] }
 0xf18   : > { %v2673_v54 = vpop.f32.mrf.mxu0 }
 0xf19   : > { %v2674_v55 = vadd.f32 %v4376_v53, %v2673_v54  ;;  %v5101_v54 = vld [vmem:[%s6041_s3 + $0x20] sm:$0xff]  }
 0xf1a   : > { %v4811_v56 = vpop.f32.mrf.mxu0 }
 0xf1b   : > { %v2741_v57 = vpack.c.bf16 %v2674_v55, %v2674_v55  ;;  %v5102_v56 = vld [vmem:[%s5357_s27 + $0x28] sm:$0xff]  }
 0xf1c   : > { %v2676_v58 = vpop.f32.mrf.mxu0 }
 0xf1d   : > { %v2746_v59 = vsel %vm1305_vm3, %v2741_v57, 0 }
 0xf1e   : > { %v4812_v60 = vpop.f32.mrf.mxu0  ;;  %4820 = vmatpush3.bf16.msra.mxu0 %v2746_v59 }
 0xf1f   : > { %4833 = vmatprep.subr.bf16.mxu0 %v5266_v8  ;;  %v5103_v60 = vld [vmem:[%s5357_s27 + $0x20] sm:$0xff]  }
 0xfcb   : > { %v2451_v17 = vpop.f32.mrf.mxu1 }
 0xfcc   : > { %v5744_v18 = vadd.f32 %v2451_v17, %v5686_v15  ;;  %v2545_v15 = vadd.f32 %v4368_v30, %v2544_v11 }
 0xfcd   : > { %v4787_v20 = vpop.f32.mrf.mxu1 }
 0xfce   : > { %v2679_v33 = vpack.c.bf16 %v2545_v15, %v2545_v15 }
 0xfcf   : > { %v2454_v22 = vpop.f32.mrf.mxu1 }
 0xfd1   : > { %v4788_v24 = vpop.f32.mrf.mxu1 }
 0xfd3   : > { %v2610_v26 = vpop.f32.mrf.mxu1 }
 0xfd4   : > { %v2611_v27 = vadd.f32 %v4372_v25, %v2610_v26  ;;  %v5098_v26 = vld [vmem:[%s6045_s28 + $0x18] sm:$0xff]  }
 0xfd5   : > { %v4803_v28 = vpop.f32.mrf.mxu1 }
 0xfd6   : > { %v2680_v29 = vpack.c.bf16 %v2611_v27, %v2611_v27  ;;  %v5099_v27 = vld [vmem:[%s6045_s28 + $0x10] sm:$0xff]  }
 0xfd7   : > { %v2613_v6 = vpop.f32.mrf.mxu1 }
 0xfd8   : > { %v2685_v21 = vsel %vm1234_vm2, %v2680_v29, 0 }
 0xfd9   : > { %v4804_v31 = vpop.f32.mrf.mxu1  ;;  %4814 = vmatpush3.bf16.xpose.msra.mxu1 %v2685_v21 }
 0xfda   : > { %4825 = vmatprep.subr.bf16.mxu1 %v5266_v8 }
 0xfe0   : > { %4816 = vmatmul.mubr.msk.bf16.vlgmr.msra.gmra.mxu1 %vm1234_vm2, %v2679_v33 }
 0xfe1   : > { %4826 = vmatpush3.bf16.msra.mxu1 %v5092_v32  ;;  %4829 = vmatprep.mubr.msk.bf16.mxu1 %vm5267_vm1, %v5266_v8  ;;  %v4405_v32 = vld [vmem:[%s6046_s0 + $0x1] ss:$0 sm:$0xff] }
 0xfe2   : > { %4827 = vmatprep.subr.bf16.mxu1 %v5266_v8 }
 0xfe5   : > { %4828 = vmatpush3.bf16.msra.mxu1 %v5093_v34 }
 0xfe6   : > { %4841 = vmatprep.subr.bf16.mxu1 %v5266_v8 }
 0xfe8   : > { %4830 = vmatmul.mubr.msk.bf16.vlgmr.msra.gmra.mxu1 %vm1004_vm0, %v5721_v1 }
 0xfe9   : > { %4845 = vmatprep.mubr.msk.bf16.mxu1 %vm5267_vm1, %v5266_v8  ;;  %4842 = vmatpush3.bf16.msra.mxu1 %v5098_v26 }
 0xfea   : > { %4843 = vmatprep.subr.bf16.mxu1 %v5266_v8 }
 0xfed   : > { %4844 = vmatpush3.bf16.msra.mxu1 %v5099_v27 }
 0xfee   : > { %4855 = vmatprep.subr.bf16.mxu1 %v5266_v8 }
 0xff0   : > { %4846 = vmatmul.mubr.msk.bf16.vlgmr.msra.gmra.mxu1 %vm1004_vm0, %v5736_v10 }
 0xff1   : > { %4857 = vmatprep.mubr.msk.bf16.mxu1 %vm5267_vm1, %v5266_v8 }
0x10a0   : > { %v2721_v37 = vpop.f32.mrf.mxu1 }
0x10a1   : > { %v2727_v38 = vmul.f32 0.35355338, %v2721_v37 }
0x10a2   : > { %v4817_v39 = vpop.f32.mrf.mxu1 }
0x10a3   : > { %v2728_v40 = vadd.f32 %v5559_v43, %v2727_v38 }
0x10a4   : > { %v2724_v41 = vpop.f32.mrf.mxu1 }
0x10a5   : > { %v2729_v42 = vsel %vm1234_vm2, %v2728_v40, -inf }
0x10a6   : > { %2730 = vmax.xlane.f32.xlu0 %v2729_v42  ;;  %v4818_v13 = vpop.f32.mrf.mxu1 }
0x10a8   : > { %v2849_v44 = vpop.f32.mrf.mxu1 }
0x10a9   : > { %v2850_v24 = vadd.f32 %v4387_v16, %v2849_v44  ;;  %v4411_v44 = vld [vmem:[%s6047_s12 + $0x4] sm:$0xf] }
0x10aa   : > { %v4831_v45 = vpop.f32.mrf.mxu1 }
0x10ab   : > { %v2985_v25 = vpack.c.bf16 %v2850_v24, %v2850_v24  ;;  %v3101_v45 = vsel %vm1305_vm3, %v4411_v44, 0 }
0x10ac   : > { %v2852_v46 = vpop.f32.mrf.mxu1 }
0x10ae   : > { %v4832_v47 = vpop.f32.mrf.mxu1 }
0x10b0   : > { %v2979_v33 = vpop.f32.mrf.mxu1 }
0x10b1   : > { %v2980_v34 = vadd.f32 %v4405_v32, %v2979_v33 }
0x10b2   : > { %v4847_v35 = vpop.f32.mrf.mxu1 }
0x10b3   : > { %v3047_v36 = vpack.c.bf16 %v2980_v34, %v2980_v34 }
0x10b4   : > { %v2982_v37 = vpop.f32.mrf.mxu1 }
0x10b5   : > { %v3052_v38 = vsel %vm1305_vm3, %v3047_v36, 0 }
0x10b6   : > { %v4848_v39 = vpop.f32.mrf.mxu1  ;;  %4856 = vmatpush3.bf16.msra.mxu1 %v3052_v38 }
0x10b7   : > { %4867 = vmatprep.subr.bf16.mxu1 %v5266_v8 }
0x112f   : > { %v2731_v48 = vpop.xlane.xlu0 %2730 }
0x1130   : > { %v2732_v49 = vsub.f32 %v2728_v40, %v2731_v48  ;;  %v2789_v48 = vld [vmem:[%s6047_s12] sm:$0xf] }
0x1132   : > { %v2733_v50 = vmul.f32 1.442695, %v2732_v49 }
0x1134   : > { %5136 = vpow2.f32 %v2733_v50 }
0x1141   : > { %v5137_v51 = vpop.eup %5136 }
0x1142   : > { %v2735_v52 = vsel %vm1234_vm2, %v5137_v51, 0.0 }
0x1143   : > { %2736 = vadd.xlane.f32.xlu1 %v2735_v52  ;;  %v5100_v52 = vld [vmem:[%s6041_s3 + $0x28] sm:$0xff]  }
0x11cc   : > { %v2737_v61 = vpop.xlane.xlu1 %2736 }
0x11cd   : > { %5138 = vrcp.f32 %v2737_v61 }
0x11da   : > { %v5139_v62 = vpop.eup %5138 }
0x11db   : > { %v2739_v63 = vmul.f32 %v5139_v62, %v5137_v51  ;;  %v3147_v51 = vsel %vm1305_vm3, %v2789_v48, 0  ;;  %v4443_v48 = vld [vmem:[%s6047_s12 + $0x8] sm:$0xf] }
0x11dd   : > { %v2740_v19 = vpack.c.bf16 %v2739_v63, %v2739_v63 }
0x11df   : > { %4822 = vmatmul.mubr.msk.bf16.vlgmr.msra.gmra.mxu0 %vm1234_vm2, %v2740_v19 }
0x11e0   : > { %4834 = vmatpush3.bf16.msra.mxu0 %v5096_v0  ;;  %4837 = vmatprep.mubr.msk.bf16.mxu0 %vm5267_vm1, %v5266_v8 }
0x11e1   : > { %4835 = vmatprep.subr.bf16.mxu0 %v5266_v8 }
0x11e4   : > { %4836 = vmatpush3.bf16.msra.mxu0 %v5097_v2  ;;  %v4428_v2 = vld [vmem:[%s6043_s8 + $0x2] ss:$0 sm:$0xff] }
0x11e5   : > { %4849 = vmatprep.subr.bf16.mxu0 %v5266_v8 }
0x11e7   : > { %4838 = vmatmul.mubr.msk.bf16.vlgmr.msra.gmra.mxu0 %vm1004_vm0, %v5736_v10 }
0x11e8   : > { %4851 = vmatprep.mubr.msk.bf16.mxu0 %vm5267_vm1, %v5266_v8 }
0x129f   : > { %v5786_v3 = vpop.f32.mrf.mxu0 }
0x12a0   : > { %v2788_v53 = vpack.c.bf16 %v5786_v3, %v5786_v3 }
0x12a1   : > { %v4823_v4 = vpop.f32.mrf.mxu0 }
0x12a3   : > { %v2785_v5 = vpop.f32.mrf.mxu0 }
0x12a5   : > { %v4824_v7 = vpop.f32.mrf.mxu0 }
0x12a7   : > { %v2914_v9 = vpop.f32.mrf.mxu0 }
0x12a8   : > { %v2915_v11 = vadd.f32 %v4396_v23, %v2914_v9 }
0x12a9   : > { %v4839_v12 = vpop.f32.mrf.mxu0 }
0x12aa   : > { %v2986_v14 = vpack.c.bf16 %v2915_v11, %v2915_v11 }
0x12ab   : > { %v2917_v17 = vpop.f32.mrf.mxu0 }
0x12ac   : > { %v2991_v20 = vsel %vm1234_vm2, %v2986_v14, 0 }
0x12ad   : > { %v4840_v22 = vpop.f32.mrf.mxu0  ;;  %4850 = vmatpush3.bf16.xpose.msra.mxu0 %v2991_v20  ;;  %v4419_v20 = vld [vmem:[%s6044_s5 + $0x2] ss:$0 sm:$0xff] }
0x12ae   : > { %4861 = vmatprep.subr.bf16.mxu0 %v5266_v8 }
0x12b4   : > { %4852 = vmatmul.mubr.msk.bf16.vlgmr.msra.gmra.mxu0 %vm1234_vm2, %v2985_v25 }
0x12b5   : > { %4863 = vmatprep.mubr.msk.bf16.mxu0 %vm5267_vm1, %v5266_v8  ;;  %4862 = vmatpush3.bf16.msra.mxu0 %v3101_v45 }
0x12b6   : > { %4873 = vmatprep.subr.bf16.mxu0 %v5266_v8 }
0x1374   : > { %v3027_v28 = vpop.f32.mrf.mxu0 }
0x1375   : > { %v3033_v29 = vmul.f32 0.35355338, %v3027_v28 }
0x1376   : > { %v4853_v30 = vpop.f32.mrf.mxu0 }
0x1377   : > { %v3034_v6 = vadd.f32 %v5559_v43, %v3033_v29  ;;  %v5104_v29 = vld [vmem:[%s6045_s28 + $0x28] sm:$0xff]   ;;  %v5105_v30 = vld [vmem:[%s6045_s28 + $0x20] sm:$0xff]  }
0x1378   : > { %v3030_v21 = vpop.f32.mrf.mxu0 }
0x1379   : > { %v3035_v31 = vsel %vm1234_vm2, %v3034_v6, -inf }
0x137a   : > { %3036 = vmax.xlane.f32.xlu0 %v3035_v31  ;;  %v4854_v15 = vpop.f32.mrf.mxu0 }
0x137b   : > { %v5862_v15 = vld [vmem:[%s5556_s2] ss:$0 sm:$0xff]  ;;  %s6048_s2 = sld [smem:[#allocation9_spill]] }
0x1403   : > { %v3037_v43 = vpop.xlane.xlu0 %3036 }
0x1404   : > { %v3038_v40 = vsub.f32 %v3034_v6, %v3037_v43 }
0x1406   : > { %v3039_v41 = vmul.f32 1.442695, %v3038_v40  ;;  %v4437_v40 = vld [vmem:[%s6046_s0 + $0x2] ss:$0 sm:$0xff] }
0x1408   : > { %5140 = vpow2.f32 %v3039_v41 }
0x1415   : > { %v5141_v42 = vpop.eup %5140 }
0x1416   : > { %v3041_v13 = vsel %vm1234_vm2, %v5141_v42, 0.0 }
0x1417   : > { %3042 = vadd.xlane.f32.xlu1 %v3041_v13 }
0x14a0   : > { %v3043_v46 = vpop.xlane.xlu1 %3042 }
0x14a1   : > { %5142 = vrcp.f32 %v3043_v46 }
0x14ae   : > { %v5143_v47 = vpop.eup %5142 }
0x14af   : > { %v3045_v49 = vmul.f32 %v5143_v47, %v5141_v42 }
0x14b1   : > { %v3046_v50 = vpack.c.bf16 %v3045_v49, %v3045_v49  ;;  %v3500_v49 = vsel %vm1305_vm3, %v4443_v48, 0 }
0x14b3   : > { %4858 = vmatmul.mubr.msk.bf16.vlgmr.msra.gmra.mxu1 %vm1234_vm2, %v3046_v50 }
0x14b4   : > { %4868 = vmatpush3.bf16.msra.mxu1 %v3147_v51  ;;  %4869 = vmatprep.mubr.msk.bf16.mxu1 %vm5267_vm1, %v5266_v8 }
0x14b5   : > { %4881 = vmatprep.subr.bf16.mxu1 %v5266_v8 }
0x14bb   : > { %4870 = vmatmul.mubr.msk.bf16.vlgmr.msra.gmra.mxu1 %vm1234_vm2, %v2788_v53  ;;  %v5106_v53 = vld [vmem:[%s5357_s27 + $0x38] sm:$0xff]  }
0x14bc   : > { %4882 = vmatpush3.bf16.msra.mxu1 %v5100_v52  ;;  %4885 = vmatprep.mubr.msk.bf16.mxu1 %vm5267_vm1, %v5266_v8 }
0x14bd   : > { %4883 = vmatprep.subr.bf16.mxu1 %v5266_v8 }
0x14c0   : > { %4884 = vmatpush3.bf16.msra.mxu1 %v5101_v54 }
0x14c1   : > { %4897 = vmatprep.subr.bf16.mxu1 %v5266_v8 }
0x14c3   : > { %4886 = vmatmul.mubr.msk.bf16.vlgmr.msra.gmra.mxu1 %vm1004_vm0, %v5736_v10 }
0x14c4   : > { %4899 = vmatprep.mubr.msk.bf16.mxu1 %vm5267_vm1, %v5266_v8 }
0x1573   : > { %v3088_v55 = vpop.f32.mrf.mxu1 }
0x1574   : > { %v3094_v57 = vpack.c.bf16 %v3088_v55, %v3088_v55  ;;  %v5107_v55 = vld [vmem:[%s5357_s27 + $0x30] sm:$0xff]  }
0x1575   : > { %v4859_v58 = vpop.f32.mrf.mxu1 }
0x1576   : > { %4864 = vmatmul.mubr.msk.bf16.vlgmr.msra.gmra.mxu0 %vm1234_vm2, %v3094_v57  ;;  %v5108_v57 = vld [vmem:[%s6041_s3 + $0x38] sm:$0xff]  }
0x1577   : > { %v3091_v59 = vpop.f32.mrf.mxu1  ;;  %4874 = vmatpush3.bf16.msra.mxu0 %v5102_v56  ;;  %4877 = vmatprep.mubr.msk.bf16.mxu0 %vm5267_vm1, %v5266_v8 }
0x1578   : > { %4875 = vmatprep.subr.bf16.mxu0 %v5266_v8 }
0x1579   : > { %v4860_v61 = vpop.f32.mrf.mxu1 }
0x157a   : > { %v5109_v61 = vld [vmem:[%s6041_s3 + $0x30] sm:$0xff]   ;;  %s6050_s3 = sld [smem:[#allocation21_spill]] }
0x157b   : > { %v5837_v62 = vpop.f32.mrf.mxu1  ;;  %4876 = vmatpush3.bf16.msra.mxu0 %v5103_v60 }
0x157c   : > { %4889 = vmatprep.subr.bf16.mxu0 %v5266_v8 }
0x157d   : > { %v4871_v63 = vpop.f32.mrf.mxu1 }
0x157e   : > { %4878 = vmatmul.mubr.msk.bf16.vlgmr.msra.gmra.mxu0 %vm1004_vm0, %v5721_v1 }
0x157f   : > { %v3186_v0 = vpop.f32.mrf.mxu1  ;;  %4893 = vmatprep.mubr.msk.bf16.mxu0 %vm5267_vm1, %v5266_v8  ;;  %4890 = vmatpush3.bf16.msra.mxu0 %v5104_v29 }
0x1580   : > { %4891 = vmatprep.subr.bf16.mxu0 %v5266_v8 }
0x1581   : > { %v4872_v19 = vpop.f32.mrf.mxu1 }
0x1583   : > { %v3313_v3 = vpop.f32.mrf.mxu1  ;;  %4892 = vmatpush3.bf16.msra.mxu0 %v5105_v30 }
0x1584   : > { %v3314_v4 = vadd.f32 %v4428_v2, %v3313_v3  ;;  %4903 = vmatprep.subr.bf16.mxu0 %v5266_v8 }
0x1585   : > { %v4887_v5 = vpop.f32.mrf.mxu1 }
0x1586   : > { %v3385_v7 = vpack.c.bf16 %v3314_v4, %v3314_v4  ;;  %4894 = vmatmul.mubr.msk.bf16.vlgmr.msra.gmra.mxu0 %vm1004_vm0, %v5736_v10 }
0x1587   : > { %v3316_v23 = vpop.f32.mrf.mxu1  ;;  %4905 = vmatprep.mubr.msk.bf16.mxu0 %vm5267_vm1, %v5266_v8 }
0x1588   : > { %v3390_v9 = vsel %vm1234_vm2, %v3385_v7, 0 }
0x1589   : > { %v4888_v11 = vpop.f32.mrf.mxu1  ;;  %4898 = vmatpush3.bf16.xpose.msra.mxu1 %v3390_v9 }
0x158a   : > { %4909 = vmatprep.subr.bf16.mxu1 %v5266_v8  ;;  %v4459_v11 = vld [vmem:[%s6043_s8 + $0x3] ss:$0 sm:$0xff] }
0x1636   : > { %v5847_v12 = vpop.f32.mrf.mxu0 }
0x1637   : > { %v3184_v3 = vadd.f32 %v5837_v62, %v5847_v12 }
0x1638   : > { %v4865_v14 = vpop.f32.mrf.mxu0 }
0x163a   : > { %v3140_v16 = vpop.f32.mrf.mxu0 }
0x163c   : > { %v4866_v17 = vpop.f32.mrf.mxu0 }
0x163e   : > { %v3248_v22 = vpop.f32.mrf.mxu0 }
0x163f   : > { %v3249_v24 = vadd.f32 %v4419_v20, %v3248_v22  ;;  %v4450_v22 = vld [vmem:[%s6044_s5 + $0x3] ss:$0 sm:$0xff] }
0x1640   : > { %v4879_v25 = vpop.f32.mrf.mxu0 }
0x1641   : > { %v3384_v26 = vpack.c.bf16 %v3249_v24, %v3249_v24 }
0x1642   : > { %v3251_v27 = vpop.f32.mrf.mxu0 }
0x1643   : > { %4900 = vmatmul.mubr.msk.bf16.vlgmr.msra.gmra.mxu1 %vm1234_vm2, %v3384_v26  ;;  %v5110_v27 = vld [vmem:[%s6045_s28 + $0x38] sm:$0xff]  }
0x1644   : > { %v4880_v28 = vpop.f32.mrf.mxu0  ;;  %4911 = vmatprep.mubr.msk.bf16.mxu1 %vm5267_vm1, %v5266_v8  ;;  %4910 = vmatpush3.bf16.msra.mxu1 %v3500_v49 }
0x1645   : > { %4923 = vmatprep.subr.bf16.mxu1 %v5266_v8  ;;  %v5111_v28 = vld [vmem:[%s6045_s28 + $0x30] sm:$0xff]  }
0x1646   : > { %v3378_v41 = vpop.f32.mrf.mxu0 }
0x1647   : > { %v3379_v42 = vadd.f32 %v4437_v40, %v3378_v41 }
0x1648   : > { %v4895_v13 = vpop.f32.mrf.mxu0 }
0x1649   : > { %v3446_v44 = vpack.c.bf16 %v3379_v42, %v3379_v42 }
0x164a   : > { %v3381_v45 = vpop.f32.mrf.mxu0 }
0x164b   : > { %v3451_v46 = vsel %vm1305_vm3, %v3446_v44, 0  ;;  %v4474_v44 = vld [vmem:[%s6047_s12 + $0xc] sm:$0xf] }
0x164c   : > { %v4896_v47 = vpop.f32.mrf.mxu0  ;;  %4904 = vmatpush3.bf16.msra.mxu0 %v3451_v46  ;;  %v3854_v45 = vsel %vm1305_vm3, %v4474_v44, 0 }
0x164d   : > { %4915 = vmatprep.subr.bf16.mxu0 %v5266_v8 }
0x1703   : > { %v3426_v6 = vpop.f32.mrf.mxu1 }
0x1704   : > { %v3432_v21 = vmul.f32 0.35355338, %v3426_v6 }
0x1705   : > { %v4901_v31 = vpop.f32.mrf.mxu1 }
0x1706   : > { %v3433_v32 = vadd.f32 %v5862_v15, %v3432_v21 }
0x1707   : > { %v3429_v33 = vpop.f32.mrf.mxu1 }
0x1708   : > { %v3434_v34 = vsel %vm1234_vm2, %v3433_v32, -inf }
0x1709   : > { %3435 = vmax.xlane.f32.xlu0 %v3434_v34  ;;  %v4902_v35 = vpop.f32.mrf.mxu1 }
0x1792   : > { %v3436_v36 = vpop.xlane.xlu0 %3435 }
0x1793   : > { %v3437_v37 = vsub.f32 %v3433_v32, %v3436_v36 }
0x1795   : > { %v3438_v38 = vmul.f32 1.442695, %v3437_v37 }
0x1797   : > { %5144 = vpow2.f32 %v3438_v38  ;;  %v4468_v38 = vld [vmem:[%s6046_s0 + $0x3] ss:$0 sm:$0xff]  ;;  %s6049_s0 = sld [smem:[#allocation18_spill]] }
0x17a4   : > { %v5145_v39 = vpop.eup %5144 }
0x17a5   : > { %v3440_v43 = vsel %vm1234_vm2, %v5145_v39, 0.0 }
0x17a6   : > { %3441 = vadd.xlane.f32.xlu1 %v3440_v43 }
0x182f   : > { %v3442_v50 = vpop.xlane.xlu1 %3441 }
0x1830   : > { %5146 = vrcp.f32 %v3442_v50 }
0x183d   : > { %v5147_v51 = vpop.eup %5146 }
0x183e   : > { %v3444_v52 = vmul.f32 %v5147_v51, %v5145_v39 }
0x1840   : > { %v3445_v54 = vpack.c.bf16 %v3444_v52, %v3444_v52 }
0x1842   : > { %4906 = vmatmul.mubr.msk.bf16.vlgmr.msra.gmra.mxu0 %vm1234_vm2, %v3445_v54 }
0x1843   : > { %4916 = vmatpush3.bf16.msra.mxu0 %v5106_v53  ;;  %4919 = vmatprep.mubr.msk.bf16.mxu0 %vm5267_vm1, %v5266_v8 }
0x1844   : > { %4917 = vmatprep.subr.bf16.mxu0 %v5266_v8 }
0x1847   : > { %4918 = vmatpush3.bf16.msra.mxu0 %v5107_v55  ;;  %v4365_v55 = vld [vmem:[%s6048_s2] ss:$0 sm:$0xff]  ;;  %s6051_s2 = sld [smem:[#allocation19_spill]] }
0x1848   : > { %4931 = vmatprep.subr.bf16.mxu0 %v5266_v8 }
0x184a   : > { %4920 = vmatmul.mubr.msk.bf16.vlgmr.msra.gmra.mxu0 %vm1004_vm0, %v5721_v1 }
0x184b   : > { %4935 = vmatprep.mubr.msk.bf16.mxu0 %vm5267_vm1, %v5266_v8  ;;  %4932 = vmatpush3.bf16.msra.mxu0 %v5110_v27 }
0x184c   : > { %4933 = vmatprep.subr.bf16.mxu0 %v5266_v8 }
0x184f   : > { %4934 = vmatpush3.bf16.msra.mxu0 %v5111_v28 }
0x1850   : > { %4945 = vmatprep.subr.bf16.mxu0 %v5266_v8 }
0x1852   : > { %4936 = vmatmul.mubr.msk.bf16.vlgmr.msra.gmra.mxu0 %vm1004_vm0, %v5736_v10 }
0x1853   : > { %4947 = vmatprep.mubr.msk.bf16.mxu0 %vm5267_vm1, %v5266_v8 }
0x1902   : > { %v3487_v56 = vpop.f32.mrf.mxu0 }
0x1903   : > { %v3493_v58 = vpack.c.bf16 %v3487_v56, %v3487_v56  ;;  %v2465_v56 = vadd.f32 %v4365_v55, %v5744_v18 }
0x1904   : > { %v4907_v59 = vpop.f32.mrf.mxu0 }
0x1905   : > { %4912 = vmatmul.mubr.msk.bf16.vlgmr.msra.gmra.mxu1 %vm1234_vm2, %v3493_v58  ;;  %v4476_v58 = vld [vmem:[%s6049_s0] ss:$0 sm:$0xff]  ;;  %v3905_v59 = vmul.f32 0.5, %v2465_v56  ;;  %s6052_s0 = sld [smem:[#allocation20_spill]] }
0x1906   : > { %v3490_v60 = vpop.f32.mrf.mxu0  ;;  %4924 = vmatpush3.bf16.msra.mxu1 %v5108_v57  ;;  %4927 = vmatprep.mubr.msk.bf16.mxu1 %vm5267_vm1, %v5266_v8 }
0x1907   : > { %4925 = vmatprep.subr.bf16.mxu1 %v5266_v8 }
0x1908   : > { %v4908_v63 = vpop.f32.mrf.mxu0 }
0x190a   : > { %v3602_v1 = vpop.f32.mrf.mxu0  ;;  %4926 = vmatpush3.bf16.msra.mxu1 %v5109_v61 }
0x190b   : > { %4939 = vmatprep.subr.bf16.mxu1 %v5266_v8  ;;  %v3603_v62 = vadd.f32 %v4450_v22, %v3602_v1 }
0x190c   : > { %v4921_v0 = vpop.f32.mrf.mxu0 }
0x190d   : > { %4928 = vmatmul.mubr.msk.bf16.vlgmr.msra.gmra.mxu1 %vm1004_vm0, %v5736_v10  ;;  %v3738_v12 = vpack.c.bf16 %v3603_v62, %v3603_v62  ;;  %v5157_v0 = vld [vmem:[%s5493_s10] sm:$0xff]  ;;  %s6055_s10 = sld [smem:[#allocation24_spill]] }
0x190e   : > { %v3605_v19 = vpop.f32.mrf.mxu0  ;;  %4941 = vmatprep.mubr.msk.bf16.mxu1 %vm5267_vm1, %v5266_v8  ;;  %v4478_v62 = vld [vmem:[%s6052_s0] ss:$0 sm:$0xff] }
0x190f   : > { %v3906_v19 = vadd.f32 %v5157_v0, %v3905_v59 }
0x1910   : > { %v4922_v2 = vpop.f32.mrf.mxu0 }
0x1912   : > { %v3732_v39 = vpop.f32.mrf.mxu0 }
0x1913   : > { %v3733_v43 = vadd.f32 %v4468_v38, %v3732_v39 }
0x1914   : > { %v4937_v40 = vpop.f32.mrf.mxu0 }
0x1915   : > { %v3800_v41 = vpack.c.bf16 %v3733_v43, %v3733_v43  ;;  %v4483_v40 = vld [vmem:[%s6054_s4] ss:$0 sm:$0xff] }
0x1917   : > { %v3805_v42 = vsel %vm1305_vm3, %v3800_v41, 0 }
0x1918   : > { %4946 = vmatpush3.bf16.msra.mxu0 %v3805_v42 }
0x1919   : > { %4957 = vmatprep.subr.bf16.mxu0 %v5266_v8 }
0x19c5   : > { %v3536_v4 = vpop.f32.mrf.mxu1 }
0x19c6   : > { %v5897_v5 = vadd.f32 %v3536_v4, %v3184_v3 }
0x19c7   : > { %v4913_v7 = vpop.f32.mrf.mxu1 }
0x19c9   : > { %v3539_v23 = vpop.f32.mrf.mxu1 }
0x19cb   : > { %v4914_v9 = vpop.f32.mrf.mxu1 }
0x19cd   : > { %v3667_v14 = vpop.f32.mrf.mxu1 }
0x19ce   : > { %v3668_v16 = vadd.f32 %v4459_v11, %v3667_v14  ;;  %v5112_v14 = vld [vmem:[%s6050_s3 + $0x8] sm:$0xff]  }
0x19cf   : > { %v4929_v17 = vpop.f32.mrf.mxu1 }
0x19d0   : > { %v3739_v20 = vpack.c.bf16 %v3668_v16, %v3668_v16  ;;  %v5113_v16 = vld [vmem:[%s6050_s3] sm:$0xff]   ;;  %s4490_s3 = sshll.u32 %s5226_s22, 7  ;;  %s5268_s22 = smov [#allocation2]  }
0x19d1   : > { %v3670_v24 = vpop.f32.mrf.mxu1 }
0x19d2   : > { %v3744_v25 = vsel %vm1234_vm2, %v3739_v20, 0 }
0x19d3   : > { %v4930_v26 = vpop.f32.mrf.mxu1  ;;  %4940 = vmatpush3.bf16.xpose.msra.mxu1 %v3744_v25  ;;  %v4477_v25 = vld [vmem:[%s6051_s2] ss:$0 sm:$0xff]  ;;  %s978_s2 = sand.u32 1, %s5218_s16  }
0x19d4   : > { %4951 = vmatprep.subr.bf16.mxu1 %v5266_v8  ;;  %s4250_s0 = sshll.u32 %s978_s2, 3  ;;  %s4097_s4 = scalar_lea.sflag [#allocation3], %s978_s2 }
0x19d5   : > { %s980_s5 = scalar_lea.vmem [#allocation2], %s4250_s0  ;;  %s5162_s0 = sshll.u32 %s5268_s22, 4  ;;  %s5163_s0 = int_to_ptr.vmem [resolvable:$false] %s5162_s0 }
0x19d6   : > { %s4111_s8 = sshll.u32 %s980_s5, 4  ;;  %s5956_s8 = int_to_ptr.vmem [resolvable:$true] %s4111_s8 }
0x19d7   : > { %s5158_s12 = scalar_lea.vmem %s5956_s8, 128  ;;  %p5165_p1 = scmp.lt.s32.totalorder %s5956_s8, %s5163_s0 }
0x19d8   : > { %p5159_p12 = scmp.ne.s32.totalorder %s5956_s8, %s5158_s12 }
0x19da   : > { %4942 = vmatmul.mubr.msk.bf16.vlgmr.msra.gmra.mxu1 %vm1234_vm2, %v3738_v12  ;;  %p5160_p13 = pnand %p5159_p12, %p5469_p4 }
0x19db   : > { %4953 = vmatprep.mubr.msk.bf16.mxu1 %vm5267_vm1, %v5266_v8  ;;  %4952 = vmatpush3.bf16.msra.mxu1 %v3854_v45 }
0x19dc   : > { %4965 = vmatprep.subr.bf16.mxu1 %v5266_v8  ;;  %p5161_p0 = pneg %p5160_p13 }
0x1a9a   : > { %v3780_v29 = vpop.f32.mrf.mxu1 }
0x1a9b   : > { %v3786_v30 = vmul.f32 0.35355338, %v3780_v29  ;;  %v5114_v29 = vld [vmem:[%s5417_s20 + $0x18] sm:$0xff]  }
0x1a9c   : > { %v4943_v6 = vpop.f32.mrf.mxu1 }
0x1a9d   : > { %v3787_v21 = vadd.f32 %v5862_v15, %v3786_v30  ;;  %v3735_v15 = vpop.f32.mrf.mxu0  ;;  %v5115_v30 = vld [vmem:[%s5417_s20 + $0x10] sm:$0xff]   ;;  %v5116_v6 = vld [vmem:[%s5417_s20 + $0x8] sm:$0xff]  }
0x1a9e   : > { %v3783_v31 = vpop.f32.mrf.mxu1 }
0x1a9f   : > { %v3788_v32 = vsel %vm1234_vm2, %v3787_v21, -inf  ;;  %v4938_v13 = vpop.f32.mrf.mxu0  ;;  %v4479_v31 = vld [vmem:[%s6053_s9] ss:$0 sm:$0xff]  ;;  %s5954_s9 = scalar_lea.hbm %s6055_s10, %s4490_s3  ;;  %s5164_s3 = scalar_lea.vmem %s5163_s0, 256 }
0x1aa0   : > { %3789 = vmax.xlane.f32.xlu0 %v3788_v32  ;;  %v4944_v33 = vpop.f32.mrf.mxu1  ;;  %p5166_p2 = scmp.lt.s32.totalorder %s5164_s3, %s5158_s12 }
0x1aa2   : > { %p5167_p3 = por %p5166_p2, %p5165_p1 }
0x1aa4   : > { %p5168_p5 = pnand %p5167_p3, %p5161_p0 }
0x1b29   : > { %v3790_v34 = vpop.xlane.xlu0 %3789 }
0x1b2a   : > { %v3791_v35 = vsub.f32 %v3787_v21, %v3790_v34  ;;  %v5117_v21 = vld [vmem:[%s5417_s20] sm:$0xff]  }
0x1b2c   : > { %v3792_v36 = vmul.f32 1.442695, %v3791_v35 }
0x1b2e   : > { %5148 = vpow2.f32 %v3792_v36 }
0x1b3b   : > { %v5149_v10 = vpop.eup %5148 }
0x1b3c   : > { %v3794_v37 = vsel %vm1234_vm2, %v5149_v10, 0.0 }
0x1b3d   : > { %3795 = vadd.xlane.f32.xlu1 %v3794_v37 }
0x1bc6   : > { %v3796_v46 = vpop.xlane.xlu1 %3795 }
0x1bc7   : > { %5150 = vrcp.f32 %v3796_v46 }
0x1bd4   : > { %v5151_v47 = vpop.eup %5150 }
0x1bd5   : > { %v3798_v48 = vmul.f32 %v5151_v47, %v5149_v10 }
0x1bd7   : > { %v3799_v49 = vpack.c.bf16 %v3798_v48, %v3798_v48 }
0x1bd9   : > { %4948 = vmatmul.mubr.msk.bf16.vlgmr.msra.gmra.mxu0 %vm1234_vm2, %v3799_v49 }
0x1bda   : > { %4961 = vmatprep.mubr.msk.bf16.mxu0 %vm5267_vm1, %v5266_v8  ;;  %4958 = vmatpush3.bf16.msra.mxu0 %v5112_v14 }
0x1bdb   : > { %4959 = vmatprep.subr.bf16.mxu0 %v5266_v8 }
0x1bde   : > { %4960 = vmatpush3.bf16.msra.mxu0 %v5113_v16 }
0x1c99   : > { %v3841_v50 = vpop.f32.mrf.mxu0 }
0x1c9a   : > { %v3847_v51 = vpack.c.bf16 %v3841_v50, %v3841_v50 }
0x1c9b   : > { %v4949_v52 = vpop.f32.mrf.mxu0 }
0x1c9c   : > { %4954 = vmatmul.mubr.msk.bf16.vlgmr.msra.gmra.mxu1 %vm1234_vm2, %v3847_v51 }
0x1c9d   : > { %v3844_v53 = vpop.f32.mrf.mxu0  ;;  %4973 = vmatprep.mubr.msk.bf16.mxu1 %vm5267_vm1, %v5266_v8  ;;  %4966 = vmatpush3.bf16.msra.mxu1 %v5114_v29 }
0x1c9e   : > { %4967 = vmatprep.subr.bf16.mxu1 %v5266_v8 }
0x1c9f   : > { %v4950_v54 = vpop.f32.mrf.mxu0 }
0x1ca1   : > { %4968 = vmatpush3.bf16.msra.mxu1 %v5115_v30 }
0x1ca2   : > { %4969 = vmatprep.subr.bf16.mxu1 %v5266_v8 }
0x1ca5   : > { %4970 = vmatpush3.bf16.msra.mxu1 %v5116_v6 }
0x1ca6   : > { %4971 = vmatprep.subr.bf16.mxu1 %v5266_v8 }
0x1ca9   : > { %4972 = vmatpush3.bf16.msra.mxu1 %v5117_v21 }
0x1d5c   : > { %v3890_v57 = vpop.f32.mrf.mxu1 }
0x1d5d   : > { %v3896_v60 = vadd.f32 %v3890_v57, %v5897_v5 }
0x1d5e   : > { %v4955_v61 = vpop.f32.mrf.mxu1 }
0x1d5f   : > { %v3904_v63 = vadd.f32 %v4476_v58, %v3896_v60 }
0x1d60   : > { %v3893_v1 = vpop.f32.mrf.mxu1 }
0x1d61   : > { %v3907_v2 = vmul.f32 0.5, %v3904_v63 }
0x1d62   : > { %v4956_v3 = vpop.f32.mrf.mxu1 }
0x1d63   : > { %v3908_v4 = vadd.f32 %v3907_v2, %v3906_v19 }
0x1d65   : > { %v3909_v7 = vsel %vm1004_vm0, %v3908_v4, 0.0 }
0x1d66   : > { %3910 = vadd.xlane.f32.xlu0 %v3909_v7 }
0x1def   : > { %v3911_v23 = vpop.xlane.xlu0 %3910 }
0x1df0   : > { %v3912_v18 = vmul.f32 0.03125, %v3911_v23 }
0x1df2   : > { %v3913_v9 = vsub.f32 %v3908_v4, %v3912_v18 }
0x1df4   : > { %v3914_v11 = vmul.f32 %v3913_v9, %v3913_v9 }
0x1df6   : > { %v3915_v5 = vsel %vm1004_vm0, %v3914_v11, 0.0 }
0x1df7   : > { %3916 = vadd.xlane.f32.xlu1 %v3915_v5 }
0x1e80   : > { %v3917_v17 = vpop.xlane.xlu1 %3916 }
0x1e81   : > { %v3918_v20 = vmul.f32 0.03125, %v3917_v17 }
0x1e83   : > { %v3919_v22 = vadd.f32 1e-05, %v3918_v20 }
0x1e85   : > { %5152 = vrsqrt.f32 %v3919_v22 }
0x1e92   : > { %v5153_v24 = vpop.eup %5152 }
0x1e93   : > { %v3921_v26 = vmul.f32 %v5153_v24, %v3913_v9 }
0x1e95   : > { %v3929_v12 = vmul.f32 %v4477_v25, %v3921_v26 }
0x1e97   : > { %v3937_v27 = vadd.f32 %v4478_v62, %v3929_v12 }
0x1e99   : > { %v3938_v28 = vpack.c.bf16 %v3937_v27, %v3937_v27 }
0x1e9b   : > { %4962 = vmatmul.mubr.msk.bf16.vlgmr.msra.gmra.mxu0 %vm1004_vm0, %v3938_v28 }
0x1f5b   : > { %v3999_v32 = vpop.f32.mrf.mxu0 }
0x1f5c   : > { %v4000_v33 = vadd.f32 %v4479_v31, %v3999_v32 }
0x1f5d   : > { %v4963_v34 = vpop.f32.mrf.mxu0 }
0x1f5e   : > { %v4006_v35 = vmul.f32 0.70710677, %v4000_v33  ;;  %v4005_v38 = vmul.f32 0.5, %v4000_v33 }
0x1f5f   : > { %v4002_v36 = vpop.f32.mrf.mxu0 }
0x1f60   : > { %5154 = verf.f32 %v4006_v35 }
0x1f61   : > { %v4964_v10 = vpop.f32.mrf.mxu0 }
0x1f6d   : > { %v5155_v37 = vpop.eup %5154 }
0x1f6e   : > { %v4008_v39 = vadd.f32 1.0, %v5155_v37 }
0x1f70   : > { %v4009_v43 = vmul.f32 %v4008_v39, %v4005_v38 }
0x1f72   : > { %v4010_v8 = vpack.c.bf16 %v4009_v43, %v4009_v43 }
0x1f74   : > { %4974 = vmatmul.mubr.msk.bf16.vlgmr.msra.gmra.mxu1 %vm4050_vm4, %v4010_v8 }
0x2034   : > { %v4088_v41 = vpop.f32.mrf.mxu1 }
0x2035   : > { %v4089_v15 = vadd.f32 %v4483_v40, %v4088_v41 }
0x2036   : > { %v4975_v42 = vpop.f32.mrf.mxu1 }
0x2037   : > { %v4094_v13 = vadd.f32 %v4089_v15, %v3908_v4 }
0x2038   : > { %v4091_v44 = vpop.f32.mrf.mxu1 }
0x2039   : > { %4095 = vst.msk [vmem:[%s980_s5] sm:$0xff] %vm1004_vm0, %v4094_v13 }
0x203a   : > { %v4976_v45 = vpop.f32.mrf.mxu1 }
0x203b   : > { %5171 = shalt.err (!%p5168_p5)
}
0x203c   : > { %s5172_s5 = scalar_lea.hbm %s5954_s9, 128  ;;  %s5176_s2 = scalar_lea.hbm %s6055_s10, 256 }
0x203d   : > { %p5173_p6 = scmp.ne.s32.totalorder %s5954_s9, %s5172_s5  ;;  %p5177_p10 = scmp.lt.s32.totalorder %s5954_s9, %s6055_s10 }
0x203e   : > { %p5178_p11 = scmp.lt.s32.totalorder %s5176_s2, %s5172_s5 }
0x203f   : > { %p5174_p7 = pnand %p5173_p6, %p5469_p4 }
0x2040   : > { %p5179_p12 = por %p5178_p11, %p5177_p10 }
0x2041   : > { %p5175_p9 = pneg %p5174_p7 }
0x2043   : > { %p5180_p13 = pnand %p5179_p12, %p5175_p9 }
0x2045   : > { %5183 = shalt.err (!%p5180_p13)
}
0x2046   : > { %4977 = dma.vmem_to_hbm [thread:$0]  (%p5469_p4), %s5956_s8, 128, %s5954_s9, %s4097_s4  }
0x2047 PF: > { %p4983_p0 = scmp.ge.s32.totalorder %s5234_s26, 2  ;;  %s4123_s12 = sand.u32 1, %s5214_s15  }
0x2048   : > { %s4124_s22 = scalar_lea.sflag [#allocation3], %s4123_s12 }
0x2049   : > { %p4980_p1 = pnand %p4983_p0, %p5476_p8 }
0x204b   : > { %p4981_p2 = pneg %p4980_p1 }
0x204d   : > { %5209 = dma.done.wait (%p4981_p2), %s4124_s22, 128  }
0x204e   : > { %5211 = vsyncadd (%p4981_p2), %s4124_s22, 4294967168  ;;  %s74_s26 = sadd.s32 1, %s5234_s26   ;;  %s6056_s15 = smov %s5218_s16 }
0x204f   : > { %p71_p3 = scmp.ge.s32.totalorder %s74_s26, 4   ;;  %s6057_s16 = smov %s5222_s18 }
0x2050   : > { %s6058_s18 = smov %s5482_s6  ;;  %s6059_s22 = smov %s5230_s23 }
0x2051   : > { %s6060_s23 = smov %s6062_s1  ;;  %73 = sbr.rel (!%p71_p3) target bundleno = 62 (0x3e), region = 256 }
0x2056   :  { %4129 = vsyncpa [#allocation3], 1 }
0x2057   :  { %4131 = vsyncpa [#allocation3 + $0x1], 1 }

</bundles_post_ra>
